<compile_context>
chip_gen: v6e
topology: v6e:2x2x1
jax: 0.10.0
libtpu: 0.0.40
codegen_flags: <defaults>
</compile_context>

<pallas_src>
import jax
import jax.numpy as jnp
from jax import lax
from jax.experimental import pallas as pl
from jax.experimental.pallas import tpu as pltpu

EMB = 64            # embedding_size
ENC_OUT = 128       # resnet output channels
NEG_SLOPE = 0.01    # nn.LeakyReLU default
LN_EPS = 1e-5       # nn.LayerNorm default


# ----------------------------- kernel ------------------------------------- #

def _leaky_relu(x):
    return jnp.where(x > 0, x, NEG_SLOPE * x)


def _layer_norm(x, gamma, beta):
    mu = jnp.mean(x, axis=-1, keepdims=True)
    var = jnp.mean((x - mu) ** 2, axis=-1, keepdims=True)
    return (x - mu) * lax.rsqrt(var + LN_EPS) * gamma + beta


def fused_forward_kernel(img1_ref, img2_ref,
                         wet_ref, bec_ref,
                         w1_ref, b1_ref, g1_ref, bt1_ref,
                         w2_ref, b2_ref, g2_ref, bt2_ref,
                         w3_ref, b3_ref, g3_ref, bt3_ref,
                         wc1_ref, bc1_ref, wc2_ref, bc2_ref, wc3_ref, bc3_ref,
                         out_ref):
    """Fused encoder stand-in + latent_reducer + classify_mri.

    img*_ref : (B, C, H*W)  float32  (free reshape of NCHW)
    wet_ref  : (128, C)     transposed 1x1-conv weight
    bec_ref  : (128, 1)     conv bias as a column
    out_ref  : (B, 1)
    """
    batch = out_ref.shape[0]
    chans = img1_ref.shape[1]

    wet = wet_ref[...]                                   # (128, C)
    bec = bec_ref[...]                                   # (128, 1)

    def encode_cols(img_ref):
        """Synthetic resnet: 1x1 conv (rank-1 VPU FMAs over C) + ReLU + GAP.

        Works feature-major: acc has out-channels on sublanes, spatial on
        lanes, so the NCHW image never needs a transpose. Returns one
        (128, 1) column per batch row.
        """
        cols = []
        for b in range(batch):                           # static unroll (B small)
            x_b = img_ref[b]                             # (C, H*W)
            acc = bec + wet[:, 0:1] * x_b[0:1, :]        # (128, H*W)
            for c in range(1, chans):                    # static unroll (C=4)
                acc = acc + wet[:, c:c + 1] * x_b[c:c + 1, :]
            h = jnp.maximum(acc, 0.0)                    # ReLU
            cols.append(jnp.mean(h, axis=1, keepdims=True))   # GAP -> (128, 1)
        return cols

    cols = encode_cols(img1_ref) + encode_cols(img2_ref)     # 2B columns

    # Place the 2B columns into a (128, 2B) feature-major block via lane masks
    # (avoids a width-1 lane-axis concatenate).
    nrows = 2 * batch
    lane_ids = lax.broadcasted_iota(jnp.int32, (1, nrows), 1)
    enc_t = jnp.zeros((ENC_OUT, nrows), jnp.float32)
    for r, col in enumerate(cols):
        enc_t = enc_t + jnp.where(lane_ids == r, col, 0.0)    # (128, 2B)

    # latent_reducer (shared weights) on all 2B rows at once.
    # First Linear contracts the sublane (feature) dim of enc_t directly
    # (lhs-transposed MXU matmul) -> no explicit transpose of enc_t.
    h = lax.dot_general(enc_t, w1_ref[...],
                        dimension_numbers=(((0,), (0,)), ((), ())),
                        preferred_element_type=jnp.float32) + b1_ref[...]
    h = _layer_norm(_leaky_relu(h), g1_ref[...], bt1_ref[...])        # (2B, 500)

    h = jnp.dot(h, w2_ref[...], preferred_element_type=jnp.float32) + b2_ref[...]
    h = _layer_norm(_leaky_relu(h), g2_ref[...], bt2_ref[...])        # (2B, 100)

    h = jnp.dot(h, w3_ref[...], preferred_element_type=jnp.float32) + b3_ref[...]
    h = _layer_norm(_leaky_relu(h), g3_ref[...], bt3_ref[...])        # (2B, 64)

    # classify_mri on cat([first_reduced, second_reduced], dim=1):
    # implemented as a split matmul -> no lane-axis concat / data movement.
    first_r = h[:batch]                                               # (B, 64)
    second_r = h[batch:]                                              # (B, 64)
    c = (jnp.dot(first_r, wc1_ref[:EMB, :], preferred_element_type=jnp.float32)
         + jnp.dot(second_r, wc1_ref[EMB:, :], preferred_element_type=jnp.float32)
         + bc1_ref[...])
    c = _leaky_relu(c)                                                # (B, 64)
    c = _leaky_relu(jnp.dot(c, wc2_ref[...],
                            preferred_element_type=jnp.float32) + bc2_ref[...])  # (B, 10)
    out_ref[...] = (jnp.dot(c, wc3_ref[...],
                            preferred_element_type=jnp.float32) + bc3_ref[...])  # (B, 1)


# ----------------------------- wrapper ------------------------------------- #

_VMEM = pl.BlockSpec(memory_space=pltpu.MemorySpace.VMEM)


@jax.jit
def model_forward(first_img, second_img, non_mri_data, params):
    """first_img / second_img: NCHW float32; non_mri_data: (B, 11) (unused in math,
    as in the PyTorch reference forward)."""
    batch = non_mri_data.shape[0]
    b, c, h, w = first_img.shape

    def to_bcp(img):  # NCHW -> (B, C, H*W): pure metadata reshape, no data movement
        return img.reshape(b, c, h * w)

    args = (
        to_bcp(first_img), to_bcp(second_img),
        params["wet"], params["bec"],
        params["w1"], params["b1"], params["g1"], params["bt1"],
        params["w2"], params["b2"], params["g2"], params["bt2"],
        params["w3"], params["b3"], params["g3"], params["bt3"],
        params["wc1"], params["bc1"],
        params["wc2"], params["bc2"],
        params["wc3"], params["bc3"],
    )
    return pl.pallas_call(
        fused_forward_kernel,
        out_shape=jax.ShapeDtypeStruct((batch, 1), jnp.float32),
        in_specs=[_VMEM] * len(args),
        out_specs=_VMEM,
    )(*args)


# ----------------------------- params -------------------------------------- #

def init_params(key, in_channels):
    ks = jax.random.split(key, 8)
    s = 0.05

    def lin(k, din, dout):
        kw, kb = jax.random.split(k)
        return (jax.random.normal(kw, (din, dout), jnp.float32) * s,
                jax.random.normal(kb, (1, dout), jnp.float32) * s)

    we, be = lin(ks[0], in_channels, ENC_OUT)      # synthetic 1x1-conv stand-in
    w1, b1 = lin(ks[1], ENC_OUT, 500)
    w2, b2 = lin(ks[2], 500, 100)
    w3, b3 = lin(ks[3], 100, EMB)
    wc1, bc1 = lin(ks[4], EMB * 2, EMB)
    wc2, bc2 = lin(ks[5], EMB, 10)
    wc3, bc3 = lin(ks[6], 10, 1)

    return dict(
        # store the conv weight/bias feature-major so the kernel never transposes
        wet=jnp.transpose(we),            # (128, C)
        bec=jnp.transpose(be),            # (128, 1)
        w1=w1, b1=b1, g1=jnp.ones((1, 500), jnp.float32), bt1=jnp.zeros((1, 500), jnp.float32),
        w2=w2, b2=b2, g2=jnp.ones((1, 100), jnp.float32), bt2=jnp.zeros((1, 100), jnp.float32),
        w3=w3, b3=b3, g3=jnp.ones((1, EMB), jnp.float32), bt3=jnp.zeros((1, EMB), jnp.float32),
        wc1=wc1, bc1=bc1, wc2=wc2, bc2=bc2, wc3=wc3, bc3=bc3,
    )


# ----------------------------- main ---------------------------------------- #

if __name__ == "__main__":
    key = jax.random.PRNGKey(0)
    k_img1, k_img2, k_nm, k_par = jax.random.split(key, 4)

    B, C, H, W = 2, 4, 16, 16
    first_img = jax.random.normal(k_img1, (B, C, H, W), jnp.float32)
    second_img = jax.random.normal(k_img2, (B, C, H, W), jnp.float32)
    # [hr, her2, age, race_ohe(6), menopausal_ohe(3)] -> 11 features
    non_mri_data = jax.random.normal(k_nm, (B, 11), jnp.float32)

    params = init_params(k_par, C)

    logits = model_forward(first_img, second_img, non_mri_data, params)
    jax.block_until_ready(logits)
    assert logits.shape == (B, 1), logits.shape
    print("KERNEL_OK")
</pallas_src>

<mosaic_0001>
module attributes {stable_mosaic.version = 11 : i64} {
  func.func @fused_forward_kernel(%arg0: memref<2x4x256xf32, #tpu.memory_space<vmem>>, %arg1: memref<2x4x256xf32, #tpu.memory_space<vmem>>, %arg2: memref<128x4xf32, #tpu.memory_space<vmem>>, %arg3: memref<128x1xf32, #tpu.memory_space<vmem>>, %arg4: memref<128x500xf32, #tpu.memory_space<vmem>>, %arg5: memref<1x500xf32, #tpu.memory_space<vmem>>, %arg6: memref<1x500xf32, #tpu.memory_space<vmem>>, %arg7: memref<1x500xf32, #tpu.memory_space<vmem>>, %arg8: memref<500x100xf32, #tpu.memory_space<vmem>>, %arg9: memref<1x100xf32, #tpu.memory_space<vmem>>, %arg10: memref<1x100xf32, #tpu.memory_space<vmem>>, %arg11: memref<1x100xf32, #tpu.memory_space<vmem>>, %arg12: memref<100x64xf32, #tpu.memory_space<vmem>>, %arg13: memref<1x64xf32, #tpu.memory_space<vmem>>, %arg14: memref<1x64xf32, #tpu.memory_space<vmem>>, %arg15: memref<1x64xf32, #tpu.memory_space<vmem>>, %arg16: memref<128x64xf32, #tpu.memory_space<vmem>>, %arg17: memref<1x64xf32, #tpu.memory_space<vmem>>, %arg18: memref<64x10xf32, #tpu.memory_space<vmem>>, %arg19: memref<1x10xf32, #tpu.memory_space<vmem>>, %arg20: memref<10x1xf32, #tpu.memory_space<vmem>>, %arg21: memref<1x1xf32, #tpu.memory_space<vmem>>, %arg22: memref<2x1xf32, #tpu.memory_space<vmem>>) attributes {dimension_semantics = [], scalar_prefetch = 0 : i64, scratch_operands = 0 : i64, tpu.core_type = #tpu.core_type<tc>} {
    %c0 = arith.constant 0 : index
    %c0_0 = arith.constant 0 : index
    %0 = vector.load %arg2[%c0, %c0_0] : memref<128x4xf32, #tpu.memory_space<vmem>>, vector<128x4xf32>
    %c0_1 = arith.constant 0 : index
    %c0_2 = arith.constant 0 : index
    %1 = vector.load %arg3[%c0_1, %c0_2] : memref<128x1xf32, #tpu.memory_space<vmem>>, vector<128x1xf32>
    %c0_3 = arith.constant 0 : index
    %c0_4 = arith.constant 0 : index
    %c0_5 = arith.constant 0 : index
    %2 = vector.load %arg0[%c0_3, %c0_4, %c0_5] : memref<2x4x256xf32, #tpu.memory_space<vmem>>, vector<1x4x256xf32>
    %3 = vector.shape_cast %2 : vector<1x4x256xf32> to vector<4x256xf32>
    %4 = vector.extract_strided_slice %0 {offsets = [0, 0], sizes = [128, 1], strides = [1, 1]} : vector<128x4xf32> to vector<128x1xf32>
    %5 = vector.extract_strided_slice %3 {offsets = [0, 0], sizes = [1, 256], strides = [1, 1]} : vector<4x256xf32> to vector<1x256xf32>
    %6 = vector.broadcast %4 : vector<128x1xf32> to vector<128x256xf32>
    %7 = vector.broadcast %5 : vector<1x256xf32> to vector<128x256xf32>
    %8 = arith.mulf %6, %7 : vector<128x256xf32>
    %9 = vector.broadcast %1 : vector<128x1xf32> to vector<128x256xf32>
    %10 = arith.addf %9, %8 : vector<128x256xf32>
    %11 = vector.extract_strided_slice %0 {offsets = [0, 1], sizes = [128, 1], strides = [1, 1]} : vector<128x4xf32> to vector<128x1xf32>
    %12 = vector.extract_strided_slice %3 {offsets = [1, 0], sizes = [1, 256], strides = [1, 1]} : vector<4x256xf32> to vector<1x256xf32>
    %13 = vector.broadcast %11 : vector<128x1xf32> to vector<128x256xf32>
    %14 = vector.broadcast %12 : vector<1x256xf32> to vector<128x256xf32>
    %15 = arith.mulf %13, %14 : vector<128x256xf32>
    %16 = arith.addf %10, %15 : vector<128x256xf32>
    %17 = vector.extract_strided_slice %0 {offsets = [0, 2], sizes = [128, 1], strides = [1, 1]} : vector<128x4xf32> to vector<128x1xf32>
    %18 = vector.extract_strided_slice %3 {offsets = [2, 0], sizes = [1, 256], strides = [1, 1]} : vector<4x256xf32> to vector<1x256xf32>
    %19 = vector.broadcast %17 : vector<128x1xf32> to vector<128x256xf32>
    %20 = vector.broadcast %18 : vector<1x256xf32> to vector<128x256xf32>
    %21 = arith.mulf %19, %20 : vector<128x256xf32>
    %22 = arith.addf %16, %21 : vector<128x256xf32>
    %23 = vector.extract_strided_slice %0 {offsets = [0, 3], sizes = [128, 1], strides = [1, 1]} : vector<128x4xf32> to vector<128x1xf32>
    %24 = vector.extract_strided_slice %3 {offsets = [3, 0], sizes = [1, 256], strides = [1, 1]} : vector<4x256xf32> to vector<1x256xf32>
    %25 = vector.broadcast %23 : vector<128x1xf32> to vector<128x256xf32>
    %26 = vector.broadcast %24 : vector<1x256xf32> to vector<128x256xf32>
    %27 = arith.mulf %25, %26 : vector<128x256xf32>
    %28 = arith.addf %22, %27 : vector<128x256xf32>
    %cst = arith.constant 0.000000e+00 : f32
    %29 = vector.broadcast %cst : f32 to vector<128x256xf32>
    %30 = arith.maximumf %28, %29 : vector<128x256xf32>
    %cst_6 = arith.constant dense<0.000000e+00> : vector<128xf32>
    %31 = vector.multi_reduction <add>, %30, %cst_6 [1] : vector<128x256xf32> to vector<128xf32>
    %32 = vector.shape_cast %31 : vector<128xf32> to vector<128x1xf32>
    %cst_7 = arith.constant 2.560000e+02 : f32
    %33 = vector.broadcast %cst_7 : f32 to vector<128x1xf32>
    %34 = arith.divf %32, %33 : vector<128x1xf32>
    %c1 = arith.constant 1 : index
    %c0_8 = arith.constant 0 : index
    %c0_9 = arith.constant 0 : index
    %35 = vector.load %arg0[%c1, %c0_8, %c0_9] : memref<2x4x256xf32, #tpu.memory_space<vmem>>, vector<1x4x256xf32>
    %36 = vector.shape_cast %35 : vector<1x4x256xf32> to vector<4x256xf32>
    %37 = vector.extract_strided_slice %0 {offsets = [0, 0], sizes = [128, 1], strides = [1, 1]} : vector<128x4xf32> to vector<128x1xf32>
    %38 = vector.extract_strided_slice %36 {offsets = [0, 0], sizes = [1, 256], strides = [1, 1]} : vector<4x256xf32> to vector<1x256xf32>
    %39 = vector.broadcast %37 : vector<128x1xf32> to vector<128x256xf32>
    %40 = vector.broadcast %38 : vector<1x256xf32> to vector<128x256xf32>
    %41 = arith.mulf %39, %40 : vector<128x256xf32>
    %42 = vector.broadcast %1 : vector<128x1xf32> to vector<128x256xf32>
    %43 = arith.addf %42, %41 : vector<128x256xf32>
    %44 = vector.extract_strided_slice %0 {offsets = [0, 1], sizes = [128, 1], strides = [1, 1]} : vector<128x4xf32> to vector<128x1xf32>
    %45 = vector.extract_strided_slice %36 {offsets = [1, 0], sizes = [1, 256], strides = [1, 1]} : vector<4x256xf32> to vector<1x256xf32>
    %46 = vector.broadcast %44 : vector<128x1xf32> to vector<128x256xf32>
    %47 = vector.broadcast %45 : vector<1x256xf32> to vector<128x256xf32>
    %48 = arith.mulf %46, %47 : vector<128x256xf32>
    %49 = arith.addf %43, %48 : vector<128x256xf32>
    %50 = vector.extract_strided_slice %0 {offsets = [0, 2], sizes = [128, 1], strides = [1, 1]} : vector<128x4xf32> to vector<128x1xf32>
    %51 = vector.extract_strided_slice %36 {offsets = [2, 0], sizes = [1, 256], strides = [1, 1]} : vector<4x256xf32> to vector<1x256xf32>
    %52 = vector.broadcast %50 : vector<128x1xf32> to vector<128x256xf32>
    %53 = vector.broadcast %51 : vector<1x256xf32> to vector<128x256xf32>
    %54 = arith.mulf %52, %53 : vector<128x256xf32>
    %55 = arith.addf %49, %54 : vector<128x256xf32>
    %56 = vector.extract_strided_slice %0 {offsets = [0, 3], sizes = [128, 1], strides = [1, 1]} : vector<128x4xf32> to vector<128x1xf32>
    %57 = vector.extract_strided_slice %36 {offsets = [3, 0], sizes = [1, 256], strides = [1, 1]} : vector<4x256xf32> to vector<1x256xf32>
    %58 = vector.broadcast %56 : vector<128x1xf32> to vector<128x256xf32>
    %59 = vector.broadcast %57 : vector<1x256xf32> to vector<128x256xf32>
    %60 = arith.mulf %58, %59 : vector<128x256xf32>
    %61 = arith.addf %55, %60 : vector<128x256xf32>
    %cst_10 = arith.constant 0.000000e+00 : f32
    %62 = vector.broadcast %cst_10 : f32 to vector<128x256xf32>
    %63 = arith.maximumf %61, %62 : vector<128x256xf32>
    %cst_11 = arith.constant dense<0.000000e+00> : vector<128xf32>
    %64 = vector.multi_reduction <add>, %63, %cst_11 [1] : vector<128x256xf32> to vector<128xf32>
    %65 = vector.shape_cast %64 : vector<128xf32> to vector<128x1xf32>
    %cst_12 = arith.constant 2.560000e+02 : f32
    %66 = vector.broadcast %cst_12 : f32 to vector<128x1xf32>
    %67 = arith.divf %65, %66 : vector<128x1xf32>
    %c0_13 = arith.constant 0 : index
    %c0_14 = arith.constant 0 : index
    %c0_15 = arith.constant 0 : index
    %68 = vector.load %arg1[%c0_13, %c0_14, %c0_15] : memref<2x4x256xf32, #tpu.memory_space<vmem>>, vector<1x4x256xf32>
    %69 = vector.shape_cast %68 : vector<1x4x256xf32> to vector<4x256xf32>
    %70 = vector.extract_strided_slice %0 {offsets = [0, 0], sizes = [128, 1], strides = [1, 1]} : vector<128x4xf32> to vector<128x1xf32>
    %71 = vector.extract_strided_slice %69 {offsets = [0, 0], sizes = [1, 256], strides = [1, 1]} : vector<4x256xf32> to vector<1x256xf32>
    %72 = vector.broadcast %70 : vector<128x1xf32> to vector<128x256xf32>
    %73 = vector.broadcast %71 : vector<1x256xf32> to vector<128x256xf32>
    %74 = arith.mulf %72, %73 : vector<128x256xf32>
    %75 = vector.broadcast %1 : vector<128x1xf32> to vector<128x256xf32>
    %76 = arith.addf %75, %74 : vector<128x256xf32>
    %77 = vector.extract_strided_slice %0 {offsets = [0, 1], sizes = [128, 1], strides = [1, 1]} : vector<128x4xf32> to vector<128x1xf32>
    %78 = vector.extract_strided_slice %69 {offsets = [1, 0], sizes = [1, 256], strides = [1, 1]} : vector<4x256xf32> to vector<1x256xf32>
    %79 = vector.broadcast %77 : vector<128x1xf32> to vector<128x256xf32>
    %80 = vector.broadcast %78 : vector<1x256xf32> to vector<128x256xf32>
    %81 = arith.mulf %79, %80 : vector<128x256xf32>
    %82 = arith.addf %76, %81 : vector<128x256xf32>
    %83 = vector.extract_strided_slice %0 {offsets = [0, 2], sizes = [128, 1], strides = [1, 1]} : vector<128x4xf32> to vector<128x1xf32>
    %84 = vector.extract_strided_slice %69 {offsets = [2, 0], sizes = [1, 256], strides = [1, 1]} : vector<4x256xf32> to vector<1x256xf32>
    %85 = vector.broadcast %83 : vector<128x1xf32> to vector<128x256xf32>
    %86 = vector.broadcast %84 : vector<1x256xf32> to vector<128x256xf32>
    %87 = arith.mulf %85, %86 : vector<128x256xf32>
    %88 = arith.addf %82, %87 : vector<128x256xf32>
    %89 = vector.extract_strided_slice %0 {offsets = [0, 3], sizes = [128, 1], strides = [1, 1]} : vector<128x4xf32> to vector<128x1xf32>
    %90 = vector.extract_strided_slice %69 {offsets = [3, 0], sizes = [1, 256], strides = [1, 1]} : vector<4x256xf32> to vector<1x256xf32>
    %91 = vector.broadcast %89 : vector<128x1xf32> to vector<128x256xf32>
    %92 = vector.broadcast %90 : vector<1x256xf32> to vector<128x256xf32>
    %93 = arith.mulf %91, %92 : vector<128x256xf32>
    %94 = arith.addf %88, %93 : vector<128x256xf32>
    %cst_16 = arith.constant 0.000000e+00 : f32
    %95 = vector.broadcast %cst_16 : f32 to vector<128x256xf32>
    %96 = arith.maximumf %94, %95 : vector<128x256xf32>
    %cst_17 = arith.constant dense<0.000000e+00> : vector<128xf32>
    %97 = vector.multi_reduction <add>, %96, %cst_17 [1] : vector<128x256xf32> to vector<128xf32>
    %98 = vector.shape_cast %97 : vector<128xf32> to vector<128x1xf32>
    %cst_18 = arith.constant 2.560000e+02 : f32
    %99 = vector.broadcast %cst_18 : f32 to vector<128x1xf32>
    %100 = arith.divf %98, %99 : vector<128x1xf32>
    %c1_19 = arith.constant 1 : index
    %c0_20 = arith.constant 0 : index
    %c0_21 = arith.constant 0 : index
    %101 = vector.load %arg1[%c1_19, %c0_20, %c0_21] : memref<2x4x256xf32, #tpu.memory_space<vmem>>, vector<1x4x256xf32>
    %102 = vector.shape_cast %101 : vector<1x4x256xf32> to vector<4x256xf32>
    %103 = vector.extract_strided_slice %0 {offsets = [0, 0], sizes = [128, 1], strides = [1, 1]} : vector<128x4xf32> to vector<128x1xf32>
    %104 = vector.extract_strided_slice %102 {offsets = [0, 0], sizes = [1, 256], strides = [1, 1]} : vector<4x256xf32> to vector<1x256xf32>
    %105 = vector.broadcast %103 : vector<128x1xf32> to vector<128x256xf32>
    %106 = vector.broadcast %104 : vector<1x256xf32> to vector<128x256xf32>
    %107 = arith.mulf %105, %106 : vector<128x256xf32>
    %108 = vector.broadcast %1 : vector<128x1xf32> to vector<128x256xf32>
    %109 = arith.addf %108, %107 : vector<128x256xf32>
    %110 = vector.extract_strided_slice %0 {offsets = [0, 1], sizes = [128, 1], strides = [1, 1]} : vector<128x4xf32> to vector<128x1xf32>
    %111 = vector.extract_strided_slice %102 {offsets = [1, 0], sizes = [1, 256], strides = [1, 1]} : vector<4x256xf32> to vector<1x256xf32>
    %112 = vector.broadcast %110 : vector<128x1xf32> to vector<128x256xf32>
    %113 = vector.broadcast %111 : vector<1x256xf32> to vector<128x256xf32>
    %114 = arith.mulf %112, %113 : vector<128x256xf32>
    %115 = arith.addf %109, %114 : vector<128x256xf32>
    %116 = vector.extract_strided_slice %0 {offsets = [0, 2], sizes = [128, 1], strides = [1, 1]} : vector<128x4xf32> to vector<128x1xf32>
    %117 = vector.extract_strided_slice %102 {offsets = [2, 0], sizes = [1, 256], strides = [1, 1]} : vector<4x256xf32> to vector<1x256xf32>
    %118 = vector.broadcast %116 : vector<128x1xf32> to vector<128x256xf32>
    %119 = vector.broadcast %117 : vector<1x256xf32> to vector<128x256xf32>
    %120 = arith.mulf %118, %119 : vector<128x256xf32>
    %121 = arith.addf %115, %120 : vector<128x256xf32>
    %122 = vector.extract_strided_slice %0 {offsets = [0, 3], sizes = [128, 1], strides = [1, 1]} : vector<128x4xf32> to vector<128x1xf32>
    %123 = vector.extract_strided_slice %102 {offsets = [3, 0], sizes = [1, 256], strides = [1, 1]} : vector<4x256xf32> to vector<1x256xf32>
    %124 = vector.broadcast %122 : vector<128x1xf32> to vector<128x256xf32>
    %125 = vector.broadcast %123 : vector<1x256xf32> to vector<128x256xf32>
    %126 = arith.mulf %124, %125 : vector<128x256xf32>
    %127 = arith.addf %121, %126 : vector<128x256xf32>
    %cst_22 = arith.constant 0.000000e+00 : f32
    %128 = vector.broadcast %cst_22 : f32 to vector<128x256xf32>
    %129 = arith.maximumf %127, %128 : vector<128x256xf32>
    %cst_23 = arith.constant dense<0.000000e+00> : vector<128xf32>
    %130 = vector.multi_reduction <add>, %129, %cst_23 [1] : vector<128x256xf32> to vector<128xf32>
    %131 = vector.shape_cast %130 : vector<128xf32> to vector<128x1xf32>
    %cst_24 = arith.constant 2.560000e+02 : f32
    %132 = vector.broadcast %cst_24 : f32 to vector<128x1xf32>
    %133 = arith.divf %131, %132 : vector<128x1xf32>
    %134 = tpu.iota {dimensions = array<i32: 1>} : vector<1x4xi32>
    %cst_25 = arith.constant 0.000000e+00 : f32
    %135 = vector.broadcast %cst_25 : f32 to vector<128x4xf32>
    %c0_i32 = arith.constant 0 : i32
    %136 = vector.broadcast %c0_i32 : i32 to vector<1x4xi32>
    %137 = arith.cmpi eq, %134, %136 : vector<1x4xi32>
    %cst_26 = arith.constant 0.000000e+00 : f32
    %138 = vector.shape_cast %137 : vector<1x4xi1> to vector<1x4xi1>
    %139 = vector.broadcast %138 : vector<1x4xi1> to vector<128x4xi1>
    %140 = vector.shape_cast %34 : vector<128x1xf32> to vector<128x1xf32>
    %141 = vector.broadcast %140 : vector<128x1xf32> to vector<128x4xf32>
    %142 = vector.broadcast %cst_26 : f32 to vector<128x4xf32>
    %143 = arith.select %139, %141, %142 : vector<128x4xi1>, vector<128x4xf32>
    %144 = arith.addf %135, %143 : vector<128x4xf32>
    %c1_i32 = arith.constant 1 : i32
    %145 = vector.broadcast %c1_i32 : i32 to vector<1x4xi32>
    %146 = arith.cmpi eq, %134, %145 : vector<1x4xi32>
    %cst_27 = arith.constant 0.000000e+00 : f32
    %147 = vector.shape_cast %146 : vector<1x4xi1> to vector<1x4xi1>
    %148 = vector.broadcast %147 : vector<1x4xi1> to vector<128x4xi1>
    %149 = vector.shape_cast %67 : vector<128x1xf32> to vector<128x1xf32>
    %150 = vector.broadcast %149 : vector<128x1xf32> to vector<128x4xf32>
    %151 = vector.broadcast %cst_27 : f32 to vector<128x4xf32>
    %152 = arith.select %148, %150, %151 : vector<128x4xi1>, vector<128x4xf32>
    %153 = arith.addf %144, %152 : vector<128x4xf32>
    %c2_i32 = arith.constant 2 : i32
    %154 = vector.broadcast %c2_i32 : i32 to vector<1x4xi32>
    %155 = arith.cmpi eq, %134, %154 : vector<1x4xi32>
    %cst_28 = arith.constant 0.000000e+00 : f32
    %156 = vector.shape_cast %155 : vector<1x4xi1> to vector<1x4xi1>
    %157 = vector.broadcast %156 : vector<1x4xi1> to vector<128x4xi1>
    %158 = vector.shape_cast %100 : vector<128x1xf32> to vector<128x1xf32>
    %159 = vector.broadcast %158 : vector<128x1xf32> to vector<128x4xf32>
    %160 = vector.broadcast %cst_28 : f32 to vector<128x4xf32>
    %161 = arith.select %157, %159, %160 : vector<128x4xi1>, vector<128x4xf32>
    %162 = arith.addf %153, %161 : vector<128x4xf32>
    %c3_i32 = arith.constant 3 : i32
    %163 = vector.broadcast %c3_i32 : i32 to vector<1x4xi32>
    %164 = arith.cmpi eq, %134, %163 : vector<1x4xi32>
    %cst_29 = arith.constant 0.000000e+00 : f32
    %165 = vector.shape_cast %164 : vector<1x4xi1> to vector<1x4xi1>
    %166 = vector.broadcast %165 : vector<1x4xi1> to vector<128x4xi1>
    %167 = vector.shape_cast %133 : vector<128x1xf32> to vector<128x1xf32>
    %168 = vector.broadcast %167 : vector<128x1xf32> to vector<128x4xf32>
    %169 = vector.broadcast %cst_29 : f32 to vector<128x4xf32>
    %170 = arith.select %166, %168, %169 : vector<128x4xi1>, vector<128x4xf32>
    %171 = arith.addf %162, %170 : vector<128x4xf32>
    %c0_30 = arith.constant 0 : index
    %c0_31 = arith.constant 0 : index
    %172 = vector.load %arg4[%c0_30, %c0_31] : memref<128x500xf32, #tpu.memory_space<vmem>>, vector<128x500xf32>
    %cst_32 = arith.constant dense<0.000000e+00> : vector<4x500xf32>
    %173 = tpu.matmul %171, %172, %cst_32 {dimension_numbers = #tpu.dot_dimension_numbers<[0], [0], [1], [1], [0, 1, 1, 1], [], []>} : vector<128x4xf32>, vector<128x500xf32>, vector<4x500xf32> -> vector<4x500xf32>
    %c0_33 = arith.constant 0 : index
    %c0_34 = arith.constant 0 : index
    %174 = vector.load %arg5[%c0_33, %c0_34] : memref<1x500xf32, #tpu.memory_space<vmem>>, vector<1x500xf32>
    %175 = vector.broadcast %174 : vector<1x500xf32> to vector<4x500xf32>
    %176 = arith.addf %173, %175 : vector<4x500xf32>
    %cst_35 = arith.constant 0.000000e+00 : f32
    %177 = vector.broadcast %cst_35 : f32 to vector<4x500xf32>
    %178 = arith.cmpf ogt, %176, %177 : vector<4x500xf32>
    %cst_36 = arith.constant 0.00999999977 : f32
    %179 = vector.broadcast %cst_36 : f32 to vector<4x500xf32>
    %180 = arith.mulf %179, %176 : vector<4x500xf32>
    %181 = arith.select %178, %176, %180 : vector<4x500xi1>, vector<4x500xf32>
    %c0_37 = arith.constant 0 : index
    %c0_38 = arith.constant 0 : index
    %182 = vector.load %arg6[%c0_37, %c0_38] : memref<1x500xf32, #tpu.memory_space<vmem>>, vector<1x500xf32>
    %c0_39 = arith.constant 0 : index
    %c0_40 = arith.constant 0 : index
    %183 = vector.load %arg7[%c0_39, %c0_40] : memref<1x500xf32, #tpu.memory_space<vmem>>, vector<1x500xf32>
    %cst_41 = arith.constant dense<0.000000e+00> : vector<4xf32>
    %184 = vector.multi_reduction <add>, %181, %cst_41 [1] : vector<4x500xf32> to vector<4xf32>
    %185 = vector.shape_cast %184 : vector<4xf32> to vector<4x1xf32>
    %cst_42 = arith.constant 5.000000e+02 : f32
    %186 = vector.broadcast %cst_42 : f32 to vector<4x1xf32>
    %187 = arith.divf %185, %186 : vector<4x1xf32>
    %188 = vector.broadcast %187 : vector<4x1xf32> to vector<4x500xf32>
    %189 = arith.subf %181, %188 : vector<4x500xf32>
    %190 = arith.mulf %189, %189 : vector<4x500xf32>
    %cst_43 = arith.constant dense<0.000000e+00> : vector<4xf32>
    %191 = vector.multi_reduction <add>, %190, %cst_43 [1] : vector<4x500xf32> to vector<4xf32>
    %192 = vector.shape_cast %191 : vector<4xf32> to vector<4x1xf32>
    %cst_44 = arith.constant 5.000000e+02 : f32
    %193 = vector.broadcast %cst_44 : f32 to vector<4x1xf32>
    %194 = arith.divf %192, %193 : vector<4x1xf32>
    %195 = vector.broadcast %187 : vector<4x1xf32> to vector<4x500xf32>
    %196 = arith.subf %181, %195 : vector<4x500xf32>
    %cst_45 = arith.constant 9.99999974E-6 : f32
    %197 = vector.broadcast %cst_45 : f32 to vector<4x1xf32>
    %198 = arith.addf %194, %197 : vector<4x1xf32>
    %199 = math.rsqrt %198 : vector<4x1xf32>
    %200 = vector.broadcast %199 : vector<4x1xf32> to vector<4x500xf32>
    %201 = arith.mulf %196, %200 : vector<4x500xf32>
    %202 = vector.broadcast %182 : vector<1x500xf32> to vector<4x500xf32>
    %203 = arith.mulf %201, %202 : vector<4x500xf32>
    %204 = vector.broadcast %183 : vector<1x500xf32> to vector<4x500xf32>
    %205 = arith.addf %203, %204 : vector<4x500xf32>
    %c0_46 = arith.constant 0 : index
    %c0_47 = arith.constant 0 : index
    %206 = vector.load %arg8[%c0_46, %c0_47] : memref<500x100xf32, #tpu.memory_space<vmem>>, vector<500x100xf32>
    %cst_48 = arith.constant dense<0.000000e+00> : vector<4x100xf32>
    %207 = tpu.matmul %205, %206, %cst_48 {dimension_numbers = #tpu.dot_dimension_numbers<[1], [0], [0], [1], [0, 0, 1, 1], [], []>} : vector<4x500xf32>, vector<500x100xf32>, vector<4x100xf32> -> vector<4x100xf32>
    %c0_49 = arith.constant 0 : index
    %c0_50 = arith.constant 0 : index
    %208 = vector.load %arg9[%c0_49, %c0_50] : memref<1x100xf32, #tpu.memory_space<vmem>>, vector<1x100xf32>
    %209 = vector.broadcast %208 : vector<1x100xf32> to vector<4x100xf32>
    %210 = arith.addf %207, %209 : vector<4x100xf32>
    %cst_51 = arith.constant 0.000000e+00 : f32
    %211 = vector.broadcast %cst_51 : f32 to vector<4x100xf32>
    %212 = arith.cmpf ogt, %210, %211 : vector<4x100xf32>
    %cst_52 = arith.constant 0.00999999977 : f32
    %213 = vector.broadcast %cst_52 : f32 to vector<4x100xf32>
    %214 = arith.mulf %213, %210 : vector<4x100xf32>
    %215 = arith.select %212, %210, %214 : vector<4x100xi1>, vector<4x100xf32>
    %c0_53 = arith.constant 0 : index
    %c0_54 = arith.constant 0 : index
    %216 = vector.load %arg10[%c0_53, %c0_54] : memref<1x100xf32, #tpu.memory_space<vmem>>, vector<1x100xf32>
    %c0_55 = arith.constant 0 : index
    %c0_56 = arith.constant 0 : index
    %217 = vector.load %arg11[%c0_55, %c0_56] : memref<1x100xf32, #tpu.memory_space<vmem>>, vector<1x100xf32>
    %cst_57 = arith.constant dense<0.000000e+00> : vector<4xf32>
    %218 = vector.multi_reduction <add>, %215, %cst_57 [1] : vector<4x100xf32> to vector<4xf32>
    %219 = vector.shape_cast %218 : vector<4xf32> to vector<4x1xf32>
    %cst_58 = arith.constant 1.000000e+02 : f32
    %220 = vector.broadcast %cst_58 : f32 to vector<4x1xf32>
    %221 = arith.divf %219, %220 : vector<4x1xf32>
    %222 = vector.broadcast %221 : vector<4x1xf32> to vector<4x100xf32>
    %223 = arith.subf %215, %222 : vector<4x100xf32>
    %224 = arith.mulf %223, %223 : vector<4x100xf32>
    %cst_59 = arith.constant dense<0.000000e+00> : vector<4xf32>
    %225 = vector.multi_reduction <add>, %224, %cst_59 [1] : vector<4x100xf32> to vector<4xf32>
    %226 = vector.shape_cast %225 : vector<4xf32> to vector<4x1xf32>
    %cst_60 = arith.constant 1.000000e+02 : f32
    %227 = vector.broadcast %cst_60 : f32 to vector<4x1xf32>
    %228 = arith.divf %226, %227 : vector<4x1xf32>
    %229 = vector.broadcast %221 : vector<4x1xf32> to vector<4x100xf32>
    %230 = arith.subf %215, %229 : vector<4x100xf32>
    %cst_61 = arith.constant 9.99999974E-6 : f32
    %231 = vector.broadcast %cst_61 : f32 to vector<4x1xf32>
    %232 = arith.addf %228, %231 : vector<4x1xf32>
    %233 = math.rsqrt %232 : vector<4x1xf32>
    %234 = vector.broadcast %233 : vector<4x1xf32> to vector<4x100xf32>
    %235 = arith.mulf %230, %234 : vector<4x100xf32>
    %236 = vector.broadcast %216 : vector<1x100xf32> to vector<4x100xf32>
    %237 = arith.mulf %235, %236 : vector<4x100xf32>
    %238 = vector.broadcast %217 : vector<1x100xf32> to vector<4x100xf32>
    %239 = arith.addf %237, %238 : vector<4x100xf32>
    %c0_62 = arith.constant 0 : index
    %c0_63 = arith.constant 0 : index
    %240 = vector.load %arg12[%c0_62, %c0_63] : memref<100x64xf32, #tpu.memory_space<vmem>>, vector<100x64xf32>
    %cst_64 = arith.constant dense<0.000000e+00> : vector<4x64xf32>
    %241 = tpu.matmul %239, %240, %cst_64 {dimension_numbers = #tpu.dot_dimension_numbers<[1], [0], [0], [1], [0, 0, 1, 1], [], []>} : vector<4x100xf32>, vector<100x64xf32>, vector<4x64xf32> -> vector<4x64xf32>
    %c0_65 = arith.constant 0 : index
    %c0_66 = arith.constant 0 : index
    %242 = vector.load %arg13[%c0_65, %c0_66] : memref<1x64xf32, #tpu.memory_space<vmem>>, vector<1x64xf32>
    %243 = vector.broadcast %242 : vector<1x64xf32> to vector<4x64xf32>
    %244 = arith.addf %241, %243 : vector<4x64xf32>
    %cst_67 = arith.constant 0.000000e+00 : f32
    %245 = vector.broadcast %cst_67 : f32 to vector<4x64xf32>
    %246 = arith.cmpf ogt, %244, %245 : vector<4x64xf32>
    %cst_68 = arith.constant 0.00999999977 : f32
    %247 = vector.broadcast %cst_68 : f32 to vector<4x64xf32>
    %248 = arith.mulf %247, %244 : vector<4x64xf32>
    %249 = arith.select %246, %244, %248 : vector<4x64xi1>, vector<4x64xf32>
    %c0_69 = arith.constant 0 : index
    %c0_70 = arith.constant 0 : index
    %250 = vector.load %arg14[%c0_69, %c0_70] : memref<1x64xf32, #tpu.memory_space<vmem>>, vector<1x64xf32>
    %c0_71 = arith.constant 0 : index
    %c0_72 = arith.constant 0 : index
    %251 = vector.load %arg15[%c0_71, %c0_72] : memref<1x64xf32, #tpu.memory_space<vmem>>, vector<1x64xf32>
    %cst_73 = arith.constant dense<0.000000e+00> : vector<4xf32>
    %252 = vector.multi_reduction <add>, %249, %cst_73 [1] : vector<4x64xf32> to vector<4xf32>
    %253 = vector.shape_cast %252 : vector<4xf32> to vector<4x1xf32>
    %cst_74 = arith.constant 6.400000e+01 : f32
    %254 = vector.broadcast %cst_74 : f32 to vector<4x1xf32>
    %255 = arith.divf %253, %254 : vector<4x1xf32>
    %256 = vector.broadcast %255 : vector<4x1xf32> to vector<4x64xf32>
    %257 = arith.subf %249, %256 : vector<4x64xf32>
    %258 = arith.mulf %257, %257 : vector<4x64xf32>
    %cst_75 = arith.constant dense<0.000000e+00> : vector<4xf32>
    %259 = vector.multi_reduction <add>, %258, %cst_75 [1] : vector<4x64xf32> to vector<4xf32>
    %260 = vector.shape_cast %259 : vector<4xf32> to vector<4x1xf32>
    %cst_76 = arith.constant 6.400000e+01 : f32
    %261 = vector.broadcast %cst_76 : f32 to vector<4x1xf32>
    %262 = arith.divf %260, %261 : vector<4x1xf32>
    %263 = vector.broadcast %255 : vector<4x1xf32> to vector<4x64xf32>
    %264 = arith.subf %249, %263 : vector<4x64xf32>
    %cst_77 = arith.constant 9.99999974E-6 : f32
    %265 = vector.broadcast %cst_77 : f32 to vector<4x1xf32>
    %266 = arith.addf %262, %265 : vector<4x1xf32>
    %267 = math.rsqrt %266 : vector<4x1xf32>
    %268 = vector.broadcast %267 : vector<4x1xf32> to vector<4x64xf32>
    %269 = arith.mulf %264, %268 : vector<4x64xf32>
    %270 = vector.broadcast %250 : vector<1x64xf32> to vector<4x64xf32>
    %271 = arith.mulf %269, %270 : vector<4x64xf32>
    %272 = vector.broadcast %251 : vector<1x64xf32> to vector<4x64xf32>
    %273 = arith.addf %271, %272 : vector<4x64xf32>
    %274 = vector.extract_strided_slice %273 {offsets = [0, 0], sizes = [2, 64], strides = [1, 1]} : vector<4x64xf32> to vector<2x64xf32>
    %275 = vector.extract_strided_slice %273 {offsets = [2, 0], sizes = [2, 64], strides = [1, 1]} : vector<4x64xf32> to vector<2x64xf32>
    %c0_78 = arith.constant 0 : index
    %c0_79 = arith.constant 0 : index
    %276 = vector.load %arg16[%c0_78, %c0_79] : memref<128x64xf32, #tpu.memory_space<vmem>>, vector<64x64xf32>
    %cst_80 = arith.constant dense<0.000000e+00> : vector<2x64xf32>
    %277 = tpu.matmul %274, %276, %cst_80 {dimension_numbers = #tpu.dot_dimension_numbers<[1], [0], [0], [1], [0, 0, 1, 1], [], []>} : vector<2x64xf32>, vector<64x64xf32>, vector<2x64xf32> -> vector<2x64xf32>
    %c64 = arith.constant 64 : index
    %c0_81 = arith.constant 0 : index
    %278 = vector.load %arg16[%c64, %c0_81] : memref<128x64xf32, #tpu.memory_space<vmem>>, vector<64x64xf32>
    %cst_82 = arith.constant dense<0.000000e+00> : vector<2x64xf32>
    %279 = tpu.matmul %275, %278, %cst_82 {dimension_numbers = #tpu.dot_dimension_numbers<[1], [0], [0], [1], [0, 0, 1, 1], [], []>} : vector<2x64xf32>, vector<64x64xf32>, vector<2x64xf32> -> vector<2x64xf32>
    %280 = arith.addf %277, %279 : vector<2x64xf32>
    %c0_83 = arith.constant 0 : index
    %c0_84 = arith.constant 0 : index
    %281 = vector.load %arg17[%c0_83, %c0_84] : memref<1x64xf32, #tpu.memory_space<vmem>>, vector<1x64xf32>
    %282 = vector.broadcast %281 : vector<1x64xf32> to vector<2x64xf32>
    %283 = arith.addf %280, %282 : vector<2x64xf32>
    %cst_85 = arith.constant 0.000000e+00 : f32
    %284 = vector.broadcast %cst_85 : f32 to vector<2x64xf32>
    %285 = arith.cmpf ogt, %283, %284 : vector<2x64xf32>
    %cst_86 = arith.constant 0.00999999977 : f32
    %286 = vector.broadcast %cst_86 : f32 to vector<2x64xf32>
    %287 = arith.mulf %286, %283 : vector<2x64xf32>
    %288 = arith.select %285, %283, %287 : vector<2x64xi1>, vector<2x64xf32>
    %c0_87 = arith.constant 0 : index
    %c0_88 = arith.constant 0 : index
    %289 = vector.load %arg18[%c0_87, %c0_88] : memref<64x10xf32, #tpu.memory_space<vmem>>, vector<64x10xf32>
    %cst_89 = arith.constant dense<0.000000e+00> : vector<2x10xf32>
    %290 = tpu.matmul %288, %289, %cst_89 {dimension_numbers = #tpu.dot_dimension_numbers<[1], [0], [0], [1], [0, 0, 1, 1], [], []>} : vector<2x64xf32>, vector<64x10xf32>, vector<2x10xf32> -> vector<2x10xf32>
    %c0_90 = arith.constant 0 : index
    %c0_91 = arith.constant 0 : index
    %291 = vector.load %arg19[%c0_90, %c0_91] : memref<1x10xf32, #tpu.memory_space<vmem>>, vector<1x10xf32>
    %292 = vector.broadcast %291 : vector<1x10xf32> to vector<2x10xf32>
    %293 = arith.addf %290, %292 : vector<2x10xf32>
    %cst_92 = arith.constant 0.000000e+00 : f32
    %294 = vector.broadcast %cst_92 : f32 to vector<2x10xf32>
    %295 = arith.cmpf ogt, %293, %294 : vector<2x10xf32>
    %cst_93 = arith.constant 0.00999999977 : f32
    %296 = vector.broadcast %cst_93 : f32 to vector<2x10xf32>
    %297 = arith.mulf %296, %293 : vector<2x10xf32>
    %298 = arith.select %295, %293, %297 : vector<2x10xi1>, vector<2x10xf32>
    %c0_94 = arith.constant 0 : index
    %c0_95 = arith.constant 0 : index
    %299 = vector.load %arg20[%c0_94, %c0_95] : memref<10x1xf32, #tpu.memory_space<vmem>>, vector<10x1xf32>
    %cst_96 = arith.constant dense<0.000000e+00> : vector<2x1xf32>
    %300 = tpu.matmul %298, %299, %cst_96 {dimension_numbers = #tpu.dot_dimension_numbers<[1], [0], [0], [1], [0, 0, 1, 1], [], []>} : vector<2x10xf32>, vector<10x1xf32>, vector<2x1xf32> -> vector<2x1xf32>
    %c0_97 = arith.constant 0 : index
    %c0_98 = arith.constant 0 : index
    %301 = vector.load %arg21[%c0_97, %c0_98] : memref<1x1xf32, #tpu.memory_space<vmem>>, vector<1x1xf32>
    %302 = vector.broadcast %301 : vector<1x1xf32> to vector<2x1xf32>
    %303 = arith.addf %300, %302 : vector<2x1xf32>
    %c0_99 = arith.constant 0 : index
    %c0_100 = arith.constant 0 : index
    %304 = vector.load %arg22[%c0_99, %c0_100] : memref<2x1xf32, #tpu.memory_space<vmem>>, vector<2x1xf32>
    tpu.vector_store %arg22[%c0_99, %c0_100], %303 {strides = array<i32>} : memref<2x1xf32, #tpu.memory_space<vmem>>, vector<2x1xf32>,
    return
  }
}

</mosaic_0001>

<bundles_post_ra>
// kernel: model_forward.1
= control target key start
LH: loop header
LB: loop body
LE: loop exit
PB: predicated region body
PF: predicated region fallthrough
CT: control target
= control target key end

     0   :  { %v6935_v0 = vmov 1   ;;  %v6937_v1 = vmov 0   ;;  %v6941_v10 = vmov 2   ;;  %v6939_v19 = vmov 3   ;;  %s6905_s3 = inlined_call_operand.vmem [shape: f32[128,1], index: 3, kind: input, shape index: {}]   ;;  %s6906_s2 = inlined_call_operand.vmem [shape: f32[128,4], index: 2, kind: input, shape index: {}]   ;;  %s6907_s0 = inlined_call_operand.vmem [shape: f32[2,4,256], index: 0, kind: input, shape index: {}]   ;;  %s6908_s1 = inlined_call_operand.vmem [shape: f32[2,4,256], index: 1, kind: input, shape index: {}]   ;;  %s6909_s4 = inlined_call_operand.vmem [shape: f32[128,500], index: 4, kind: input, shape index: {}]   ;;  %s6910_s5 = inlined_call_operand.vmem [shape: f32[1,500], index: 5, kind: input, shape index: {}]   ;;  %s6911_s8 = inlined_call_operand.vmem [shape: f32[500,100], index: 8, kind: input, shape index: {}]   ;;  %s6912_s6 = inlined_call_operand.vmem [shape: f32[1,500], index: 6, kind: input, shape index: {}]   ;;  %s6913_s7 = inlined_call_operand.vmem [shape: f32[1,500], index: 7, kind: input, shape index: {}]   ;;  %s6914_s9 = inlined_call_operand.vmem [shape: f32[1,100], index: 9, kind: input, shape index: {}]   ;;  %s6915_s12 = inlined_call_operand.vmem [shape: f32[100,64], index: 12, kind: input, shape index: {}]   ;;  %s6916_s10 = inlined_call_operand.vmem [shape: f32[1,100], index: 10, kind: input, shape index: {}]   ;;  %s6917_s11 = inlined_call_operand.vmem [shape: f32[1,100], index: 11, kind: input, shape index: {}]   ;;  %s6918_s13 = inlined_call_operand.vmem [shape: f32[1,64], index: 13, kind: input, shape index: {}]   ;;  %s6919_s16 = inlined_call_operand.vmem [shape: f32[128,64], index: 16, kind: input, shape index: {}]   ;;  %s6920_s14 = inlined_call_operand.vmem [shape: f32[1,64], index: 14, kind: input, shape index: {}]   ;;  %s6921_s15 = inlined_call_operand.vmem [shape: f32[1,64], index: 15, kind: input, shape index: {}]   ;;  %s6922_s18 = inlined_call_operand.vmem [shape: f32[64,10], index: 18, kind: input, shape index: {}]   ;;  %s6923_s17 = inlined_call_operand.vmem [shape: f32[1,64], index: 17, kind: input, shape index: {}]   ;;  %s6924_s20 = inlined_call_operand.vmem [shape: f32[10,1], index: 20, kind: input, shape index: {}]   ;;  %s6925_s21 = inlined_call_operand.<no memory space> [shape: f32[1,1], index: 21, kind: input, shape index: {}]   ;;  %s6926_s19 = inlined_call_operand.vmem [shape: f32[1,10], index: 19, kind: input, shape index: {}]   ;;  %s6927_s22 = inlined_call_operand.vmem [shape: f32[2,1], index: 22, kind: output, shape index: {}]  }
   0x1   :  { %7172 = sst [smem:[#allocation98_spill]] %s6905_s3  ;;  %3608 = vset.pattern.permute.xlu0 %v6935_v0  ;;  %3605 = vset.pattern.permute.xlu1 %v6937_v1  ;;  %v6934_v28 = vlaneseq  ;;  %vm2580_vm6 = vcmask 1043456   ;;  %vm2586_vm9 = vcmask 945152   ;;  %vm2737_vm10 = vcmask 949248  }
   0x2   :  { %7173 = sst [smem:[#allocation99_spill]] %s6906_s2  ;;  %vm2889_vm12 = vcmask 814080   ;;  %vm3670_vm13 = vmmov 0   ;;  %vm2938_vm14 = vcmask 818176  }
   0x3   :  { %7174 = sst [smem:[#allocation100_spill]] %s6907_s0  ;;  %v188_v29 = vshrl.u32 %v6934_v28, 7 }
   0x4   :  { %7175 = sst [smem:[#allocation101_spill]] %s6908_s1 }
   0x5   :  { %7176 = sst [smem:[#allocation102_spill]] %s6909_s4  ;;  %v3929_v30 = vsub.s32 1, %v188_v29  ;;  %v3931_v31 = vsub.s32 5, %v188_v29  ;;  %v3938_v33 = vsub.s32 2, %v188_v29  ;;  %v3940_v34 = vsub.s32 6, %v188_v29 }
   0x6   :  { %7177 = sst [smem:[#allocation103_spill]] %s6910_s5  ;;  %v3948_v36 = vsub.s32 0, %v188_v29  ;;  %v3950_v37 = vsub.s32 4, %v188_v29 }
   0x7   :  { %7178 = sst [smem:[#allocation104_spill]] %s6911_s8  ;;  %7182 = vst [vmem:[#allocation4_spill] sm:$0xff] %v3929_v30  ;;  %7184 = vst [vmem:[#allocation5_spill] sm:$0xff] %v3938_v33 }
   0x8   :  { %s7179_s29 = sld [smem:[#allocation98_spill]]  ;;  %7185 = vst [vmem:[#allocation6_spill] sm:$0xff] %v3948_v36 }
   0x9   :  { %s7180_s3 = sld [smem:[#allocation99_spill]] }
   0xa   :  { %s7183_s0 = sld [smem:[#allocation100_spill]] }
   0xb   :  { %s7188_s4 = sld [smem:[#allocation101_spill]] }
   0xc   :  { %s7605_s1 = sld [smem:[#allocation102_spill]] }
   0xd   :  { %s7607_s30 = sld [smem:[#allocation103_spill]] }
   0xe   :  { %v89_v2 = vld [vmem:[%s7179_s29] sm:$0xff]  ;;  %v90_v7 = vld [vmem:[%s7179_s29 + $0x8] sm:$0xff]  ;;  %v91_v12 = vld [vmem:[%s7179_s29 + $0x10] sm:$0xff]  ;;  %s7612_s2 = sld [smem:[#allocation104_spill]] }
   0xf   :  { %v74_v3 = vld [vmem:[%s7180_s3 + $0x8] sm:$0xff]  ;;  %239 = vperm.xlu1 %3605, %v89_v2   ;;  %v3797_v4 = vld [vmem:[%s7180_s3 + $0x18] sm:$0xff]  ;;  %v3802_v5 = vld [vmem:[%s7180_s3] sm:$0xff] }
  0x10   :  { %354 = vperm.xlu0 %3608, %v74_v3   ;;  %v3810_v6 = vld [vmem:[%s7180_s3 + $0x30] sm:$0xff]  ;;  %v3820_v8 = vld [vmem:[%s7180_s3 + $0x48] sm:$0xff]  ;;  %v3826_v9 = vld [vmem:[%s7180_s3 + $0x60] sm:$0xff] }
  0x11   :  { %v75_v11 = vld [vmem:[%s7180_s3 + $0x10] sm:$0xff]  ;;  %v77_v13 = vld [vmem:[%s7180_s3 + $0x20] sm:$0xff]  ;;  %v3850_v14 = vld [vmem:[%s7180_s3 + $0x28] sm:$0xff] }
  0x12   :  { %v92_v15 = vld [vmem:[%s7179_s29 + $0x18] sm:$0xff]  ;;  %v94_v16 = vld [vmem:[%s7179_s29 + $0x28] sm:$0xff]  ;;  %v3862_v17 = vld [vmem:[%s7180_s3 + $0x40] sm:$0xff] }
  0x13   :  { %3606 = vset.pattern.permute.xlu1 %v6935_v0  ;;  %v97_v18 = vld [vmem:[%s7179_s29 + $0x40] sm:$0xff]  ;;  %v3873_v20 = vld [vmem:[%s7180_s3 + $0x58] sm:$0xff]  ;;  %v87_v23 = vld [vmem:[%s7180_s3 + $0x70] sm:$0xff] }
  0x14   :  { %362 = vperm.xlu0 %3608, %v3797_v4   ;;  %350 = vperm.xlu1 %3606, %v3802_v5   ;;  %7181 = vst [vmem:[#allocation3_spill] sm:$0xff] %v3873_v20  ;;  %v93_v21 = vld [vmem:[%s7179_s29 + $0x20] sm:$0xff]  ;;  %v100_v22 = vld [vmem:[%s7179_s29 + $0x58] sm:$0xff]  ;;  %v103_v24 = vld [vmem:[%s7179_s29 + $0x70] sm:$0xff] }
  0x15   :  { %v3903_v25 = vld [vmem:[%s7180_s3 + $0x38] sm:$0xff]  ;;  %v95_v26 = vld [vmem:[%s7179_s29 + $0x30] sm:$0xff]  ;;  %v3936_v32 = vld [vmem:[%s7183_s0 + $0x8] sm:$0xff] }
  0x16   :  { %v96_v27 = vld [vmem:[%s7179_s29 + $0x38] sm:$0xff]  ;;  %v3945_v35 = vld [vmem:[%s7183_s0] sm:$0xff]  ;;  %v972_v38 = vrot.slane %v3936_v32, %v3929_v30  ;;  %v976_v39 = vrot.slane %v3936_v32, %v3931_v31  ;;  %v1054_v40 = vrot.slane %v3936_v32, %v3938_v33  ;;  %v1058_v41 = vrot.slane %v3936_v32, %v3940_v34 }
  0x17   :  { %v416_v42 = vrot.slane %v3945_v35, %v3929_v30  ;;  %v420_v43 = vrot.slane %v3945_v35, %v3931_v31  ;;  %v562_v44 = vrot.slane %v3945_v35, %v3938_v33  ;;  %v566_v45 = vrot.slane %v3945_v35, %v3940_v34  ;;  %v3982_v50 = vld [vmem:[%s7188_s4] sm:$0xff] }
  0x18   :  { %374 = vperm.xlu0 %3608, %v3810_v6   ;;  %3607 = vset.pattern.permute.xlu1 %v6937_v1  ;;  %v890_v46 = vrot.slane %v3936_v32, %v3948_v36  ;;  %v894_v47 = vrot.slane %v3936_v32, %v3950_v37  ;;  %v3974_v48 = vrot.slane %v972_v38, %v3929_v30 }
  0x19   :  { %244 = vperm.xlu1 %3607, %v90_v7   ;;  %v3977_v49 = vrot.slane %v976_v39, %v3929_v30  ;;  %v190_v51 = vrot.slane %v3945_v35, %v3948_v36  ;;  %v194_v52 = vrot.slane %v3945_v35, %v3950_v37  ;;  %v1316_v53 = vrot.slane %v3982_v50, %v3948_v36  ;;  %v3408_v7 = vld [vmem:[%s7188_s4 + $0x8] sm:$0xff] }
  0x1a   :  { %7186 = vst [vmem:[#allocation7_spill] sm:$0xff] %v3974_v48  ;;  %v1320_v54 = vrot.slane %v3982_v50, %v3950_v37  ;;  %v3999_v57 = vrot.slane %v1054_v40, %v3938_v33  ;;  %v4002_v58 = vrot.slane %v1058_v41, %v3938_v33  ;;  %v4005_v59 = vrot.slane %v416_v42, %v3929_v30  ;;  %v4069_v40 = vld [vmem:[%s7180_s3 + $0x50] sm:$0xff] }
  0x1b   :  { %7187 = vst [vmem:[#allocation8_spill] sm:$0xff] %v3977_v49  ;;  %v4008_v60 = vrot.slane %v420_v43, %v3929_v30  ;;  %v4011_v61 = vrot.slane %v562_v44, %v3938_v33  ;;  %v4014_v62 = vrot.slane %v566_v45, %v3938_v33  ;;  %v1398_v63 = vrot.slane %v3982_v50, %v3929_v30 }
  0x1c   :  { %386 = vperm.xlu0 %3608, %v3820_v8   ;;  %7189 = vst [vmem:[#allocation9_spill] sm:$0xff] %v3999_v57  ;;  %7190 = vst [vmem:[#allocation10_spill] sm:$0xff] %v4002_v58  ;;  %v1402_v2 = vrot.slane %v3982_v50, %v3931_v31  ;;  %v1911_v39 = vrot.slane %v3408_v7, %v3940_v34 }
  0x1d   :  { %3609 = vset.pattern.permute.xlu1 %v6941_v10  ;;  %7191 = vst [vmem:[#allocation11_spill] sm:$0xff] %v4005_v59  ;;  %7192 = vst [vmem:[#allocation12_spill] sm:$0xff] %v4008_v60 }
  0x1e   :  { %496 = vperm.xlu1 %3609, %v3802_v5   ;;  %7193 = vst [vmem:[#allocation13_spill] sm:$0xff] %v4011_v61  ;;  %7194 = vst [vmem:[#allocation14_spill] sm:$0xff] %v4014_v62 }
  0x20   :  { %398 = vperm.xlu0 %3608, %v3826_v9  }
  0x22   :  { %3610 = vset.pattern.permute.xlu1 %v6937_v1 }
  0x23   :  { %123 = vperm.xlu1 %3610, %v3797_v4  }
  0x24   :  { %3641 = vset.pattern.permute.xlu0 %v6937_v1 }
  0x25   :  { %108 = vperm.xlu0 %3641, %v3802_v5  }
  0x27   :  { %3611 = vset.pattern.permute.xlu1 %v6935_v0 }
  0x28   :  { %358 = vperm.xlu1 %3611, %v75_v11  }
  0x29   :  { %113 = vperm.xlu0 %3641, %v74_v3  }
  0x2c   :  { %3612 = vset.pattern.permute.xlu1 %v6941_v10 }
  0x2d   :  { %118 = vperm.xlu0 %3641, %v75_v11   ;;  %500 = vperm.xlu1 %3612, %v74_v3  }
  0x31   :  { %249 = vperm.xlu0 %3641, %v91_v12   ;;  %3613 = vset.pattern.permute.xlu1 %v6937_v1  ;;  %v4038_v12 = vrot.slane %v1316_v53, %v3948_v36 }
  0x32   :  { %128 = vperm.xlu1 %3613, %v77_v13  }
  0x33   :  { %7200 = vst [vmem:[#allocation20_spill] sm:$0xff] %v4038_v12 }
  0x35   :  { %133 = vperm.xlu0 %3641, %v3850_v14  }
  0x36   :  { %254 = vperm.xlu1 %3613, %v92_v15   ;;  %v1480_v15 = vrot.slane %v3982_v50, %v3938_v33 }
  0x38   :  { %v4080_v44 = vrot.slane %v1480_v15, %v3938_v33 }
  0x39   :  { %264 = vperm.xlu0 %3641, %v94_v16   ;;  %v1484_v16 = vrot.slane %v3982_v50, %v3940_v34 }
  0x3a   :  { %3614 = vset.pattern.permute.xlu1 %v6941_v10  ;;  %7205 = vst [vmem:[#allocation25_spill] sm:$0xff] %v4080_v44 }
  0x3b   :  { %504 = vperm.xlu1 %3614, %v75_v11   ;;  %v4083_v34 = vrot.slane %v1484_v16, %v3938_v33 }
  0x3d   :  { %148 = vperm.xlu0 %3641, %v3862_v17   ;;  %7206 = vst [vmem:[#allocation26_spill] sm:$0xff] %v4083_v34 }
  0x3f   :  { %3615 = vset.pattern.permute.xlu1 %v6939_v19 }
  0x40   :  { %646 = vperm.xlu1 %3615, %v74_v3   ;;  %v4020_v3 = vsub.s32 3, %v188_v29 }
  0x41   :  { %279 = vperm.xlu0 %3641, %v97_v18   ;;  %v1743_v18 = vrot.slane %v3408_v7, %v3948_v36 }
  0x42   :  { %7195 = vst [vmem:[#allocation15_spill] sm:$0xff] %v4020_v3  ;;  %v708_v41 = vrot.slane %v3945_v35, %v4020_v3  ;;  %v1989_v45 = vrot.slane %v3408_v7, %v4020_v3 }
  0x44   :  { %3616 = vset.pattern.permute.xlu1 %v6937_v1 }
  0x45   :  { %163 = vperm.xlu0 %3641, %v3873_v20   ;;  %259 = vperm.xlu1 %3616, %v93_v21   ;;  %v1747_v21 = vrot.slane %v3408_v7, %v3950_v37  ;;  %v1907_v37 = vrot.slane %v3408_v7, %v3938_v33 }
  0x49   :  { %294 = vperm.xlu0 %3641, %v100_v22   ;;  %3617 = vset.pattern.permute.xlu1 %v6935_v0 }
  0x4a   :  { %366 = vperm.xlu1 %3617, %v77_v13  }
  0x4d   :  { %178 = vperm.xlu0 %3641, %v87_v23  }
  0x4e   :  { %3618 = vset.pattern.permute.xlu1 %v6939_v19 }
  0x4f   :  { %650 = vperm.xlu1 %3618, %v75_v11   ;;  %v4035_v11 = vrot.slane %v194_v52, %v3948_v36 }
  0x51   :  { %309 = vperm.xlu0 %3641, %v103_v24   ;;  %7199 = vst [vmem:[#allocation19_spill] sm:$0xff] %v4035_v11  ;;  %v4057_v24 = vrot.slane %v1402_v2, %v3929_v30  ;;  %v4112_v2 = vrot.slane %v1911_v39, %v3938_v33 }
  0x53   :  { %3619 = vset.pattern.permute.xlu1 %v6937_v1  ;;  %7203 = vst [vmem:[#allocation23_spill] sm:$0xff] %v4057_v24  ;;  %7214 = vst [vmem:[#allocation34_spill] sm:$0xff] %v4112_v2 }
  0x54   :  { %138 = vperm.xlu1 %3619, %v3810_v6  }
  0x55   :  { %3648 = vset.pattern.permute.xlu0 %v6941_v10 }
  0x56   :  { %508 = vperm.xlu0 %3648, %v3797_v4  }
  0x58   :  { %3620 = vset.pattern.permute.xlu1 %v6935_v0 }
  0x59   :  { %370 = vperm.xlu1 %3620, %v3850_v14  }
  0x5a   :  { %520 = vperm.xlu0 %3648, %v3810_v6  }
  0x5d   :  { %3621 = vset.pattern.permute.xlu1 %v6941_v10 }
  0x5e   :  { %532 = vperm.xlu0 %3648, %v3820_v8   ;;  %512 = vperm.xlu1 %3621, %v77_v13  }
  0x62   :  { %544 = vperm.xlu0 %3648, %v3826_v9   ;;  %3622 = vset.pattern.permute.xlu1 %v6937_v1 }
  0x63   :  { %143 = vperm.xlu1 %3622, %v3903_v25  }
  0x66   :  { %552 = vperm.xlu0 %3648, %v87_v23  }
  0x67   :  { %269 = vperm.xlu1 %3622, %v95_v26   ;;  %v1825_v26 = vrot.slane %v3408_v7, %v3929_v30 }
  0x6a   :  { %3653 = vset.pattern.permute.xlu0 %v6939_v19 }
  0x6b   :  { %642 = vperm.xlu0 %3653, %v3802_v5   ;;  %3623 = vset.pattern.permute.xlu1 %v6941_v10  ;;  %v4023_v5 = vrot.slane %v890_v46, %v3948_v36 }
  0x6c   :  { %516 = vperm.xlu1 %3623, %v3850_v14  }
  0x6d   :  { %7196 = vst [vmem:[#allocation16_spill] sm:$0xff] %v4023_v5 }
  0x6f   :  { %654 = vperm.xlu0 %3653, %v3797_v4   ;;  %v711_v4 = vsub.s32 7, %v188_v29  ;;  %v1136_v29 = vrot.slane %v3936_v32, %v4020_v3 }
  0x70   :  { %3624 = vset.pattern.permute.xlu1 %v6939_v19 }
  0x71   :  { %658 = vperm.xlu1 %3624, %v77_v13   ;;  %v4041_v13 = vrot.slane %v1320_v54, %v3948_v36  ;;  %v1140_v38 = vrot.slane %v3936_v32, %v711_v4  ;;  %v712_v42 = vrot.slane %v3945_v35, %v711_v4  ;;  %v1566_v43 = vrot.slane %v3982_v50, %v711_v4 }
  0x72   :  { %v1993_v46 = vrot.slane %v3408_v7, %v711_v4  ;;  %v4088_v35 = vrot.slane %v1743_v18, %v3948_v36  ;;  %v4103_v53 = vrot.slane %v1136_v29, %v4020_v3  ;;  %v98_v4 = vld [vmem:[%s7179_s29 + $0x48] sm:$0xff]  ;;  %v4140_v29 = vrot.slane %v1989_v45, %v4020_v3 }
  0x73   :  { %666 = vperm.xlu0 %3653, %v3810_v6   ;;  %v4026_v6 = vrot.slane %v894_v47, %v3948_v36  ;;  %7201 = vst [vmem:[#allocation21_spill] sm:$0xff] %v4041_v13  ;;  %v4091_v47 = vrot.slane %v1747_v21, %v3948_v36  ;;  %v4106_v54 = vrot.slane %v1140_v38, %v4020_v3 }
  0x74   :  { %7207 = vst [vmem:[#allocation27_spill] sm:$0xff] %v4088_v35  ;;  %7211 = vst [vmem:[#allocation31_spill] sm:$0xff] %v4103_v53  ;;  %v4121_v15 = vrot.slane %v712_v42, %v4020_v3  ;;  %v4127_v18 = vrot.slane %v1566_v43, %v4020_v3  ;;  %v4143_v38 = vrot.slane %v1993_v46, %v4020_v3 }
  0x75   :  { %3625 = vset.pattern.permute.xlu1 %v6937_v1  ;;  %7197 = vst [vmem:[#allocation17_spill] sm:$0xff] %v4026_v6  ;;  %7208 = vst [vmem:[#allocation28_spill] sm:$0xff] %v4091_v47 }
  0x76   :  { %274 = vperm.xlu1 %3625, %v96_v27   ;;  %v1829_v27 = vrot.slane %v3408_v7, %v3931_v31  ;;  %v1562_v31 = vrot.slane %v3982_v50, %v4020_v3  ;;  %v4094_v50 = vrot.slane %v1825_v26, %v3929_v30  ;;  %7212 = vst [vmem:[#allocation32_spill] sm:$0xff] %v4106_v54  ;;  %7216 = vst [vmem:[#allocation36_spill] sm:$0xff] %v4121_v15 }
  0x77   :  { %678 = vperm.xlu0 %3653, %v3820_v8   ;;  %v4118_v7 = vrot.slane %v708_v41, %v4020_v3  ;;  %7218 = vst [vmem:[#allocation38_spill] sm:$0xff] %v4127_v18  ;;  %7220 = vst [vmem:[#allocation40_spill] sm:$0xff] %v4140_v29  ;;  %v7230_v18 = vmov 2  }
  0x78   :  { %7209 = vst [vmem:[#allocation29_spill] sm:$0xff] %v4094_v50  ;;  %v4124_v16 = vrot.slane %v1562_v31, %v4020_v3  ;;  %7221 = vst [vmem:[#allocation41_spill] sm:$0xff] %v4143_v38 }
  0x79   :  { %7215 = vst [vmem:[#allocation35_spill] sm:$0xff] %v4118_v7 }
  0x7a   :  { %3626 = vset.pattern.permute.xlu1 %v6935_v0  ;;  %7217 = vst [vmem:[#allocation37_spill] sm:$0xff] %v4124_v16 }
  0x7b   :  { %690 = vperm.xlu0 %3653, %v3826_v9   ;;  %378 = vperm.xlu1 %3626, %v3903_v25  }
  0x7f   :  { %698 = vperm.xlu0 %3653, %v87_v23   ;;  %3627 = vset.pattern.permute.xlu1 %v6939_v19  ;;  %v4054_v23 = vrot.slane %v1398_v63, %v3929_v30  ;;  %v4109_v63 = vrot.slane %v1907_v37, %v3938_v33 }
  0x80   :  { %662 = vperm.xlu1 %3627, %v3850_v14  }
  0x81   :  { %7202 = vst [vmem:[#allocation22_spill] sm:$0xff] %v4054_v23  ;;  %7213 = vst [vmem:[#allocation33_spill] sm:$0xff] %v4109_v63 }
  0x84   :  { %3628 = vset.pattern.permute.xlu1 %v6937_v1 }
  0x85   :  { %153 = vperm.xlu1 %3628, %v3820_v8   ;;  %v4032_v8 = vrot.slane %v190_v51, %v3948_v36  ;;  %v4097_v51 = vrot.slane %v1829_v27, %v3929_v30 }
  0x87   :  { %7198 = vst [vmem:[#allocation18_spill] sm:$0xff] %v4032_v8  ;;  %7210 = vst [vmem:[#allocation30_spill] sm:$0xff] %v4097_v51 }
  0x89   :  { %3629 = vset.pattern.permute.xlu1 %v6935_v0 }
  0x8a   :  { %v3993_v55 = vpop.permute.xlu1 %239  ;;  %382 = vperm.xlu1 %3629, %v3862_v17  }
  0x8b   :  { %v3996_v56 = vpop.permute.xlu0 %354 }
  0x8c   :  { %v4133_v26 = vmul.f32 %v4005_v59, %v3996_v56  ;;  %v4137_v27 = vmul.f32 %v4008_v60, %v3996_v56  ;;  %v4147_v37 = vmul.f32 %v4094_v50, %v3996_v56  ;;  %v4151_v39 = vmul.f32 %v4097_v51, %v3996_v56 }
  0x8d   :  { %v4155_v41 = vmul.f32 %v3974_v48, %v3996_v56  ;;  %v4159_v42 = vmul.f32 %v3977_v49, %v3996_v56  ;;  %v4171_v45 = vmul.f32 %v4054_v23, %v3996_v56  ;;  %v4175_v46 = vmul.f32 %v4057_v24, %v3996_v56 }
  0x8e   :  { %3630 = vset.pattern.permute.xlu1 %v6941_v10 }
  0x8f   :  { %v4044_v14 = vpop.permute.xlu0 %362  ;;  %524 = vperm.xlu1 %3630, %v3903_v25   ;;  %v351_v22 = vpop.permute.xlu1 %350  ;;  %7222 = vst [vmem:[#allocation42_spill] sm:$0xff] %v4155_v41  ;;  %7223 = vst [vmem:[#allocation43_spill] sm:$0xff] %v4159_v42 }
  0x90   :  { %v4163_v31 = vmul.f32 %v3974_v48, %v4044_v14  ;;  %v4167_v43 = vmul.f32 %v3977_v49, %v4044_v14  ;;  %7224 = vst [vmem:[#allocation44_spill] sm:$0xff] %v4171_v45  ;;  %7225 = vst [vmem:[#allocation45_spill] sm:$0xff] %v4175_v46  ;;  %v987_v0 = vmul.f32 %v3974_v48, %v351_v22 }
  0x91   :  { %v4185_v19 = vmul.f32 %v4097_v51, %v4044_v14  ;;  %v1413_v3 = vmul.f32 %v4054_v23, %v351_v22  ;;  %v1414_v56 = vmul.f32 %v4057_v24, %v351_v22  ;;  %v4192_v30 = vmul.f32 %v4094_v50, %v351_v22 }
  0x92   :  { %v4195_v33 = vmul.f32 %v4097_v51, %v351_v22  ;;  %v4198_v36 = vmul.f32 %v4005_v59, %v351_v22  ;;  %v4201_v46 = vmul.f32 %v4008_v60, %v351_v22  ;;  %v4205_v45 = vmul.f32 %v4005_v59, %v4044_v14 }
  0x93   :  { %v4077_v32 = vpop.permute.xlu0 %374  ;;  %3631 = vset.pattern.permute.xlu1 %v6937_v1  ;;  %v4181_v1 = vmul.f32 %v4094_v50, %v4044_v14  ;;  %7226 = vst [vmem:[#allocation46_spill] sm:$0xff] %v4185_v19  ;;  %v7243_v19 = vmov 0  }
  0x94   :  { %7204 = vst [vmem:[#allocation24_spill] sm:$0xff] %v4077_v32  ;;  %158 = vperm.xlu1 %3631, %v4069_v40   ;;  %v4100_v52 = vpop.permute.xlu1 %244  ;;  %7228 = vst [vmem:[#allocation48_spill] sm:$0xff] %v4205_v45  ;;  %v4214_v16 = vmul.f32 %v3974_v48, %v4077_v32  ;;  %v4218_v54 = vmul.f32 %v3977_v49, %v4077_v32  ;;  %v4226_v45 = vmul.f32 %v4057_v24, %v4044_v14 }
  0x96   :  { %7231 = vst [vmem:[#allocation50_spill] sm:$0xff] %v4214_v16  ;;  %7232 = vst [vmem:[#allocation51_spill] sm:$0xff] %v4218_v54  ;;  %v4235_v16 = vmul.f32 %v4097_v51, %v4077_v32 }
  0x97   :  { %v4129_v21 = vpop.permute.xlu0 %386  ;;  %7234 = vst [vmem:[#allocation53_spill] sm:$0xff] %v4226_v45 }
  0x98   :  { %7219 = vst [vmem:[#allocation39_spill] sm:$0xff] %v4129_v21  ;;  %284 = vperm.xlu1 %3631, %v98_v4   ;;  %v988_v4 = vmul.f32 %v3977_v49, %v351_v22  ;;  %v4222_v22 = vmul.f32 %v4054_v23, %v4044_v14  ;;  %7236 = vst [vmem:[#allocation55_spill] sm:$0xff] %v4235_v16  ;;  %v4239_v54 = vmul.f32 %v3974_v48, %v4129_v21 }
  0x99   :  { %v497_v28 = vpop.permute.xlu1 %496 }
  0x9a   :  { %7233 = vst [vmem:[#allocation52_spill] sm:$0xff] %v4222_v22  ;;  %7237 = vst [vmem:[#allocation56_spill] sm:$0xff] %v4239_v54  ;;  %v4243_v22 = vmul.f32 %v3977_v49, %v4129_v21  ;;  %v1069_v45 = vmul.f32 %v3999_v57, %v497_v28  ;;  %v1070_v24 = vmul.f32 %v4002_v58, %v497_v28 }
  0x9b   :  { %v4187_v10 = vpop.permute.xlu0 %398  ;;  %v1496_v23 = vmul.f32 %v4083_v34, %v497_v28  ;;  %v1922_v16 = vmul.f32 %v4109_v63, %v497_v28  ;;  %v4254_v54 = vmul.f32 %v4011_v61, %v497_v28  ;;  %v4257_v21 = vmul.f32 %v4014_v62, %v497_v28 }
  0x9c   :  { %7227 = vst [vmem:[#allocation47_spill] sm:$0xff] %v4187_v10  ;;  %v4209_v10 = vmul.f32 %v4008_v60, %v4044_v14  ;;  %3632 = vset.pattern.permute.xlu1 %v7230_v18  ;;  %7238 = vst [vmem:[#allocation57_spill] sm:$0xff] %v4243_v22  ;;  %v1923_v60 = vmul.f32 %v4112_v2, %v497_v28  ;;  %v7242_v34 = vmov 3  }
  0x9d   :  { %528 = vperm.xlu1 %3632, %v3862_v17   ;;  %7240 = vst [vmem:[#allocation59_spill] sm:$0xff] %v4254_v54  ;;  %7241 = vst [vmem:[#allocation60_spill] sm:$0xff] %v4257_v21 }
  0x9e   :  { %7229 = vst [vmem:[#allocation49_spill] sm:$0xff] %v4209_v10  ;;  %v4231_v10 = vmul.f32 %v4094_v50, %v4077_v32  ;;  %v4245_v14 = vpop.permute.xlu1 %123 }
  0x9f   :  { %7239 = vst [vmem:[#allocation58_spill] sm:$0xff] %v4245_v14  ;;  %v4296_v58 = vmul.f32 %v4088_v35, %v4245_v14  ;;  %v4300_v57 = vmul.f32 %v4091_v47, %v4245_v14 }
  0xa0   :  { %7235 = vst [vmem:[#allocation54_spill] sm:$0xff] %v4231_v10  ;;  %v1495_v10 = vmul.f32 %v4080_v44, %v497_v28  ;;  %v109_v32 = vpop.permute.xlu0 %108 }
  0xa1   :  { %v905_v22 = vmul.f32 %v4023_v5, %v109_v32  ;;  %v906_v59 = vmul.f32 %v4026_v6, %v109_v32  ;;  %v1331_v18 = vmul.f32 %v4038_v12, %v109_v32  ;;  %v1332_v44 = vmul.f32 %v4041_v13, %v109_v32  ;;  %3633 = vset.pattern.permute.xlu1 %v7242_v34 }
  0xa2   :  { %v1758_v53 = vmul.f32 %v4088_v35, %v109_v32  ;;  %v1759_v38 = vmul.f32 %v4091_v47, %v109_v32  ;;  %v205_v29 = vmul.f32 %v4032_v8, %v109_v32  ;;  %v206_v15 = vmul.f32 %v4035_v11, %v109_v32  ;;  %670 = vperm.xlu1 %3633, %v3903_v25  }
  0xa3   :  { %v937_v28 = vadd.f32 %v905_v22, %v3993_v55  ;;  %v938_v7 = vadd.f32 %v906_v59, %v3993_v55  ;;  %v1363_v12 = vadd.f32 %v1331_v18, %v3993_v55  ;;  %v1364_v13 = vadd.f32 %v1332_v44, %v3993_v55  ;;  %v4275_v21 = vpop.permute.xlu1 %358  ;;  %v99_v59 = vld [vmem:[%s7179_s29 + $0x50] sm:$0xff] }
  0xa4   :  { %v4273_v20 = vpop.permute.xlu0 %113  ;;  %v1790_v54 = vadd.f32 %v1758_v53, %v3993_v55  ;;  %v1791_v42 = vadd.f32 %v1759_v38, %v3993_v55  ;;  %v4281_v32 = vmul.f32 %v4023_v5, %v4245_v14  ;;  %v4285_v25 = vmul.f32 %v4026_v6, %v4245_v14 }
  0xa5   :  { %v1019_v44 = vadd.f32 %v987_v0, %v937_v28  ;;  %v1020_v18 = vadd.f32 %v988_v4, %v938_v7  ;;  %v207_v22 = vmul.f32 %v4032_v8, %v4273_v20  ;;  %v208_v53 = vmul.f32 %v4035_v11, %v4273_v20 }
  0xa6   :  { %v1445_v38 = vadd.f32 %v1413_v3, %v1363_v12  ;;  %v1446_v41 = vadd.f32 %v1414_v56, %v1364_v13  ;;  %3634 = vset.pattern.permute.xlu1 %v7243_v19  ;;  %v4306_v4 = vadd.f32 %v3993_v55, %v205_v29  ;;  %v4309_v3 = vadd.f32 %v3993_v55, %v206_v15 }
  0xa7   :  { %v319_v0 = vadd.f32 %v4100_v52, %v207_v22  ;;  %v320_v7 = vadd.f32 %v4100_v52, %v208_v53  ;;  %289 = vperm.xlu1 %3634, %v99_v59   ;;  %v991_v13 = vmul.f32 %v3974_v48, %v4275_v21  ;;  %v992_v56 = vmul.f32 %v3977_v49, %v4275_v21 }
  0xa8   :  { %v4311_v12 = vpop.permute.xlu0 %118  ;;  %v1872_v28 = vadd.f32 %v4192_v30, %v1790_v54  ;;  %v1873_v22 = vadd.f32 %v4195_v33, %v1791_v42  ;;  %v4319_v53 = vpop.permute.xlu1 %500  ;;  %v4321_v29 = vadd.f32 %v1069_v45, %v1019_v44  ;;  %v4323_v14 = vadd.f32 %v1070_v24, %v1020_v18 }
  0xa9   :  { %v909_v55 = vmul.f32 %v4023_v5, %v4311_v12  ;;  %v910_v15 = vmul.f32 %v4026_v6, %v4311_v12  ;;  %v465_v59 = vadd.f32 %v4133_v26, %v319_v0  ;;  %v466_v49 = vadd.f32 %v4137_v27, %v320_v7 }
  0xaa   :  { %7244 = vst [vmem:[#allocation61_spill] sm:$0xff] %v4321_v29  ;;  %7245 = vst [vmem:[#allocation62_spill] sm:$0xff] %v4323_v14  ;;  %v4331_v48 = vadd.f32 %v1495_v10, %v1445_v38  ;;  %v4333_v30 = vadd.f32 %v1496_v23, %v1446_v41  ;;  %v579_v33 = vmul.f32 %v4011_v61, %v4319_v53  ;;  %v7248_v26 = vmov 1  }
  0xab   :  { %v580_v24 = vmul.f32 %v4014_v62, %v4319_v53  ;;  %v1760_v54 = vmul.f32 %v4088_v35, %v4273_v20  ;;  %v1761_v42 = vmul.f32 %v4091_v47, %v4273_v20  ;;  %3635 = vset.pattern.permute.xlu1 %v7248_v26  ;;  %v4346_v10 = vadd.f32 %v1922_v16, %v1872_v28 }
  0xac   :  { %7246 = vst [vmem:[#allocation63_spill] sm:$0xff] %v4331_v48  ;;  %7247 = vst [vmem:[#allocation64_spill] sm:$0xff] %v4333_v30  ;;  %v4343_v45 = vpop.permute.xlu0 %249  ;;  %v4348_v23 = vadd.f32 %v1923_v60, %v1873_v22  ;;  %v1762_v27 = vmul.f32 %v4088_v35, %v4311_v12  ;;  %v1763_v41 = vmul.f32 %v4091_v47, %v4311_v12  ;;  %390 = vperm.xlu1 %3635, %v4069_v40  }
  0xad   :  { %7249 = vst [vmem:[#allocation65_spill] sm:$0xff] %v4346_v10  ;;  %v941_v44 = vadd.f32 %v909_v55, %v4343_v45  ;;  %v942_v18 = vadd.f32 %v910_v15, %v4343_v45  ;;  %v1792_v38 = vadd.f32 %v1760_v54, %v4100_v52  ;;  %v1793_v0 = vadd.f32 %v1761_v42, %v4100_v52  ;;  %v4359_v16 = vpop.permute.xlu1 %128 }
  0xae   :  { %7250 = vst [vmem:[#allocation66_spill] sm:$0xff] %v4348_v23  ;;  %7251 = vst [vmem:[#allocation67_spill] sm:$0xff] %v4359_v16  ;;  %v1924_v60 = vmul.f32 %v4109_v63, %v4319_v53  ;;  %v1925_v7 = vmul.f32 %v4112_v2, %v4319_v53  ;;  %v1794_v28 = vadd.f32 %v1762_v27, %v4343_v45 }
  0xaf   :  { %v1795_v22 = vadd.f32 %v1763_v41, %v4343_v45  ;;  %v1874_v55 = vadd.f32 %v4147_v37, %v1792_v38  ;;  %v1875_v15 = vadd.f32 %v4151_v39, %v1793_v0  ;;  %v1844_v54 = vmul.f32 %v4094_v50, %v4275_v21 }
  0xb0   :  { %v1845_v42 = vmul.f32 %v4097_v51, %v4275_v21  ;;  %v4373_v23 = vpop.permute.xlu0 %133  ;;  %v4375_v10 = vadd.f32 %v579_v33, %v465_v59  ;;  %v4377_v30 = vadd.f32 %v580_v24, %v466_v49  ;;  %v1023_v48 = vadd.f32 %v991_v13, %v941_v44  ;;  %3636 = vset.pattern.permute.xlu1 %v7242_v34 }
  0xb1   :  { %7252 = vst [vmem:[#allocation68_spill] sm:$0xff] %v4373_v23  ;;  %v1024_v27 = vadd.f32 %v992_v56, %v942_v18  ;;  %v4382_v37 = vmul.f32 %v4023_v5, %v4359_v16  ;;  %v4386_v39 = vmul.f32 %v4026_v6, %v4359_v16  ;;  %v1876_v41 = vadd.f32 %v1844_v54, %v1794_v28  ;;  %v4389_v59 = vpop.permute.xlu1 %254 }
  0xb2   :  { %v1877_v38 = vadd.f32 %v1845_v42, %v1795_v22  ;;  %674 = vperm.xlu1 %3636, %v3862_v17   ;;  %7253 = vst [vmem:[#allocation69_spill] sm:$0xff] %v4389_v59  ;;  %v4391_v49 = vadd.f32 %v1924_v60, %v1874_v55  ;;  %v4393_v13 = vadd.f32 %v1925_v7, %v1875_v15 }
  0xb3   :  { %v915_v56 = vmul.f32 %v4023_v5, %v4373_v23  ;;  %v916_v33 = vmul.f32 %v4026_v6, %v4373_v23  ;;  %v943_v24 = vadd.f32 %v4281_v32, %v4389_v59  ;;  %v944_v44 = vadd.f32 %v4285_v25, %v4389_v59 }
  0xb4   :  { %v1796_v17 = vadd.f32 %v4296_v58, %v4389_v59  ;;  %v1797_v18 = vadd.f32 %v4300_v57, %v4389_v59  ;;  %v4407_v0 = vpop.permute.xlu0 %264  ;;  %v4411_v60 = vmul.f32 %v4088_v35, %v4359_v16  ;;  %v4415_v7 = vmul.f32 %v4091_v47, %v4359_v16 }
  0xb5   :  { %7254 = vst [vmem:[#allocation70_spill] sm:$0xff] %v4407_v0  ;;  %v907_v32 = vmul.f32 %v4023_v5, %v4273_v20  ;;  %v908_v25 = vmul.f32 %v4026_v6, %v4273_v20  ;;  %v1768_v58 = vmul.f32 %v4088_v35, %v4373_v23  ;;  %v1769_v57 = vmul.f32 %v4091_v47, %v4373_v23 }
  0xb6   :  { %v463_v28 = vadd.f32 %v4198_v36, %v4306_v4  ;;  %v464_v22 = vadd.f32 %v4201_v46, %v4309_v3  ;;  %3637 = vset.pattern.permute.xlu1 %v7243_v19  ;;  %v4431_v55 = vadd.f32 %v4163_v31, %v943_v24  ;;  %v4434_v15 = vadd.f32 %v4167_v43, %v944_v44  ;;  %v4443_v36 = vpop.permute.xlu1 %504  ;;  %v7261_v4 = vld [vmem:[#allocation46_spill] sm:$0xff] }
  0xb7   :  { %v4437_v54 = vadd.f32 %v915_v56, %v4407_v0  ;;  %v4440_v42 = vadd.f32 %v916_v33, %v4407_v0  ;;  %168 = vperm.xlu1 %3637, %v3826_v9   ;;  %7259 = vst [vmem:[#allocation75_spill] sm:$0xff] %v4443_v36  ;;  %v4446_v46 = vadd.f32 %v4181_v1, %v1796_v17  ;;  %v7264_v56 = vld [vmem:[#allocation9_spill] sm:$0xff]  ;;  %v7265_v44 = vld [vmem:[#allocation10_spill] sm:$0xff]  ;;  %v7282_v47 = vmov 2  }
  0xb8   :  { %7255 = vst [vmem:[#allocation71_spill] sm:$0xff] %v4431_v55  ;;  %7256 = vst [vmem:[#allocation72_spill] sm:$0xff] %v4434_v15  ;;  %v4449_v3 = vadd.f32 %v7261_v4, %v1797_v18  ;;  %v939_v31 = vadd.f32 %v907_v32, %v4100_v52  ;;  %v940_v43 = vadd.f32 %v908_v25, %v4100_v52  ;;  %v4453_v24 = vpop.permute.xlu0 %148  ;;  %v7266_v17 = vld [vmem:[#allocation42_spill] sm:$0xff]  ;;  %v7267_v4 = vld [vmem:[#allocation43_spill] sm:$0xff] }
  0xb9   :  { %7257 = vst [vmem:[#allocation73_spill] sm:$0xff] %v4437_v54  ;;  %7258 = vst [vmem:[#allocation74_spill] sm:$0xff] %v4440_v42  ;;  %v1073_v33 = vmul.f32 %v7264_v56, %v4443_v36  ;;  %v1074_v9 = vmul.f32 %v7265_v44, %v4443_v36  ;;  %v1926_v23 = vmul.f32 %v4109_v63, %v4443_v36  ;;  %v7270_v42 = vld [vmem:[#allocation59_spill] sm:$0xff] }
  0xba   :  { %7260 = vst [vmem:[#allocation76_spill] sm:$0xff] %v4446_v46  ;;  %7262 = vst [vmem:[#allocation46_spill] sm:$0xff] %v4449_v3  ;;  %v1927_v1 = vmul.f32 %v4112_v2, %v4443_v36  ;;  %v1021_v18 = vadd.f32 %v7266_v17, %v939_v31  ;;  %v1022_v32 = vadd.f32 %v7267_v4, %v940_v43  ;;  %v7272_v3 = vld [vmem:[#allocation60_spill] sm:$0xff] }
  0xbb   :  { %7263 = vst [vmem:[#allocation77_spill] sm:$0xff] %v4453_v24  ;;  %v1071_v25 = vmul.f32 %v7264_v56, %v4319_v53  ;;  %v1072_v14 = vmul.f32 %v7265_v44, %v4319_v53  ;;  %v4470_v29 = vadd.f32 %v1768_v58, %v4407_v0  ;;  %v4473_v16 = vadd.f32 %v1769_v57, %v4407_v0  ;;  %v7274_v58 = vld [vmem:[#allocation3_spill] sm:$0xff]  ;;  %v4491_v57 = vpop.permute.xlu1 %646  ;;  %v7285_v2 = vld [vmem:[#allocation12_spill] sm:$0xff] }
  0xbc   :  { %v4476_v54 = vadd.f32 %v7270_v42, %v463_v28  ;;  %v4479_v46 = vadd.f32 %v7272_v3, %v464_v22  ;;  %3638 = vset.pattern.permute.xlu1 %v7248_v26  ;;  %v4482_v31 = vadd.f32 %v1073_v33, %v1023_v48  ;;  %v4484_v43 = vadd.f32 %v1074_v9, %v1024_v27  ;;  %v4493_v0 = vpop.permute.xlu0 %279  ;;  %v7276_v27 = vld [vmem:[#allocation35_spill] sm:$0xff]  ;;  %v7278_v3 = vld [vmem:[#allocation40_spill] sm:$0xff]  ;;  %v7279_v9 = vld [vmem:[#allocation41_spill] sm:$0xff] }
  0xbd   :  { %7268 = vst [vmem:[#allocation42_spill] sm:$0xff] %v4470_v29  ;;  %7269 = vst [vmem:[#allocation43_spill] sm:$0xff] %v4473_v16  ;;  %v4486_v17 = vadd.f32 %v1926_v23, %v1876_v41  ;;  %v4488_v4 = vadd.f32 %v1927_v1, %v1877_v38  ;;  %394 = vperm.xlu1 %3638, %v7274_v58   ;;  %v1103_v28 = vadd.f32 %v1071_v25, %v1021_v18  ;;  %v7277_v41 = vld [vmem:[#allocation36_spill] sm:$0xff] }
  0xbe   :  { %7271 = vst [vmem:[#allocation59_spill] sm:$0xff] %v4476_v54  ;;  %7273 = vst [vmem:[#allocation60_spill] sm:$0xff] %v4479_v46  ;;  %v1104_v42 = vadd.f32 %v1072_v14, %v1022_v32  ;;  %v921_v22 = vmul.f32 %v4023_v5, %v4453_v24  ;;  %v922_v48 = vmul.f32 %v4026_v6, %v4453_v24  ;;  %v7280_v14 = vld [vmem:[#allocation31_spill] sm:$0xff]  ;;  %v7281_v32 = vld [vmem:[#allocation32_spill] sm:$0xff] }
  0xbf   :  { %7275 = vst [vmem:[#allocation3_spill] sm:$0xff] %v4493_v0  ;;  %v725_v23 = vmul.f32 %v7276_v27, %v4491_v57  ;;  %v726_v38 = vmul.f32 %v7277_v41, %v4491_v57  ;;  %v2006_v33 = vmul.f32 %v7278_v3, %v4491_v57  ;;  %v2007_v1 = vmul.f32 %v7279_v9, %v4491_v57  ;;  %v7284_v6 = vld [vmem:[#allocation11_spill] sm:$0xff] }
  0xc0   :  { %v1153_v18 = vmul.f32 %v7280_v14, %v4491_v57  ;;  %v1154_v25 = vmul.f32 %v7281_v32, %v4491_v57  ;;  %v209_v24 = vmul.f32 %v4032_v8, %v4311_v12  ;;  %v210_v46 = vmul.f32 %v4035_v11, %v4311_v12  ;;  %v4520_v15 = vpop.permute.xlu0 %163 }
  0xc1   :  { %v757_v54 = vadd.f32 %v725_v23, %v4375_v10  ;;  %v758_v26 = vadd.f32 %v726_v38, %v4377_v30  ;;  %v2038_v16 = vadd.f32 %v2006_v33, %v4391_v49  ;;  %v2039_v29 = vadd.f32 %v2007_v1, %v4393_v13  ;;  %3639 = vset.pattern.permute.xlu1 %v7282_v47  ;;  %v4527_v10 = vpop.permute.xlu1 %259  ;;  %v4540_v1 = vld [vmem:[%s7180_s3 + $0x68] sm:$0xff] }
  0xc2   :  { %7283 = vst [vmem:[#allocation78_spill] sm:$0xff] %v4520_v15  ;;  %v1185_v55 = vadd.f32 %v1153_v18, %v1103_v28  ;;  %v1186_v35 = vadd.f32 %v1154_v25, %v1104_v42  ;;  %v435_v5 = vmul.f32 %v7284_v6, %v4275_v21  ;;  %v436_v63 = vmul.f32 %v7285_v2, %v4275_v21  ;;  %v7301_v2 = vld [vmem:[#allocation37_spill] sm:$0xff]  ;;  %v7302_v6 = vld [vmem:[#allocation38_spill] sm:$0xff] }
  0xc3   :  { %536 = vperm.xlu1 %3639, %v4069_v40   ;;  %7286 = vst [vmem:[#allocation79_spill] sm:$0xff] %v4527_v10  ;;  %v789_v30 = vmax.f32 %v757_v54, 0.0  ;;  %v790_v49 = vmax.f32 %v758_v26, 0.0  ;;  %v2070_v23 = vmax.f32 %v2038_v16, 0.0  ;;  %v2071_v13 = vmax.f32 %v2039_v29, 0.0 }
  0xc4   :  { %v4530_v38 = vadd.f32 %v921_v22, %v4493_v0  ;;  %v4533_v28 = vadd.f32 %v922_v48, %v4493_v0  ;;  %v321_v42 = vadd.f32 %v4343_v45, %v209_v24  ;;  %v322_v33 = vadd.f32 %v4343_v45, %v210_v46  ;;  %v4546_v22 = vpop.permute.xlu0 %294 }
  0xc5   :  { %v945_v26 = vadd.f32 %v4382_v37, %v4527_v10  ;;  %v946_v29 = vadd.f32 %v4386_v39, %v4527_v10  ;;  %v1217_v16 = vmax.f32 %v1185_v55, 0.0  ;;  %v1218_v54 = vmax.f32 %v1186_v35, 0.0  ;;  %7289 = vst [vmem:[#allocation82_spill] sm:$0xff] %v4546_v22  ;;  %v7292_v35 = vld [vmem:[#allocation20_spill] sm:$0xff] }
  0xc6   :  { %7287 = vst [vmem:[#allocation80_spill] sm:$0xff] %v4530_v38  ;;  %7288 = vst [vmem:[#allocation81_spill] sm:$0xff] %v4533_v28  ;;  %v1798_v24 = vadd.f32 %v4411_v60, %v4527_v10  ;;  %v1799_v46 = vadd.f32 %v4415_v7, %v4527_v10  ;;  %v581_v48 = vmul.f32 %v4011_v61, %v4443_v36  ;;  %v7293_v60 = vld [vmem:[#allocation21_spill] sm:$0xff]  ;;  %v4566_v7 = vpop.permute.xlu1 %366 }
  0xc7   :  { %v582_v18 = vmul.f32 %v4014_v62, %v4443_v36  ;;  %3640 = vset.pattern.permute.xlu1 %v7243_v19  ;;  %v4557_v37 = vadd.f32 %v790_v49, %v789_v30  ;;  %v4559_v39 = vadd.f32 %v2071_v13, %v2070_v23  ;;  %v1333_v55 = vmul.f32 %v7292_v35, %v4273_v20  ;;  %v7296_v28 = vld [vmem:[#allocation25_spill] sm:$0xff]  ;;  %v101_v49 = vld [vmem:[%s7179_s29 + $0x60] sm:$0xff] }
  0xc8   :  { %v1334_v25 = vmul.f32 %v7293_v60, %v4273_v20  ;;  %173 = vperm.xlu1 %3640, %v4540_v1   ;;  %7294 = vst [vmem:[#allocation85_spill] sm:$0xff] %v4566_v7  ;;  %v4568_v22 = vadd.f32 %v1218_v54, %v1217_v16  ;;  %v467_v15 = vadd.f32 %v435_v5, %v321_v42  ;;  %v7297_v23 = vld [vmem:[#allocation7_spill] sm:$0xff]  ;;  %v7298_v20 = vld [vmem:[#allocation8_spill] sm:$0xff]  ;;  %v7303_v36 = vld [vmem:[#allocation58_spill] sm:$0xff] }
  0xc9   :  { %7290 = vst [vmem:[#allocation83_spill] sm:$0xff] %v4557_v37  ;;  %7291 = vst [vmem:[#allocation84_spill] sm:$0xff] %v4559_v39  ;;  %v468_v0 = vadd.f32 %v436_v63, %v322_v33  ;;  %v1497_v30 = vmul.f32 %v7296_v28, %v4319_v53  ;;  %v995_v13 = vmul.f32 %v7297_v23, %v4566_v7  ;;  %v4583_v63 = vpop.permute.xlu0 %178 }
  0xca   :  { %7295 = vst [vmem:[#allocation86_spill] sm:$0xff] %v4568_v22  ;;  %v996_v38 = vmul.f32 %v7298_v20, %v4566_v7  ;;  %v1848_v39 = vmul.f32 %v4094_v50, %v4566_v7  ;;  %v1849_v5 = vmul.f32 %v4097_v51, %v4566_v7  ;;  %7299 = vst [vmem:[#allocation87_spill] sm:$0xff] %v4583_v63  ;;  %v7300_v22 = vld [vmem:[#allocation26_spill] sm:$0xff] }
  0xcb   :  { %v613_v42 = vadd.f32 %v581_v48, %v467_v15  ;;  %v614_v33 = vadd.f32 %v582_v18, %v468_v0  ;;  %v1365_v16 = vadd.f32 %v1333_v55, %v4100_v52  ;;  %v1366_v54 = vadd.f32 %v1334_v25, %v4100_v52  ;;  %v4603_v48 = vpop.permute.xlu1 %650  ;;  %v7305_v55 = vld [vmem:[#allocation45_spill] sm:$0xff] }
  0xcc   :  { %v1498_v37 = vmul.f32 %v7300_v22, %v4319_v53  ;;  %v1579_v10 = vmul.f32 %v7301_v2, %v4491_v57  ;;  %v1580_v28 = vmul.f32 %v7302_v6, %v4491_v57  ;;  %v211_v7 = vmul.f32 %v4032_v8, %v7303_v36  ;;  %299 = vperm.xlu1 %3640, %v101_v49   ;;  %v7304_v53 = vld [vmem:[#allocation44_spill] sm:$0xff] }
  0xcd   :  { %v4595_v63 = vadd.f32 %v995_v13, %v945_v26  ;;  %v4597_v0 = vadd.f32 %v996_v38, %v946_v29  ;;  %v4599_v15 = vadd.f32 %v1848_v39, %v1798_v24  ;;  %v4601_v52 = vadd.f32 %v1849_v5, %v1799_v46  ;;  %v4612_v26 = vpop.permute.xlu0 %309 }
  0xce   :  { %v1447_v18 = vadd.f32 %v7304_v53, %v1365_v16  ;;  %v1448_v25 = vadd.f32 %v7305_v55, %v1366_v54  ;;  %v212_v57 = vmul.f32 %v4035_v11, %v7303_v36  ;;  %v4610_v6 = vadd.f32 %v4389_v59, %v211_v7  ;;  %7306 = vst [vmem:[#allocation58_spill] sm:$0xff] %v4612_v26 }
  0xcf   :  { %v1155_v38 = vmul.f32 %v7280_v14, %v4603_v48  ;;  %v1156_v29 = vmul.f32 %v7281_v32, %v4603_v48  ;;  %v2008_v24 = vmul.f32 %v7278_v3, %v4603_v48  ;;  %v2009_v46 = vmul.f32 %v7279_v9, %v4603_v48  ;;  %v4640_v9 = vpop.permute.xlu1 %138 }
  0xd0   :  { %v727_v39 = vmul.f32 %v7276_v27, %v4603_v48  ;;  %v728_v7 = vmul.f32 %v7277_v41, %v4603_v48  ;;  %v4628_v49 = vmul.f32 %v7292_v35, %v4311_v12  ;;  %v4632_v13 = vmul.f32 %v7293_v60, %v4311_v12  ;;  %3642 = vset.pattern.permute.xlu1 %v7282_v47 }
  0xd1   :  { %v1187_v5 = vadd.f32 %v1155_v38, %v4482_v31  ;;  %v1188_v16 = vadd.f32 %v1156_v29, %v4484_v43  ;;  %v2040_v54 = vadd.f32 %v2008_v24, %v4486_v17  ;;  %v2041_v53 = vadd.f32 %v2009_v46, %v4488_v4  ;;  %540 = vperm.xlu1 %3642, %v7274_v58   ;;  %v4642_v14 = vpop.permute.xlu0 %508 }
  0xd2   :  { %v759_v55 = vadd.f32 %v727_v39, %v613_v42  ;;  %v760_v26 = vadd.f32 %v728_v7, %v614_v33  ;;  %v1529_v41 = vadd.f32 %v1497_v30, %v1447_v18  ;;  %v1530_v27 = vadd.f32 %v1498_v37, %v1448_v25  ;;  %7307 = vst [vmem:[#allocation44_spill] sm:$0xff] %v4640_v9  ;;  %v7309_v37 = vld [vmem:[#allocation22_spill] sm:$0xff]  ;;  %v7310_v42 = vld [vmem:[#allocation23_spill] sm:$0xff]  ;;  %v7311_v18 = vld [vmem:[#allocation33_spill] sm:$0xff] }
  0xd3   :  { %v1219_v12 = vmax.f32 %v1187_v5, 0.0  ;;  %v1220_v3 = vmax.f32 %v1188_v16, 0.0  ;;  %v2072_v32 = vmax.f32 %v2040_v54, 0.0  ;;  %v2073_v47 = vmax.f32 %v2041_v53, 0.0  ;;  %7308 = vst [vmem:[#allocation45_spill] sm:$0xff] %v4642_v14  ;;  %v7318_v39 = vld [vmem:[#allocation27_spill] sm:$0xff] }
  0xd4   :  { %v791_v31 = vmax.f32 %v759_v55, 0.0  ;;  %v792_v43 = vmax.f32 %v760_v26, 0.0  ;;  %v1611_v38 = vadd.f32 %v1579_v10, %v1529_v41  ;;  %v1612_v17 = vadd.f32 %v1580_v28, %v1530_v27  ;;  %v7312_v27 = vld [vmem:[#allocation34_spill] sm:$0xff]  ;;  %v7313_v10 = vld [vmem:[#allocation16_spill] sm:$0xff]  ;;  %v7314_v26 = vld [vmem:[#allocation17_spill] sm:$0xff]  ;;  %v4678_v5 = vpop.permute.xlu1 %370 }
  0xd5   :  { %v1075_v4 = vmul.f32 %v7264_v56, %v4642_v14  ;;  %v1076_v58 = vmul.f32 %v7265_v44, %v4642_v14  ;;  %v1417_v30 = vmul.f32 %v7309_v37, %v4275_v21  ;;  %v4652_v33 = vmul.f32 %v7310_v42, %v4275_v21  ;;  %3643 = vset.pattern.permute.xlu1 %v7242_v34  ;;  %v4680_v16 = vpop.permute.xlu0 %520  ;;  %v7321_v54 = vld [vmem:[#allocation71_spill] sm:$0xff]  ;;  %v7322_v55 = vld [vmem:[#allocation72_spill] sm:$0xff] }
  0xd6   :  { %v1928_v25 = vmul.f32 %v7311_v18, %v4642_v14  ;;  %v1929_v41 = vmul.f32 %v7312_v27, %v4642_v14  ;;  %v4661_v28 = vmul.f32 %v7313_v10, %v4640_v9  ;;  %v4665_v29 = vmul.f32 %v7314_v26, %v4640_v9  ;;  %682 = vperm.xlu1 %3643, %v4069_v40  }
  0xd7   :  { %v4668_v21 = vadd.f32 %v1220_v3, %v1219_v12  ;;  %v4670_v24 = vadd.f32 %v2073_v47, %v2072_v32  ;;  %v4672_v46 = vadd.f32 %v792_v43, %v791_v31  ;;  %v4676_v7 = vmul.f32 %v7318_v39, %v4640_v9  ;;  %7319 = vst [vmem:[#allocation91_spill] sm:$0xff] %v4678_v5  ;;  %v102_v47 = vld [vmem:[%s7179_s29 + $0x68] sm:$0xff] }
  0xd8   :  { %7320 = vst [vmem:[#allocation92_spill] sm:$0xff] %v4680_v16  ;;  %v4683_v53 = vadd.f32 %v1075_v4, %v7321_v54  ;;  %v4686_v42 = vadd.f32 %v1076_v58, %v7322_v55  ;;  %v1643_v40 = vmax.f32 %v1611_v38, 0.0  ;;  %v1644_v3 = vmax.f32 %v1612_v17, 0.0  ;;  %v7323_v31 = vld [vmem:[#allocation28_spill] sm:$0xff]  ;;  %v7325_v38 = vld [vmem:[#allocation46_spill] sm:$0xff] }
  0xd9   :  { %7315 = vst [vmem:[#allocation88_spill] sm:$0xff] %v4668_v21  ;;  %7316 = vst [vmem:[#allocation89_spill] sm:$0xff] %v4670_v24  ;;  %v997_v32 = vmul.f32 %v7297_v23, %v4678_v5  ;;  %v998_v12 = vmul.f32 %v7298_v20, %v4678_v5  ;;  %v4697_v43 = vmul.f32 %v7323_v31, %v4640_v9  ;;  %v7324_v58 = vld [vmem:[#allocation76_spill] sm:$0xff]  ;;  %v7330_v24 = vld [vmem:[#allocation74_spill] sm:$0xff] }
  0xda   :  { %7317 = vst [vmem:[#allocation90_spill] sm:$0xff] %v4672_v46  ;;  %v324_v4 = vadd.f32 %v4389_v59, %v212_v57  ;;  %v4701_v54 = vadd.f32 %v1928_v25, %v7324_v58  ;;  %v4704_v17 = vadd.f32 %v1929_v41, %v7325_v38  ;;  %v4708_v55 = vmul.f32 %v7264_v56, %v4680_v16  ;;  %v4727_v58 = vpop.permute.xlu0 %532  ;;  %v7329_v38 = vld [vmem:[#allocation73_spill] sm:$0xff]  ;;  %v7333_v21 = vld [vmem:[#allocation48_spill] sm:$0xff] }
  0xdb   :  { %v4712_v46 = vmul.f32 %v7265_v44, %v4680_v16  ;;  %3644 = vset.pattern.permute.xlu1 %v7243_v19  ;;  %v1850_v9 = vmul.f32 %v4094_v50, %v4678_v5  ;;  %v1851_v57 = vmul.f32 %v4097_v51, %v4678_v5  ;;  %v4721_v25 = vmul.f32 %v7311_v18, %v4680_v16  ;;  %v4739_v51 = vpop.permute.xlu1 %512 }
  0xdc   :  { %v4725_v41 = vmul.f32 %v7312_v27, %v4680_v16  ;;  %304 = vperm.xlu1 %3644, %v102_v47   ;;  %7328 = vst [vmem:[#allocation76_spill] sm:$0xff] %v4727_v58  ;;  %v4730_v37 = vadd.f32 %v997_v32, %v7329_v38  ;;  %v4733_v59 = vadd.f32 %v998_v12, %v7330_v24  ;;  %7332 = vst [vmem:[#allocation73_spill] sm:$0xff] %v4739_v51 }
  0xdd   :  { %7326 = vst [vmem:[#allocation71_spill] sm:$0xff] %v4721_v25  ;;  %v4735_v50 = vadd.f32 %v1644_v3, %v1643_v40  ;;  %v583_v5 = vmul.f32 %v4011_v61, %v4642_v14  ;;  %v469_v16 = vadd.f32 %v7333_v21, %v4610_v6  ;;  %v584_v25 = vmul.f32 %v4014_v62, %v4642_v14  ;;  %v7335_v21 = vld [vmem:[#allocation42_spill] sm:$0xff] }
  0xde   :  { %7327 = vst [vmem:[#allocation72_spill] sm:$0xff] %v4725_v41  ;;  %v7334_v41 = vld [vmem:[#allocation49_spill] sm:$0xff]  ;;  %v1367_v32 = vadd.f32 %v4628_v49, %v4343_v45  ;;  %v1077_v24 = vmul.f32 %v7264_v56, %v4739_v51  ;;  %v1078_v40 = vmul.f32 %v7265_v44, %v4739_v51  ;;  %v1930_v3 = vmul.f32 %v7311_v18, %v4739_v51  ;;  %v4769_v14 = vpop.permute.xlu0 %544 }
  0xdf   :  { %7331 = vst [vmem:[#allocation46_spill] sm:$0xff] %v4735_v50  ;;  %v470_v47 = vadd.f32 %v7334_v41, %v324_v4  ;;  %v1931_v6 = vmul.f32 %v7312_v27, %v4739_v51  ;;  %v4757_v12 = vadd.f32 %v1850_v9, %v7335_v21  ;;  %v7336_v4 = vld [vmem:[#allocation43_spill] sm:$0xff]  ;;  %v4764_v49 = vmul.f32 %v7264_v56, %v4727_v58 }
  0xe0   :  { %v4760_v41 = vadd.f32 %v1851_v57, %v7336_v4  ;;  %v1368_v38 = vadd.f32 %v4632_v13, %v4343_v45  ;;  %v7338_v50 = vmov 1   ;;  %7339 = vst [vmem:[#allocation48_spill] sm:$0xff] %v4769_v14  ;;  %v4773_v20 = vmul.f32 %v7265_v44, %v4727_v58  ;;  %v7341_v14 = vld [vmem:[#allocation75_spill] sm:$0xff] }
  0xe1   :  { %7337 = vst [vmem:[#allocation74_spill] sm:$0xff] %v4764_v49  ;;  %3645 = vset.pattern.permute.xlu1 %v7338_v50  ;;  %v4775_v9 = vadd.f32 %v583_v5, %v469_v16  ;;  %v4777_v21 = vadd.f32 %v584_v25, %v470_v47  ;;  %v1449_v57 = vadd.f32 %v1417_v30, %v1367_v32  ;;  %v7342_v49 = vld [vmem:[#allocation25_spill] sm:$0xff]  ;;  %v7344_v16 = vld [vmem:[#allocation67_spill] sm:$0xff] }
  0xe2   :  { %7340 = vst [vmem:[#allocation49_spill] sm:$0xff] %v4773_v20  ;;  %402 = vperm.xlu1 %3645, %v4540_v1   ;;  %v4781_v4 = vadd.f32 %v1077_v24, %v4595_v63  ;;  %v4784_v45 = vadd.f32 %v1078_v40, %v4597_v0  ;;  %v4787_v13 = vadd.f32 %v1930_v3, %v4599_v15  ;;  %v4791_v20 = vpop.permute.xlu1 %143  ;;  %v7345_v25 = vld [vmem:[#allocation85_spill] sm:$0xff]  ;;  %v7346_v0 = vld [vmem:[#allocation11_spill] sm:$0xff]  ;;  %v7347_v24 = vld [vmem:[#allocation38_spill] sm:$0xff]  ;;  %v4809_v3 = vpop.permute.xlu0 %552 }
  0xe3   :  { %v1499_v58 = vmul.f32 %v7342_v49, %v7341_v14  ;;  %7343 = vst [vmem:[#allocation42_spill] sm:$0xff] %v4791_v20  ;;  %v4794_v5 = vadd.f32 %v1931_v6, %v4601_v52  ;;  %v1500_v30 = vmul.f32 %v7300_v22, %v7341_v14  ;;  %v213_v63 = vmul.f32 %v4032_v8, %v7344_v16 }
  0xe4   :  { %v439_v47 = vmul.f32 %v7346_v0, %v7345_v25  ;;  %v1450_v15 = vadd.f32 %v4652_v33, %v1368_v38  ;;  %v1581_v32 = vmul.f32 %v7301_v2, %v4603_v48  ;;  %v1582_v40 = vmul.f32 %v7347_v24, %v4603_v48  ;;  %7348 = vst [vmem:[#allocation43_spill] sm:$0xff] %v4809_v3  ;;  %v7349_v38 = vld [vmem:[#allocation79_spill] sm:$0xff] }
  0xe5   :  { %v214_v52 = vmul.f32 %v4035_v11, %v7344_v16  ;;  %v4813_v14 = vmul.f32 %v7313_v10, %v4791_v20  ;;  %v4817_v6 = vmul.f32 %v7314_v26, %v4791_v20  ;;  %v4821_v33 = vmul.f32 %v7318_v39, %v4791_v20  ;;  %v7351_v16 = vld [vmem:[#allocation12_spill] sm:$0xff]  ;;  %v3663_v39 = vld [vmem:[%s7180_s3 + $0x58] sm:$0xff] }
  0xe6   :  { %v325_v0 = vadd.f32 %v7349_v38, %v213_v63  ;;  %3646 = vset.pattern.permute.xlu1 %v7242_v34  ;;  %v4827_v48 = vmul.f32 %v7323_v31, %v4791_v20  ;;  %v1531_v3 = vadd.f32 %v1499_v58, %v1449_v57  ;;  %v440_v11 = vmul.f32 %v7351_v16, %v7345_v25  ;;  %v4836_v22 = vpop.permute.xlu1 %269  ;;  %v7366_v25 = vld [vmem:[#allocation55_spill] sm:$0xff] }
  0xe7   :  { %v585_v8 = vmul.f32 %v4011_v61, %v4739_v51  ;;  %686 = vperm.xlu1 %3646, %v3663_v39   ;;  %7352 = vst [vmem:[#allocation93_spill] sm:$0xff] %v4836_v22  ;;  %v1532_v63 = vadd.f32 %v1500_v30, %v1450_v15  ;;  %v326_v49 = vadd.f32 %v7349_v38, %v214_v52  ;;  %v4854_v30 = vld [vmem:[%s7180_s3 + $0x78] sm:$0xff]  ;;  %v7357_v52 = vld [vmem:[#allocation51_spill] sm:$0xff] }
  0xe8   :  { %7350 = vst [vmem:[#allocation75_spill] sm:$0xff] %v4827_v48  ;;  %v471_v26 = vadd.f32 %v439_v47, %v325_v0  ;;  %v4841_v58 = vmul.f32 %v4014_v62, %v4739_v51  ;;  %v949_v57 = vadd.f32 %v4661_v28, %v4836_v22  ;;  %v950_v20 = vadd.f32 %v4665_v29, %v4836_v22  ;;  %v7368_v61 = vld [vmem:[#allocation62_spill] sm:$0xff] }
  0xe9   :  { %v1802_v31 = vadd.f32 %v4676_v7, %v4836_v22  ;;  %v1803_v39 = vadd.f32 %v4697_v43, %v4836_v22  ;;  %v4856_v0 = vadd.f32 %v1581_v32, %v1531_v3  ;;  %v4858_v47 = vadd.f32 %v1582_v40, %v1532_v63  ;;  %v4868_v7 = vpop.permute.xlu0 %642  ;;  %v7356_v43 = vld [vmem:[#allocation50_spill] sm:$0xff]  ;;  %v7360_v40 = vld [vmem:[#allocation31_spill] sm:$0xff]  ;;  %v7361_v63 = vld [vmem:[#allocation32_spill] sm:$0xff] }
  0xea   :  { %7353 = vst [vmem:[#allocation94_spill] sm:$0xff] %v4841_v58  ;;  %v4862_v28 = vmul.f32 %v7292_v35, %v7303_v36  ;;  %v4866_v29 = vmul.f32 %v7293_v60, %v7303_v36  ;;  %v1031_v15 = vadd.f32 %v7356_v43, %v949_v57  ;;  %v1032_v22 = vadd.f32 %v7357_v52, %v950_v20  ;;  %v7365_v43 = vld [vmem:[#allocation54_spill] sm:$0xff]  ;;  %v7367_v35 = vld [vmem:[#allocation61_spill] sm:$0xff] }
  0xeb   :  { %v4872_v38 = vadd.f32 %v440_v11, %v326_v49  ;;  %v4874_v32 = vadd.f32 %v585_v8, %v471_v26  ;;  %3647 = vset.pattern.permute.xlu1 %v7243_v19  ;;  %v1151_v3 = vmul.f32 %v7360_v40, %v4868_v7  ;;  %v1152_v51 = vmul.f32 %v7361_v63, %v4868_v7  ;;  %v4886_v11 = vpop.permute.xlu1 %516  ;;  %v7363_v8 = vld [vmem:[#allocation40_spill] sm:$0xff]  ;;  %v7364_v26 = vld [vmem:[#allocation41_spill] sm:$0xff]  ;;  %v7372_v48 = vld [vmem:[#allocation66_spill] sm:$0xff] }
  0xec   :  { %7354 = vst [vmem:[#allocation95_spill] sm:$0xff] %v4862_v28  ;;  %7355 = vst [vmem:[#allocation96_spill] sm:$0xff] %v4866_v29  ;;  %v1577_v36 = vmul.f32 %v7301_v2, %v4868_v7  ;;  %v1578_v57 = vmul.f32 %v7347_v24, %v4868_v7  ;;  %183 = vperm.xlu1 %3647, %v4854_v30   ;;  %v2004_v20 = vmul.f32 %v7363_v8, %v4868_v7  ;;  %v7369_v24 = vld [vmem:[#allocation63_spill] sm:$0xff]  ;;  %v7371_v58 = vld [vmem:[#allocation65_spill] sm:$0xff] }
  0xed   :  { %7358 = vst [vmem:[#allocation50_spill] sm:$0xff] %v4872_v38  ;;  %7359 = vst [vmem:[#allocation51_spill] sm:$0xff] %v4874_v32  ;;  %v2005_v49 = vmul.f32 %v7364_v26, %v4868_v7  ;;  %v4893_v52 = vadd.f32 %v7365_v43, %v1802_v31  ;;  %v4896_v60 = vadd.f32 %v7366_v25, %v1803_v39  ;;  %v7370_v32 = vld [vmem:[#allocation64_spill] sm:$0xff]  ;;  %v4902_v28 = vpop.permute.xlu0 %654 }
  0xee   :  { %7362 = vst [vmem:[#allocation97_spill] sm:$0xff] %v4886_v11  ;;  %v1183_v62 = vadd.f32 %v1151_v3, %v7367_v35  ;;  %v1184_v16 = vadd.f32 %v1152_v51, %v7368_v61  ;;  %v1609_v2 = vadd.f32 %v1577_v36, %v7369_v24  ;;  %v1610_v29 = vadd.f32 %v1578_v57, %v7370_v32 }
  0xef   :  { %v2036_v38 = vadd.f32 %v2004_v20, %v7371_v58  ;;  %v2037_v10 = vadd.f32 %v2005_v49, %v7372_v48  ;;  %v1079_v31 = vmul.f32 %v7264_v56, %v4886_v11  ;;  %v1113_v25 = vadd.f32 %v4708_v55, %v1031_v15 }
  0xf0   :  { %v1215_v39 = vmax.f32 %v1183_v62, 0.0  ;;  %v1216_v43 = vmax.f32 %v1184_v16, 0.0  ;;  %v1641_v35 = vmax.f32 %v1609_v2, 0.0  ;;  %v1642_v3 = vmax.f32 %v1610_v29, 0.0  ;;  %3649 = vset.pattern.permute.xlu1 %v7338_v50  ;;  %v3664_v62 = vld [vmem:[%s7180_s3 + $0x70] sm:$0xff]  ;;  %v4920_v2 = vpop.permute.xlu1 %658 }
  0xf1   :  { %v1157_v61 = vmul.f32 %v7360_v40, %v4902_v28  ;;  %v1158_v51 = vmul.f32 %v7361_v63, %v4902_v28  ;;  %v1080_v24 = vmul.f32 %v7265_v44, %v4886_v11  ;;  %v1114_v48 = vadd.f32 %v4712_v46, %v1032_v22  ;;  %406 = vperm.xlu1 %3649, %v3664_v62   ;;  %v4922_v15 = vpop.permute.xlu0 %666 }
  0xf2   :  { %v1247_v55 = vadd.f32 %v1216_v43, %v1215_v39  ;;  %v1673_v16 = vadd.f32 %v1642_v3, %v1641_v35  ;;  %v2068_v58 = vmax.f32 %v2036_v38, 0.0  ;;  %v2069_v29 = vmax.f32 %v2037_v10, 0.0 }
  0xf3   :  { %v1189_v32 = vadd.f32 %v1157_v61, %v4683_v53  ;;  %v1190_v36 = vadd.f32 %v1158_v51, %v4686_v42  ;;  %v1159_v22 = vmul.f32 %v7360_v40, %v4920_v2  ;;  %v4929_v46 = vadd.f32 %v1079_v31, %v4730_v37 }
  0xf4   :  { %1248 = vadd.xlane.f32.xlu0 %v1247_v55  ;;  %v1160_v57 = vmul.f32 %v7361_v63, %v4920_v2  ;;  %v2010_v38 = vmul.f32 %v7363_v8, %v4902_v28  ;;  %v2011_v10 = vmul.f32 %v7364_v26, %v4902_v28  ;;  %v1163_v53 = vmul.f32 %v7360_v40, %v4922_v15  ;;  %v4947_v61 = vpop.permute.xlu1 %274 }
  0xf5   :  { %v1221_v42 = vmax.f32 %v1189_v32, 0.0  ;;  %v1222_v20 = vmax.f32 %v1190_v36, 0.0  ;;  %v1191_v49 = vadd.f32 %v1159_v22, %v4781_v4  ;;  %v1164_v37 = vmul.f32 %v7361_v63, %v4922_v15  ;;  %7374 = vst [vmem:[#allocation54_spill] sm:$0xff] %v4947_v61  ;;  %v7375_v32 = vld [vmem:[#allocation83_spill] sm:$0xff] }
  0xf6   :  { %v7373_v31 = vmov 2   ;;  %v1192_v39 = vadd.f32 %v1160_v57, %v4784_v45  ;;  %v2042_v43 = vadd.f32 %v2010_v38, %v4701_v54  ;;  %v2043_v35 = vadd.f32 %v2011_v10, %v4704_v17  ;;  %v104_v17 = vld [vmem:[%s7179_s29 + $0x78] sm:$0xff] }
  0xf7   :  { %3650 = vset.pattern.permute.xlu1 %v7373_v31  ;;  %v1195_v3 = vadd.f32 %v1163_v53, %v1113_v25  ;;  %v1223_v51 = vmax.f32 %v1191_v49, 0.0  ;;  %v4950_v62 = vadd.f32 %v1080_v24, %v4733_v59  ;;  %v1196_v4 = vadd.f32 %v1164_v37, %v1114_v48 }
  0xf8   :  { %548 = vperm.xlu1 %3650, %v4540_v1   ;;  %v2012_v55 = vmul.f32 %v7363_v8, %v4920_v2  ;;  %823 = vadd.xlane.f32.xlu0 %v7375_v32  ;;  %v2100_v45 = vadd.f32 %v2069_v29, %v2068_v58  ;;  %v1224_v36 = vmax.f32 %v1192_v39, 0.0  ;;  %v2074_v54 = vmax.f32 %v2042_v43, 0.0 }
  0xf9   :  { %v2075_v22 = vmax.f32 %v2043_v35, 0.0  ;;  %v1227_v25 = vmax.f32 %v1195_v3, 0.0  ;;  %v1228_v57 = vmax.f32 %v1196_v4, 0.0  ;;  %v2013_v59 = vmul.f32 %v7364_v26, %v4920_v2 }
  0xfa   :  { %v2044_v24 = vadd.f32 %v2012_v55, %v4787_v13  ;;  %v4961_v48 = vadd.f32 %v1222_v20, %v1221_v42  ;;  %v4963_v38 = vadd.f32 %v1224_v36, %v1223_v51  ;;  %v951_v58 = vadd.f32 %v4813_v14, %v4947_v61  ;;  %v4975_v42 = vpop.permute.xlu1 %378  ;;  %v7377_v20 = vld [vmem:[#allocation35_spill] sm:$0xff]  ;;  %v7379_v51 = vld [vmem:[#allocation8_spill] sm:$0xff] }
  0xfb   :  { %v1932_v29 = vmul.f32 %v7311_v18, %v4886_v11  ;;  %v4970_v10 = vadd.f32 %v2075_v22, %v2074_v54  ;;  %v2045_v53 = vadd.f32 %v2013_v59, %v4794_v5  ;;  %v1933_v13 = vmul.f32 %v7312_v27, %v4886_v11  ;;  %7376 = vst [vmem:[#allocation55_spill] sm:$0xff] %v4975_v42  ;;  %v7380_v55 = vld [vmem:[#allocation59_spill] sm:$0xff]  ;;  %v7381_v36 = vld [vmem:[#allocation60_spill] sm:$0xff] }
  0xfc   :  { %3651 = vset.pattern.permute.xlu1 %v7243_v19  ;;  %v2076_v49 = vmax.f32 %v2044_v24, 0.0  ;;  %1674 = vadd.xlane.f32.xlu0 %v1673_v16  ;;  %v952_v14 = vadd.f32 %v4817_v6, %v4947_v61  ;;  %v723_v37 = vmul.f32 %v7377_v20, %v4868_v7  ;;  %v7378_v19 = vld [vmem:[#allocation36_spill] sm:$0xff]  ;;  %v1645_v43 = vmax.f32 %v4856_v0, 0.0  ;;  %v7382_v22 = vld [vmem:[#allocation71_spill] sm:$0xff] }
  0xfd   :  { %314 = vperm.xlu1 %3651, %v104_v17   ;;  %v724_v39 = vmul.f32 %v7378_v19, %v4868_v7  ;;  %v4984_v5 = vadd.f32 %v1228_v57, %v1227_v25  ;;  %v2077_v35 = vmax.f32 %v2045_v53, 0.0  ;;  %v1001_v3 = vmul.f32 %v7297_v23, %v4975_v42  ;;  %v7383_v25 = vld [vmem:[#allocation72_spill] sm:$0xff] }
  0xfe   :  { %v1002_v16 = vmul.f32 %v7379_v51, %v4975_v42  ;;  %v1964_v4 = vadd.f32 %v1932_v29, %v4757_v12  ;;  %v1965_v6 = vadd.f32 %v1933_v13, %v4760_v41  ;;  %v755_v32 = vadd.f32 %v723_v37, %v7380_v55  ;;  %v7384_v12 = vld [vmem:[#allocation88_spill] sm:$0xff]  ;;  %v5022_v37 = vpop.permute.xlu0 %678 }
  0xff   :  { %v756_v54 = vadd.f32 %v724_v39, %v7381_v36  ;;  %v4994_v7 = vadd.f32 %v2077_v35, %v2076_v49  ;;  %v1966_v17 = vadd.f32 %v7382_v22, %v4893_v52  ;;  %v1967_v57 = vadd.f32 %v7383_v25, %v4896_v60  ;;  %v5012_v52 = vpop.permute.xlu1 %662  ;;  %7386 = vst [vmem:[#allocation62_spill] sm:$0xff] %v5022_v37 }
 0x100   :  { %v2016_v59 = vmul.f32 %v7363_v8, %v4922_v15  ;;  %1254 = vadd.xlane.f32.xlu0 %v7384_v12  ;;  %v5004_v41 = vadd.f32 %v1001_v3, %v951_v58  ;;  %v5006_v24 = vadd.f32 %v1002_v16, %v952_v14  ;;  %v2017_v29 = vmul.f32 %v7364_v26, %v4922_v15 }
 0x101   :  { %3652 = vset.pattern.permute.xlu1 %v7338_v50  ;;  %v1646_v53 = vmax.f32 %v4858_v47, 0.0  ;;  %7385 = vst [vmem:[#allocation61_spill] sm:$0xff] %v5012_v52  ;;  %v787_v60 = vmax.f32 %v755_v32, 0.0  ;;  %v729_v50 = vmul.f32 %v7377_v20, %v4902_v28  ;;  %v730_v58 = vmul.f32 %v7378_v19, %v4902_v28 }
 0x102   :  { %410 = vperm.xlu1 %3652, %v4854_v30   ;;  %v2048_v49 = vadd.f32 %v2016_v59, %v1966_v17  ;;  %v1161_v13 = vmul.f32 %v7360_v40, %v5012_v52  ;;  %v1162_v14 = vmul.f32 %v7361_v63, %v5012_v52  ;;  %v2014_v47 = vmul.f32 %v7363_v8, %v5012_v52 }
 0x103   :  { %v2015_v39 = vmul.f32 %v7364_v26, %v5012_v52  ;;  %v788_v35 = vmax.f32 %v756_v54, 0.0  ;;  %v2049_v3 = vadd.f32 %v2017_v29, %v1967_v57  ;;  %v761_v55 = vadd.f32 %v729_v50, %v4775_v9  ;;  %v5038_v9 = vpop.permute.xlu1 %153 }
 0x104   :  { %v2080_v16 = vmax.f32 %v2048_v49, 0.0  ;;  %2101 = vadd.xlane.f32.xlu0 %v2100_v45  ;;  %v1193_v32 = vadd.f32 %v1161_v13, %v4929_v46  ;;  %v1194_v36 = vadd.f32 %v1162_v14, %v4950_v62  ;;  %v2046_v22 = vadd.f32 %v2014_v47, %v1964_v4  ;;  %7387 = vst [vmem:[#allocation63_spill] sm:$0xff] %v5038_v9  ;;  %v7392_v13 = vld [vmem:[#allocation29_spill] sm:$0xff] }
 0x105   :  { %v2047_v17 = vadd.f32 %v2015_v39, %v1965_v6  ;;  %v2081_v25 = vmax.f32 %v2049_v3, 0.0  ;;  %v5034_v59 = vmul.f32 %v7360_v40, %v5022_v37  ;;  %v762_v54 = vadd.f32 %v730_v58, %v4777_v21  ;;  %v7391_v58 = vld [vmem:[#allocation17_spill] sm:$0xff]  ;;  %v7396_v3 = vld [vmem:[#allocation50_spill] sm:$0xff] }
 0x106   :  { %3654 = vset.pattern.permute.xlu1 %v7242_v34  ;;  %v793_v57 = vmax.f32 %v761_v55, 0.0  ;;  %v1225_v45 = vmax.f32 %v1193_v32, 0.0  ;;  %v1226_v46 = vmax.f32 %v1194_v36, 0.0  ;;  %v2078_v12 = vmax.f32 %v2046_v22, 0.0  ;;  %v7398_v22 = vld [vmem:[#allocation69_spill] sm:$0xff] }
 0x107   :  { %694 = vperm.xlu1 %3654, %v4540_v1   ;;  %v2079_v62 = vmax.f32 %v2047_v17, 0.0  ;;  %v5040_v4 = vadd.f32 %v788_v35, %v787_v60  ;;  %v5044_v6 = vmul.f32 %v7361_v63, %v5022_v37  ;;  %v794_v29 = vmax.f32 %v762_v54, 0.0  ;;  %v7390_v1 = vld [vmem:[#allocation16_spill] sm:$0xff]  ;;  %v7399_v17 = vld [vmem:[#allocation95_spill] sm:$0xff]  ;;  %v5079_v54 = vpop.permute.xlu1 %382 }
 0x108   :  { %v1804_v49 = vadd.f32 %v4821_v33, %v4947_v61  ;;  %1257 = vadd.xlane.f32.xlu0 %v4961_v48  ;;  %v5049_v21 = vadd.f32 %v2081_v25, %v2080_v16  ;;  %v5053_v50 = vmul.f32 %v7390_v1, %v5038_v9  ;;  %v5057_v60 = vmul.f32 %v7391_v58, %v5038_v9  ;;  %v7395_v48 = vld [vmem:[#allocation75_spill] sm:$0xff]  ;;  %v7397_v16 = vld [vmem:[#allocation94_spill] sm:$0xff]  ;;  %v7435_v58 = vld [vmem:[#allocation73_spill] sm:$0xff] }
 0x109   :  { %7388 = vst [vmem:[#allocation64_spill] sm:$0xff] %v5040_v4  ;;  %v1854_v14 = vmul.f32 %v7392_v13, %v4975_v42  ;;  %v5061_v47 = vadd.f32 %v1226_v46, %v1225_v45  ;;  %v5063_v39 = vadd.f32 %v2079_v62, %v2078_v12  ;;  %v5065_v33 = vadd.f32 %v794_v29, %v793_v57  ;;  %v7401_v57 = vld [vmem:[#allocation30_spill] sm:$0xff]  ;;  %v7403_v46 = vld [vmem:[#allocation96_spill] sm:$0xff]  ;;  %v7404_v62 = vld [vmem:[#allocation45_spill] sm:$0xff] }
 0x10a   :  { %7389 = vst [vmem:[#allocation65_spill] sm:$0xff] %v5049_v21  ;;  %v1805_v35 = vadd.f32 %v7395_v48, %v4947_v61  ;;  %v618_v55 = vadd.f32 %v7397_v16, %v7396_v3  ;;  %v731_v32 = vmul.f32 %v7377_v20, %v4920_v2  ;;  %v732_v36 = vmul.f32 %v7378_v19, %v4920_v2  ;;  %v7405_v29 = vld [vmem:[#allocation25_spill] sm:$0xff]  ;;  %v7406_v3 = vld [vmem:[#allocation84_spill] sm:$0xff]  ;;  %v7414_v61 = vld [vmem:[#allocation18_spill] sm:$0xff] }
 0x10b   :  { %7393 = vst [vmem:[#allocation66_spill] sm:$0xff] %v5063_v39  ;;  %7394 = vst [vmem:[#allocation83_spill] sm:$0xff] %v5065_v33  ;;  %3655 = vset.pattern.permute.xlu1 %v7373_v31  ;;  %v1369_v25 = vadd.f32 %v7399_v17, %v7398_v22  ;;  %v1855_v45 = vmul.f32 %v7401_v57, %v4975_v42  ;;  %v5085_v31 = vadd.f32 %v1646_v53, %v1645_v43  ;;  %v7407_v17 = vld [vmem:[#allocation51_spill] sm:$0xff]  ;;  %v7408_v33 = vld [vmem:[#allocation26_spill] sm:$0xff] }
 0x10c   :  { %556 = vperm.xlu1 %3655, %v4854_v30   ;;  %7400 = vst [vmem:[#allocation35_spill] sm:$0xff] %v5079_v54  ;;  %v1370_v12 = vadd.f32 %v7403_v46, %v7398_v22  ;;  %v1501_v48 = vmul.f32 %v7405_v29, %v7404_v62  ;;  %2104 = vadd.xlane.f32.xlu0 %v7406_v3  ;;  %v7409_v53 = vld [vmem:[#allocation52_spill] sm:$0xff]  ;;  %v7410_v46 = vld [vmem:[#allocation53_spill] sm:$0xff] }
 0x10d   :  { %7402 = vst [vmem:[#allocation36_spill] sm:$0xff] %v5085_v31  ;;  %v5092_v16 = vadd.f32 %v1854_v14, %v1804_v49  ;;  %v763_v37 = vadd.f32 %v731_v32, %v7407_v17  ;;  %v764_v9 = vadd.f32 %v732_v36, %v618_v55  ;;  %v1502_v21 = vmul.f32 %v7408_v33, %v7404_v62  ;;  %v7411_v49 = vld [vmem:[#allocation37_spill] sm:$0xff]  ;;  %v7412_v55 = vld [vmem:[#allocation38_spill] sm:$0xff]  ;;  %v7413_v17 = vld [vmem:[#allocation68_spill] sm:$0xff] }
 0x10e   :  { %v1003_v0 = vmul.f32 %v7297_v23, %v5079_v54  ;;  %v1004_v43 = vmul.f32 %v7379_v51, %v5079_v54  ;;  %v1451_v22 = vadd.f32 %v7409_v53, %v1369_v25  ;;  %v1452_v31 = vadd.f32 %v7410_v46, %v1370_v12  ;;  %v7415_v25 = vld [vmem:[#allocation19_spill] sm:$0xff]  ;;  %v7421_v39 = vld [vmem:[#allocation81_spill] sm:$0xff] }
 0x10f   :  { %v795_v4 = vmax.f32 %v763_v37, 0.0  ;;  %v796_v3 = vmax.f32 %v764_v9, 0.0  ;;  %v1583_v14 = vmul.f32 %v7411_v49, %v4902_v28  ;;  %v1584_v32 = vmul.f32 %v7412_v55, %v4902_v28  ;;  %v5115_v37 = vpop.permute.xlu1 %524  ;;  %v7417_v12 = vld [vmem:[#allocation91_spill] sm:$0xff] }
 0x110   :  { %3656 = vset.pattern.permute.xlu1 %v7242_v34  ;;  %v5108_v36 = vadd.f32 %v1855_v45, %v1805_v35  ;;  %v1533_v62 = vadd.f32 %v1501_v48, %v1451_v22  ;;  %v215_v42 = vmul.f32 %v7414_v61, %v7413_v17  ;;  %v216_v53 = vmul.f32 %v7415_v25, %v7413_v17  ;;  %v7418_v28 = vld [vmem:[#allocation11_spill] sm:$0xff]  ;;  %v7419_v34 = vld [vmem:[#allocation12_spill] sm:$0xff] }
 0x111   :  { %702 = vperm.xlu1 %3656, %v4854_v30   ;;  %7416 = vst [vmem:[#allocation59_spill] sm:$0xff] %v5115_v37  ;;  %1260 = vadd.xlane.f32.xlu0 %v4963_v38  ;;  %v1534_v9 = vadd.f32 %v1502_v21, %v1452_v31  ;;  %v441_v46 = vmul.f32 %v7418_v28, %v7417_v12  ;;  %v7420_v48 = vld [vmem:[#allocation80_spill] sm:$0xff]  ;;  %v7423_v21 = vld [vmem:[#allocation70_spill] sm:$0xff] }
 0x112   :  { %v442_v35 = vmul.f32 %v7419_v34, %v7417_v12  ;;  %v1083_v45 = vmul.f32 %v7264_v56, %v5115_v37  ;;  %v5125_v22 = vadd.f32 %v1003_v0, %v7420_v48  ;;  %v5128_v57 = vadd.f32 %v1004_v43, %v7421_v39 }
 0x113   :  { %v5130_v30 = vadd.f32 %v796_v3, %v795_v4  ;;  %v1615_v51 = vadd.f32 %v1583_v14, %v1533_v62  ;;  %v1616_v38 = vadd.f32 %v1584_v32, %v1534_v9  ;;  %v327_v31 = vadd.f32 %v7423_v21, %v215_v42  ;;  %v7424_v4 = vld [vmem:[#allocation89_spill] sm:$0xff]  ;;  %v5144_v32 = vpop.permute.xlu1 %158 }
 0x114   :  { %v328_v23 = vadd.f32 %v7423_v21, %v216_v53  ;;  %v1084_v13 = vmul.f32 %v7265_v44, %v5115_v37  ;;  %v5137_v54 = vadd.f32 %v1083_v45, %v5004_v41  ;;  %v1936_v0 = vmul.f32 %v7311_v18, %v5115_v37  ;;  %7425 = vst [vmem:[#allocation71_spill] sm:$0xff] %v5144_v32  ;;  %v7426_v62 = vld [vmem:[#allocation13_spill] sm:$0xff]  ;;  %v7427_v41 = vld [vmem:[#allocation14_spill] sm:$0xff] }
 0x115   :  { %7422 = vst [vmem:[#allocation60_spill] sm:$0xff] %v5130_v30  ;;  %v1937_v39 = vmul.f32 %v7312_v27, %v5115_v37  ;;  %2107 = vadd.xlane.f32.xlu0 %v7424_v4  ;;  %v1647_v43 = vmax.f32 %v1615_v51, 0.0  ;;  %v1648_v3 = vmax.f32 %v1616_v38, 0.0  ;;  %v473_v14 = vadd.f32 %v441_v46, %v327_v31  ;;  %v7429_v51 = vld [vmem:[#allocation67_spill] sm:$0xff]  ;;  %v7430_v38 = vld [vmem:[#allocation20_spill] sm:$0xff]  ;;  %v7432_v31 = vld [vmem:[#allocation85_spill] sm:$0xff] }
 0x116   :  { %v474_v42 = vadd.f32 %v442_v35, %v328_v23  ;;  %v587_v53 = vmul.f32 %v7426_v62, %v4886_v11  ;;  %v588_v9 = vmul.f32 %v7427_v41, %v4886_v11  ;;  %v733_v45 = vmul.f32 %v7377_v20, %v5012_v52  ;;  %v7431_v23 = vld [vmem:[#allocation21_spill] sm:$0xff]  ;;  %v7433_v4 = vld [vmem:[#allocation22_spill] sm:$0xff]  ;;  %v7434_v11 = vld [vmem:[#allocation23_spill] sm:$0xff] }
 0x117   :  { %v734_v48 = vmul.f32 %v7378_v19, %v5012_v52  ;;  %v5154_v30 = vadd.f32 %v1648_v3, %v1647_v43  ;;  %v1339_v46 = vmul.f32 %v7430_v38, %v7429_v51  ;;  %v1340_v35 = vmul.f32 %v7431_v23, %v7429_v51  ;;  %v7436_v43 = vld [vmem:[#allocation79_spill] sm:$0xff] }
 0x118   :  { %v1421_v37 = vmul.f32 %v7433_v4, %v7432_v31  ;;  %v619_v27 = vadd.f32 %v587_v53, %v473_v14  ;;  %v620_v18 = vadd.f32 %v588_v9, %v474_v42  ;;  %v1422_v12 = vmul.f32 %v7434_v11, %v7432_v31  ;;  %v5173_v14 = vpop.permute.xlu1 %284  ;;  %v7438_v31 = vld [vmem:[#allocation44_spill] sm:$0xff] }
 0x119   :  { %7428 = vst [vmem:[#allocation72_spill] sm:$0xff] %v5154_v30  ;;  %v1503_v21 = vmul.f32 %v7405_v29, %v7435_v58  ;;  %1263 = vadd.xlane.f32.xlu0 %v5061_v47  ;;  %v1371_v3 = vadd.f32 %v1339_v46, %v7436_v43  ;;  %v1372_v30 = vadd.f32 %v1340_v35, %v7436_v43  ;;  %7437 = vst [vmem:[#allocation88_spill] sm:$0xff] %v5173_v14 }
 0x11a   :  { %v1504_v51 = vmul.f32 %v7408_v33, %v7435_v58  ;;  %v1585_v52 = vmul.f32 %v7411_v49, %v4920_v2  ;;  %v765_v42 = vadd.f32 %v733_v45, %v619_v27  ;;  %v766_v53 = vadd.f32 %v734_v48, %v620_v18  ;;  %v7439_v27 = vld [vmem:[#allocation93_spill] sm:$0xff] }
 0x11b   :  { %v1586_v9 = vmul.f32 %v7412_v55, %v4920_v2  ;;  %v217_v47 = vmul.f32 %v7414_v61, %v7438_v31  ;;  %v955_v46 = vadd.f32 %v5053_v50, %v5173_v14  ;;  %v956_v35 = vadd.f32 %v5057_v60, %v5173_v14  ;;  %v7440_v2 = vld [vmem:[#allocation56_spill] sm:$0xff]  ;;  %v7441_v61 = vld [vmem:[#allocation57_spill] sm:$0xff] }
 0x11c   :  { %v1453_v58 = vadd.f32 %v1421_v37, %v1371_v3  ;;  %v1454_v43 = vadd.f32 %v1422_v12, %v1372_v30  ;;  %v1116_v49 = vadd.f32 %v1084_v13, %v5006_v24  ;;  %v797_v33 = vmax.f32 %v765_v42, 0.0  ;;  %v7442_v37 = vld [vmem:[#allocation24_spill] sm:$0xff]  ;;  %v5195_v12 = vpop.permute.xlu1 %528  ;;  %v7444_v30 = vld [vmem:[#allocation74_spill] sm:$0xff]  ;;  %v7472_v14 = vld [vmem:[#allocation33_spill] sm:$0xff] }
 0x11d   :  { %v218_v18 = vmul.f32 %v7415_v25, %v7438_v31  ;;  %v329_v45 = vadd.f32 %v7439_v27, %v217_v47  ;;  %2110 = vadd.xlane.f32.xlu0 %v4970_v10  ;;  %v1037_v48 = vadd.f32 %v7440_v2, %v955_v46  ;;  %v1038_v55 = vadd.f32 %v7441_v61, %v956_v35  ;;  %v7445_v10 = vld [vmem:[#allocation49_spill] sm:$0xff] }
 0x11e   :  { %v1535_v50 = vadd.f32 %v1503_v21, %v1453_v58  ;;  %v1536_v29 = vadd.f32 %v1504_v51, %v1454_v43  ;;  %v798_v11 = vmax.f32 %v766_v53, 0.0  ;;  %v443_v24 = vmul.f32 %v7418_v28, %v7442_v37  ;;  %7443 = vst [vmem:[#allocation75_spill] sm:$0xff] %v5195_v12 }
 0x11f   :  { %v330_v60 = vadd.f32 %v7439_v27, %v218_v18  ;;  %v444_v13 = vmul.f32 %v7419_v34, %v7442_v37  ;;  %v1119_v3 = vadd.f32 %v7444_v30, %v1037_v48  ;;  %v1120_v42 = vadd.f32 %v7445_v10, %v1038_v55 }
 0x120   :  { %v1617_v47 = vadd.f32 %v1585_v52, %v1535_v50  ;;  %v1618_v46 = vadd.f32 %v1586_v9, %v1536_v29  ;;  %v1085_v61 = vmul.f32 %v7264_v56, %v5195_v12  ;;  %v1086_v21 = vmul.f32 %v7265_v44, %v5195_v12  ;;  %v7446_v9 = vld [vmem:[#allocation92_spill] sm:$0xff]  ;;  %v7477_v44 = vld [vmem:[#allocation18_spill] sm:$0xff] }
 0x121   :  { %v475_v51 = vadd.f32 %v443_v24, %v329_v45  ;;  %v476_v53 = vadd.f32 %v444_v13, %v330_v60  ;;  %1266 = vadd.xlane.f32.xlu0 %v4984_v5  ;;  %v1201_v35 = vadd.f32 %v5034_v59, %v1119_v3  ;;  %v1202_v58 = vadd.f32 %v5044_v6, %v1120_v42 }
 0x122   :  { %v1968_v43 = vadd.f32 %v1936_v0, %v5092_v16  ;;  %v1969_v55 = vadd.f32 %v1937_v39, %v5108_v36  ;;  %v1649_v52 = vmax.f32 %v1617_v47, 0.0  ;;  %v1650_v29 = vmax.f32 %v1618_v46, 0.0  ;;  %v5222_v16 = vpop.permute.xlu1 %670 }
 0x123   :  { %v589_v18 = vmul.f32 %v7426_v62, %v7446_v9  ;;  %v590_v2 = vmul.f32 %v7427_v41, %v7446_v9  ;;  %v5213_v45 = vadd.f32 %v1085_v61, %v5125_v22  ;;  %v5216_v5 = vadd.f32 %v1086_v21, %v5128_v57 }
 0x124   :  { %v5218_v59 = vadd.f32 %v798_v11, %v797_v33  ;;  %v735_v6 = vmul.f32 %v7377_v20, %v4922_v15  ;;  %v1233_v36 = vmax.f32 %v1201_v35, 0.0  ;;  %v736_v48 = vmul.f32 %v7378_v19, %v4922_v15 }
 0x125   :  { %v621_v0 = vadd.f32 %v589_v18, %v475_v51  ;;  %v622_v39 = vadd.f32 %v590_v2, %v476_v53  ;;  %2113 = vadd.xlane.f32.xlu0 %v4994_v7  ;;  %v1165_v22 = vmul.f32 %v7360_v40, %v5222_v16  ;;  %v1166_v11 = vmul.f32 %v7361_v63, %v5222_v16 }
 0x126   :  { %7447 = vst [vmem:[#allocation50_spill] sm:$0xff] %v5218_v59  ;;  %v1234_v33 = vmax.f32 %v1202_v58, 0.0  ;;  %v2018_v57 = vmul.f32 %v7363_v8, %v5222_v16  ;;  %v2019_v50 = vmul.f32 %v7364_v26, %v5222_v16  ;;  %v5235_v60 = vadd.f32 %v1650_v29, %v1649_v52  ;;  %v5242_v21 = vpop.permute.xlu1 %289  ;;  %v7450_v58 = vld [vmem:[#allocation70_spill] sm:$0xff] }
 0x127   :  { %v767_v24 = vadd.f32 %v735_v6, %v621_v0  ;;  %v768_v13 = vadd.f32 %v736_v48, %v622_v39  ;;  %v1197_v30 = vadd.f32 %v1165_v22, %v5137_v54  ;;  %v1198_v7 = vadd.f32 %v1166_v11, %v1116_v49  ;;  %7449 = vst [vmem:[#allocation69_spill] sm:$0xff] %v5242_v21  ;;  %v7453_v0 = vld [vmem:[#allocation23_spill] sm:$0xff]  ;;  %v7456_v11 = vld [vmem:[#allocation25_spill] sm:$0xff] }
 0x128   :  { %7448 = vst [vmem:[#allocation94_spill] sm:$0xff] %v5235_v60  ;;  %v2050_v3 = vadd.f32 %v2018_v57, %v1968_v43  ;;  %v1341_v10 = vmul.f32 %v7430_v38, %v7413_v17  ;;  %v2051_v42 = vadd.f32 %v2019_v50, %v1969_v55  ;;  %v1342_v61 = vmul.f32 %v7431_v23, %v7413_v17  ;;  %v7451_v55 = vld [vmem:[#allocation17_spill] sm:$0xff]  ;;  %v7452_v17 = vld [vmem:[#allocation91_spill] sm:$0xff]  ;;  %v7457_v57 = vld [vmem:[#allocation26_spill] sm:$0xff] }
 0x129   :  { %v799_v47 = vmax.f32 %v767_v24, 0.0  ;;  %v800_v46 = vmax.f32 %v768_v13, 0.0  ;;  %v1229_v51 = vmax.f32 %v1197_v30, 0.0  ;;  %v1230_v53 = vmax.f32 %v1198_v7, 0.0  ;;  %v7458_v30 = vld [vmem:[#allocation61_spill] sm:$0xff] }
 0x12a   :  { %v925_v35 = vmul.f32 %v7390_v1, %v5144_v32  ;;  %v1373_v54 = vadd.f32 %v1341_v10, %v7450_v58  ;;  %v5247_v49 = vadd.f32 %v1234_v33, %v1233_v36  ;;  %v2082_v43 = vmax.f32 %v2050_v3, 0.0  ;;  %v7455_v36 = vld [vmem:[#allocation97_spill] sm:$0xff] }
 0x12b   :  { %v2083_v52 = vmax.f32 %v2051_v42, 0.0  ;;  %v926_v29 = vmul.f32 %v7451_v55, %v5144_v32  ;;  %v1268_v18 = vadd.f32 %v1230_v53, %v1229_v51  ;;  %v1374_v2 = vadd.f32 %v1342_v61, %v7450_v58  ;;  %v7459_v7 = vld [vmem:[#allocation37_spill] sm:$0xff]  ;;  %v7461_v42 = vld [vmem:[#allocation27_spill] sm:$0xff]  ;;  %v7463_v51 = vld [vmem:[#allocation38_spill] sm:$0xff] }
 0x12c   :  { %v1423_v6 = vmul.f32 %v7433_v4, %v7452_v17  ;;  %v1424_v39 = vmul.f32 %v7453_v0, %v7452_v17  ;;  %v5256_v48 = vadd.f32 %v800_v46, %v799_v47  ;;  %v957_v22 = vadd.f32 %v925_v35, %v5242_v21  ;;  %v7460_v10 = vld [vmem:[#allocation77_spill] sm:$0xff]  ;;  %v5268_v47 = vpop.permute.xlu1 %390  ;;  %v7464_v35 = vld [vmem:[#allocation28_spill] sm:$0xff]  ;;  %v7465_v17 = vld [vmem:[#allocation35_spill] sm:$0xff] }
 0x12d   :  { %v1505_v33 = vmul.f32 %v7456_v11, %v7455_v36  ;;  %v1506_v50 = vmul.f32 %v7457_v57, %v7455_v36  ;;  %1269 = vadd.xlane.f32.xlu0 %v1268_v18  ;;  %v958_v24 = vadd.f32 %v926_v29, %v5242_v21  ;;  %v1587_v3 = vmul.f32 %v7459_v7, %v7458_v30  ;;  %v7466_v18 = vld [vmem:[#allocation29_spill] sm:$0xff]  ;;  %v7469_v21 = vld [vmem:[#allocation8_spill] sm:$0xff]  ;;  %v7470_v32 = vld [vmem:[#allocation30_spill] sm:$0xff] }
 0x12e   :  { %7454 = vst [vmem:[#allocation95_spill] sm:$0xff] %v5256_v48  ;;  %v1455_v13 = vadd.f32 %v1423_v6, %v1373_v54  ;;  %v1774_v61 = vmul.f32 %v7461_v42, %v7460_v10  ;;  %7462 = vst [vmem:[#allocation96_spill] sm:$0xff] %v5268_v47  ;;  %v1456_v46 = vadd.f32 %v1424_v39, %v1374_v2  ;;  %v7468_v54 = vld [vmem:[#allocation7_spill] sm:$0xff]  ;;  %v7473_v42 = vld [vmem:[#allocation66_spill] sm:$0xff] }
 0x12f   :  { %v1588_v53 = vmul.f32 %v7463_v51, %v7458_v30  ;;  %v1775_v58 = vmul.f32 %v7464_v35, %v7460_v10  ;;  %v1856_v36 = vmul.f32 %v7466_v18, %v7465_v17  ;;  %v5276_v29 = vadd.f32 %v2083_v52, %v2082_v43  ;;  %v7471_v30 = vld [vmem:[#allocation3_spill] sm:$0xff] }
 0x130   :  { %v1007_v6 = vmul.f32 %v7468_v54, %v5268_v47  ;;  %v1008_v48 = vmul.f32 %v7469_v21, %v5268_v47  ;;  %v1857_v2 = vmul.f32 %v7470_v32, %v7465_v17  ;;  %v1537_v39 = vadd.f32 %v1505_v33, %v1455_v13  ;;  %v7476_v47 = vld [vmem:[#allocation42_spill] sm:$0xff] }
 0x131   :  { %7467 = vst [vmem:[#allocation45_spill] sm:$0xff] %v5276_v29  ;;  %v1538_v60 = vadd.f32 %v1506_v50, %v1456_v46  ;;  %v1806_v59 = vadd.f32 %v1774_v61, %v7471_v30  ;;  %v1938_v35 = vmul.f32 %v7472_v14, %v5195_v12  ;;  %2116 = vadd.xlane.f32.xlu0 %v7473_v42  ;;  %v7475_v29 = vld [vmem:[#allocation34_spill] sm:$0xff]  ;;  %v5301_v61 = vpop.permute.xlu1 %674  ;;  %v7480_v46 = vld [vmem:[#allocation55_spill] sm:$0xff] }
 0x132   :  { %v5288_v43 = vadd.f32 %v1007_v6, %v957_v22  ;;  %v1807_v52 = vadd.f32 %v1775_v58, %v7471_v30  ;;  %v1939_v18 = vmul.f32 %v7475_v29, %v5195_v12  ;;  %v219_v56 = vmul.f32 %v7477_v44, %v7476_v47  ;;  %7479 = vst [vmem:[#allocation52_spill] sm:$0xff] %v5301_v61 }
 0x133   :  { %v5295_v32 = vadd.f32 %v1008_v48, %v958_v24  ;;  %v5297_v33 = vadd.f32 %v1587_v3, %v1537_v39  ;;  %v5299_v50 = vadd.f32 %v1588_v53, %v1538_v60  ;;  %v1888_v13 = vadd.f32 %v1856_v36, %v1806_v59  ;;  %v7481_v59 = vld [vmem:[#allocation54_spill] sm:$0xff]  ;;  %v7482_v53 = vld [vmem:[#allocation64_spill] sm:$0xff] }
 0x134   :  { %7474 = vst [vmem:[#allocation84_spill] sm:$0xff] %v5288_v43  ;;  %v1889_v42 = vadd.f32 %v1857_v2, %v1807_v52  ;;  %v220_v22 = vmul.f32 %v7415_v25, %v7476_v47  ;;  %v445_v58 = vmul.f32 %v7418_v28, %v7480_v46  ;;  %v446_v6 = vmul.f32 %v7419_v34, %v7480_v46 }
 0x135   :  { %7478 = vst [vmem:[#allocation51_spill] sm:$0xff] %v5295_v32  ;;  %v1167_v48 = vmul.f32 %v7360_v40, %v5301_v61  ;;  %v1168_v60 = vmul.f32 %v7361_v63, %v5301_v61  ;;  %v1970_v24 = vadd.f32 %v1938_v35, %v1888_v13  ;;  %v331_v3 = vadd.f32 %v7481_v59, %v219_v56  ;;  %v7483_v63 = vld [vmem:[#allocation59_spill] sm:$0xff] }
 0x136   :  { %820 = vadd.xlane.f32.xlu1 %v7482_v53  ;;  %v1971_v36 = vadd.f32 %v1939_v18, %v1889_v42  ;;  %v2020_v2 = vmul.f32 %v7363_v8, %v5301_v61  ;;  %v2021_v39 = vmul.f32 %v7364_v26, %v5301_v61  ;;  %v332_v52 = vadd.f32 %v7481_v59, %v220_v22  ;;  %v5326_v42 = vpop.permute.xlu1 %168  ;;  %v7485_v22 = vld [vmem:[#allocation86_spill] sm:$0xff] }
 0x137   :  { %v1199_v32 = vadd.f32 %v1167_v48, %v5213_v45  ;;  %v1200_v40 = vadd.f32 %v1168_v60, %v5216_v5  ;;  %v477_v43 = vadd.f32 %v445_v58, %v331_v3  ;;  %v591_v35 = vmul.f32 %v7426_v62, %v7483_v63  ;;  %7484 = vst [vmem:[#allocation53_spill] sm:$0xff] %v5326_v42 }
 0x138   :  { %v2052_v56 = vadd.f32 %v2020_v2, %v1970_v24  ;;  %v2053_v13 = vadd.f32 %v2021_v39, %v1971_v36  ;;  %v478_v53 = vadd.f32 %v446_v6, %v332_v52  ;;  %v592_v18 = vmul.f32 %v7427_v41, %v7483_v63 }
 0x139   :  { %v1231_v46 = vmax.f32 %v1199_v32, 0.0  ;;  %v1232_v47 = vmax.f32 %v1200_v40, 0.0  ;;  %v623_v26 = vadd.f32 %v591_v35, %v477_v43  ;;  %v737_v45 = vmul.f32 %v7377_v20, %v5222_v16 }
 0x13a   :  { %1251 = vadd.xlane.f32.xlu1 %v7485_v22  ;;  %v1651_v5 = vmax.f32 %v5297_v33, 0.0  ;;  %v1652_v58 = vmax.f32 %v5299_v50, 0.0  ;;  %v624_v48 = vadd.f32 %v592_v18, %v478_v53  ;;  %v738_v6 = vmul.f32 %v7378_v19, %v5222_v16 }
 0x13b   :  { %v1271_v60 = vadd.f32 %v1232_v47, %v1231_v46  ;;  %v769_v24 = vadd.f32 %v737_v45, %v623_v26  ;;  %v1343_v32 = vmul.f32 %v7430_v38, %v7438_v31  ;;  %v1344_v40 = vmul.f32 %v7431_v23, %v7438_v31  ;;  %v5347_v46 = vpop.permute.xlu1 %394  ;;  %v7487_v31 = vld [vmem:[#allocation90_spill] sm:$0xff] }
 0x13c   :  { %v2084_v43 = vmax.f32 %v2052_v56, 0.0  ;;  %v2085_v3 = vmax.f32 %v2053_v13, 0.0  ;;  %v770_v36 = vadd.f32 %v738_v6, %v624_v48  ;;  %v1425_v33 = vmul.f32 %v7433_v4, %v7442_v37  ;;  %7486 = vst [vmem:[#allocation68_spill] sm:$0xff] %v5347_v46  ;;  %v7489_v6 = vld [vmem:[#allocation65_spill] sm:$0xff] }
 0x13d   :  { %1272 = vadd.xlane.f32.xlu0 %v1271_v60  ;;  %v1375_v50 = vadd.f32 %v1343_v32, %v7439_v27  ;;  %v1376_v2 = vadd.f32 %v1344_v40, %v7439_v27  ;;  %v1426_v26 = vmul.f32 %v7453_v0, %v7442_v37  ;;  %v1507_v47 = vmul.f32 %v7456_v11, %v7446_v9  ;;  %v7488_v37 = vld [vmem:[#allocation78_spill] sm:$0xff] }
 0x13e   :  { %826 = vadd.xlane.f32.xlu1 %v7487_v31  ;;  %v801_v39 = vmax.f32 %v769_v24, 0.0  ;;  %v1508_v52 = vmul.f32 %v7457_v57, %v7446_v9  ;;  %v1589_v35 = vmul.f32 %v7459_v7, %v4922_v15  ;;  %v1590_v27 = vmul.f32 %v7463_v51, %v4922_v15  ;;  %v7491_v32 = vld [vmem:[#allocation82_spill] sm:$0xff] }
 0x13f   :  { %v1457_v56 = vadd.f32 %v1425_v33, %v1375_v50  ;;  %v1458_v13 = vadd.f32 %v1426_v26, %v1376_v2  ;;  %v927_v53 = vmul.f32 %v7390_v1, %v7488_v37  ;;  %v928_v18 = vmul.f32 %v7451_v55, %v7488_v37  ;;  %v7492_v33 = vld [vmem:[#allocation46_spill] sm:$0xff]  ;;  %v5378_v31 = vpop.permute.xlu1 %536 }
 0x140   :  { %v802_v45 = vmax.f32 %v770_v36, 0.0  ;;  %v1009_v22 = vmul.f32 %v7468_v54, %v5347_v46  ;;  %v1010_v9 = vmul.f32 %v7469_v21, %v5347_v46  ;;  %v221_v48 = vmul.f32 %v7477_v44, %v7460_v10  ;;  %7493 = vst [vmem:[#allocation11_spill] sm:$0xff] %v5378_v31  ;;  %v7503_v46 = vld [vmem:[#allocation39_spill] sm:$0xff] }
 0x141   :  { %2119 = vadd.xlane.f32.xlu0 %v7489_v6  ;;  %v5367_v15 = vadd.f32 %v1652_v58, %v1651_v5  ;;  %v1539_v60 = vadd.f32 %v1507_v47, %v1457_v56  ;;  %v1540_v24 = vadd.f32 %v1508_v52, %v1458_v13  ;;  %v959_v40 = vadd.f32 %v927_v53, %v7491_v32  ;;  %v7496_v6 = vld [vmem:[#allocation9_spill] sm:$0xff] }
 0x142   :  { %1677 = vadd.xlane.f32.xlu1 %v7492_v33  ;;  %v960_v36 = vadd.f32 %v928_v18, %v7491_v32  ;;  %v222_v50 = vmul.f32 %v7415_v25, %v7460_v10  ;;  %v447_v2 = vmul.f32 %v7418_v28, %v7465_v17  ;;  %v448_v26 = vmul.f32 %v7419_v34, %v7465_v17 }
 0x143   :  { %7490 = vst [vmem:[#allocation19_spill] sm:$0xff] %v5367_v15  ;;  %v5380_v5 = vadd.f32 %v2085_v3, %v2084_v43  ;;  %v1621_v58 = vadd.f32 %v1589_v35, %v1539_v60  ;;  %v1622_v47 = vadd.f32 %v1590_v27, %v1540_v24  ;;  %v333_v52 = vadd.f32 %v7471_v30, %v221_v48  ;;  %v7498_v35 = vld [vmem:[#allocation10_spill] sm:$0xff]  ;;  %v7499_v24 = vld [vmem:[#allocation63_spill] sm:$0xff]  ;;  %v7511_v15 = vld [vmem:[#allocation41_spill] sm:$0xff] }
 0x144   :  { %v5383_v56 = vadd.f32 %v802_v45, %v801_v39  ;;  %v5385_v13 = vadd.f32 %v1009_v22, %v959_v40  ;;  %v5387_v53 = vadd.f32 %v1010_v9, %v960_v36  ;;  %v334_v18 = vadd.f32 %v7471_v30, %v222_v50  ;;  %v7497_v39 = vld [vmem:[#allocation83_spill] sm:$0xff]  ;;  %v5406_v50 = vpop.permute.xlu1 %173 }
 0x145   :  { %7494 = vst [vmem:[#allocation12_spill] sm:$0xff] %v5380_v5  ;;  %1275 = vadd.xlane.f32.xlu0 %v5247_v49  ;;  %v1089_v33 = vmul.f32 %v7496_v6, %v5378_v31  ;;  %v479_v32 = vadd.f32 %v447_v2, %v333_v52  ;;  %v593_v43 = vmul.f32 %v7426_v62, %v5195_v12  ;;  %v1653_v45 = vmax.f32 %v1621_v58, 0.0  ;;  %v7500_v40 = vld [vmem:[#allocation27_spill] sm:$0xff]  ;;  %v7502_v52 = vld [vmem:[#allocation28_spill] sm:$0xff]  ;;  %v7504_v58 = vld [vmem:[#allocation29_spill] sm:$0xff] }
 0x146   :  { %7495 = vst [vmem:[#allocation80_spill] sm:$0xff] %v5383_v56  ;;  %v594_v3 = vmul.f32 %v7427_v41, %v5195_v12  ;;  %829 = vadd.xlane.f32.xlu1 %v7497_v39  ;;  %v1090_v27 = vmul.f32 %v7498_v35, %v5378_v31  ;;  %v480_v22 = vadd.f32 %v448_v26, %v334_v18  ;;  %v1654_v9 = vmax.f32 %v1622_v47, 0.0  ;;  %v7505_v18 = vld [vmem:[#allocation30_spill] sm:$0xff]  ;;  %v7506_v47 = vld [vmem:[#allocation45_spill] sm:$0xff] }
 0x147   :  { %v739_v49 = vmul.f32 %v7377_v20, %v5301_v61  ;;  %v625_v48 = vadd.f32 %v593_v43, %v479_v32  ;;  %v740_v60 = vmul.f32 %v7378_v19, %v5301_v61  ;;  %v1776_v36 = vmul.f32 %v7500_v40, %v7499_v24  ;;  %7501 = vst [vmem:[#allocation81_spill] sm:$0xff] %v5406_v50  ;;  %v7507_v43 = vld [vmem:[#allocation88_spill] sm:$0xff]  ;;  %v7510_v12 = vld [vmem:[#allocation62_spill] sm:$0xff] }
 0x148   :  { %v626_v2 = vadd.f32 %v594_v3, %v480_v22  ;;  %v1777_v39 = vmul.f32 %v7502_v52, %v7499_v24  ;;  %v1858_v26 = vmul.f32 %v7504_v58, %v7503_v46  ;;  %v1859_v37 = vmul.f32 %v7505_v18, %v7503_v46  ;;  %v7508_v61 = vld [vmem:[#allocation76_spill] sm:$0xff] }
 0x149   :  { %2122 = vadd.xlane.f32.xlu0 %v7506_v47  ;;  %v771_v32 = vadd.f32 %v739_v49, %v625_v48  ;;  %v1808_v56 = vadd.f32 %v1776_v36, %v7507_v43  ;;  %v1940_v30 = vmul.f32 %v7472_v14, %v7508_v61  ;;  %v1941_v3 = vmul.f32 %v7475_v29, %v7508_v61  ;;  %v7509_v22 = vld [vmem:[#allocation36_spill] sm:$0xff]  ;;  %v7512_v36 = vld [vmem:[#allocation42_spill] sm:$0xff]  ;;  %v5430_v29 = vpop.permute.xlu1 %299 }
 0x14a   :  { %1680 = vadd.xlane.f32.xlu1 %v7509_v22  ;;  %v772_v50 = vadd.f32 %v740_v60, %v626_v2  ;;  %v1809_v5 = vadd.f32 %v1777_v39, %v7507_v43  ;;  %v2022_v17 = vmul.f32 %v7363_v8, %v7510_v12  ;;  %v2023_v47 = vmul.f32 %v7511_v15, %v7510_v12  ;;  %v7514_v2 = vld [vmem:[#allocation55_spill] sm:$0xff] }
 0x14b   :  { %v803_v49 = vmax.f32 %v771_v32, 0.0  ;;  %v1890_v48 = vadd.f32 %v1858_v26, %v1808_v56  ;;  %v1345_v10 = vmul.f32 %v7430_v38, %v7512_v36  ;;  %v1346_v14 = vmul.f32 %v7431_v23, %v7512_v36  ;;  %7513 = vst [vmem:[#allocation89_spill] sm:$0xff] %v5430_v29  ;;  %v7515_v38 = vld [vmem:[#allocation60_spill] sm:$0xff] }
 0x14c   :  { %v804_v22 = vmax.f32 %v772_v50, 0.0  ;;  %v1891_v60 = vadd.f32 %v1859_v37, %v1809_v5  ;;  %v1427_v39 = vmul.f32 %v7433_v4, %v7514_v2  ;;  %v1428_v8 = vmul.f32 %v7453_v0, %v7514_v2  ;;  %v7516_v36 = vld [vmem:[#allocation84_spill] sm:$0xff]  ;;  %v7517_v50 = vld [vmem:[#allocation51_spill] sm:$0xff] }
 0x14d   :  { %v1972_v31 = vadd.f32 %v1940_v30, %v1890_v48  ;;  %v1377_v32 = vadd.f32 %v1345_v10, %v7481_v59  ;;  %v1378_v56 = vadd.f32 %v1346_v14, %v7481_v59  ;;  %v1509_v26 = vmul.f32 %v7456_v11, %v7483_v63 }
 0x14e   :  { %832 = vadd.xlane.f32.xlu1 %v7515_v38  ;;  %v1121_v23 = vadd.f32 %v1089_v33, %v7516_v36  ;;  %v1122_v37 = vadd.f32 %v1090_v27, %v7517_v50  ;;  %v1973_v5 = vadd.f32 %v1941_v3, %v1891_v60  ;;  %v1510_v4 = vmul.f32 %v7457_v57, %v7483_v63  ;;  %v5453_v27 = vpop.permute.xlu1 %540  ;;  %v7518_v60 = vld [vmem:[#allocation72_spill] sm:$0xff] }
 0x14f   :  { %v1459_v15 = vadd.f32 %v1427_v39, %v1377_v32  ;;  %v1460_v2 = vadd.f32 %v1428_v8, %v1378_v56  ;;  %v1591_v10 = vmul.f32 %v7459_v7, %v5222_v16  ;;  %v1592_v14 = vmul.f32 %v7463_v51, %v5222_v16  ;;  %v7520_v56 = vld [vmem:[#allocation48_spill] sm:$0xff] }
 0x150   :  { %v5449_v30 = vadd.f32 %v1654_v9, %v1653_v45  ;;  %v2054_v59 = vadd.f32 %v2022_v17, %v1972_v31  ;;  %v2055_v38 = vadd.f32 %v2023_v47, %v1973_v5  ;;  %v929_v33 = vmul.f32 %v7390_v1, %v5326_v42  ;;  %v7519_v45 = vld [vmem:[#allocation47_spill] sm:$0xff] }
 0x151   :  { %v5455_v3 = vadd.f32 %v804_v22, %v803_v49  ;;  %v1541_v63 = vadd.f32 %v1509_v26, %v1459_v15  ;;  %v1542_v48 = vadd.f32 %v1510_v4, %v1460_v2  ;;  %v930_v8 = vmul.f32 %v7451_v55, %v5326_v42  ;;  %v7538_v42 = vld [vmem:[#allocation20_spill] sm:$0xff] }
 0x152   :  { %1683 = vadd.xlane.f32.xlu1 %v7518_v60  ;;  %v1091_v16 = vmul.f32 %v7496_v6, %v5453_v27  ;;  %v1092_v17 = vmul.f32 %v7498_v35, %v5453_v27  ;;  %v961_v31 = vadd.f32 %v929_v33, %v5430_v29  ;;  %v1011_v9 = vmul.f32 %v7468_v54, %v7519_v45 }
 0x153   :  { %v1623_v47 = vadd.f32 %v1591_v10, %v1541_v63  ;;  %v1624_v49 = vadd.f32 %v1592_v14, %v1542_v48  ;;  %v962_v4 = vadd.f32 %v930_v8, %v5430_v29  ;;  %v1012_v15 = vmul.f32 %v7469_v21, %v7519_v45  ;;  %v5480_v10 = vpop.permute.xlu0 %690  ;;  %v5482_v14 = vpop.permute.xlu1 %682  ;;  %v7523_v48 = vld [vmem:[#allocation31_spill] sm:$0xff]  ;;  %v7524_v8 = vld [vmem:[#allocation32_spill] sm:$0xff] }
 0x154   :  { %v2086_v22 = vmax.f32 %v2054_v59, 0.0  ;;  %v2087_v39 = vmax.f32 %v2055_v38, 0.0  ;;  %v1043_v32 = vadd.f32 %v1011_v9, %v961_v31  ;;  %v1093_v26 = vmul.f32 %v7496_v6, %v7520_v56  ;;  %7521 = vst [vmem:[#allocation13_spill] sm:$0xff] %v5480_v10  ;;  %v7522_v59 = vld [vmem:[#allocation50_spill] sm:$0xff]  ;;  %v7541_v21 = vld [vmem:[#allocation35_spill] sm:$0xff] }
 0x155   :  { %v5473_v36 = vadd.f32 %v1091_v16, %v5385_v13  ;;  %v5476_v50 = vadd.f32 %v1092_v17, %v5387_v53  ;;  %v1044_v5 = vadd.f32 %v1012_v15, %v962_v4  ;;  %v1094_v2 = vmul.f32 %v7498_v35, %v7520_v56 }
 0x156   :  { %835 = vadd.xlane.f32.xlu1 %v7522_v59  ;;  %v1655_v38 = vmax.f32 %v1623_v47, 0.0  ;;  %v1656_v33 = vmax.f32 %v1624_v49, 0.0  ;;  %v1125_v63 = vadd.f32 %v1093_v26, %v1043_v32  ;;  %v223_v13 = vmul.f32 %v7477_v44, %v7499_v24 }
 0x157   :  { %v1171_v53 = vmul.f32 %v7523_v48, %v5482_v14  ;;  %v1172_v60 = vmul.f32 %v7524_v8, %v5482_v14  ;;  %v1126_v16 = vadd.f32 %v1094_v2, %v1044_v5  ;;  %v1175_v17 = vmul.f32 %v7523_v48, %v5480_v10  ;;  %v7525_v5 = vld [vmem:[#allocation94_spill] sm:$0xff] }
 0x158   :  { %v5493_v31 = vadd.f32 %v2087_v39, %v2086_v22  ;;  %v224_v9 = vmul.f32 %v7415_v25, %v7499_v24  ;;  %v335_v47 = vadd.f32 %v7507_v43, %v223_v13  ;;  %v449_v49 = vmul.f32 %v7418_v28, %v7503_v46  ;;  %v5510_v13 = vpop.permute.xlu1 %304 }
 0x159   :  { %v1203_v4 = vadd.f32 %v1171_v53, %v1121_v23  ;;  %v1204_v15 = vadd.f32 %v1172_v60, %v1122_v37  ;;  %v1176_v32 = vmul.f32 %v7524_v8, %v5480_v10  ;;  %v5502_v26 = vadd.f32 %v1175_v17, %v1125_v63  ;;  %7526 = vst [vmem:[#allocation14_spill] sm:$0xff] %v5510_v13  ;;  %v7527_v10 = vld [vmem:[#allocation71_spill] sm:$0xff] }
 0x15a   :  { %1686 = vadd.xlane.f32.xlu1 %v7525_v5  ;;  %v336_v22 = vadd.f32 %v7507_v43, %v224_v9  ;;  %v450_v39 = vmul.f32 %v7419_v34, %v7503_v46  ;;  %v481_v2 = vadd.f32 %v449_v49, %v335_v47  ;;  %v595_v59 = vmul.f32 %v7426_v62, %v7508_v61 }
 0x15b   :  { %v1235_v23 = vmax.f32 %v1203_v4, 0.0  ;;  %v1236_v37 = vmax.f32 %v1204_v15, 0.0  ;;  %v5512_v53 = vadd.f32 %v1656_v33, %v1655_v38  ;;  %v5514_v60 = vadd.f32 %v1176_v32, %v1126_v16  ;;  %v7528_v33 = vld [vmem:[#allocation95_spill] sm:$0xff]  ;;  %v7529_v15 = vld [vmem:[#allocation96_spill] sm:$0xff] }
 0x15c   :  { %v482_v63 = vadd.f32 %v450_v39, %v336_v22  ;;  %v596_v17 = vmul.f32 %v7427_v41, %v7508_v61  ;;  %v627_v9 = vadd.f32 %v595_v59, %v481_v2  ;;  %v741_v5 = vmul.f32 %v7377_v20, %v7510_v12  ;;  %v7530_v39 = vld [vmem:[#allocation69_spill] sm:$0xff] }
 0x15d   :  { %v1277_v47 = vadd.f32 %v1236_v37, %v1235_v23  ;;  %v1778_v56 = vmul.f32 %v7500_v40, %v7527_v10  ;;  %v1779_v38 = vmul.f32 %v7502_v52, %v7527_v10  ;;  %v742_v4 = vmul.f32 %v7378_v19, %v7510_v12  ;;  %v7531_v23 = vld [vmem:[#allocation11_spill] sm:$0xff]  ;;  %v7532_v37 = vld [vmem:[#allocation33_spill] sm:$0xff] }
 0x15e   :  { %838 = vadd.xlane.f32.xlu1 %v7528_v33  ;;  %v628_v16 = vadd.f32 %v596_v17, %v482_v63  ;;  %v1860_v32 = vmul.f32 %v7504_v58, %v7529_v15  ;;  %v1861_v22 = vmul.f32 %v7505_v18, %v7529_v15  ;;  %v1942_v49 = vmul.f32 %v7532_v37, %v7531_v23  ;;  %v7533_v33 = vld [vmem:[#allocation34_spill] sm:$0xff]  ;;  %v5538_v17 = vpop.permute.xlu1 %402  ;;  %v7535_v58 = vld [vmem:[#allocation40_spill] sm:$0xff]  ;;  %v7539_v37 = vld [vmem:[#allocation21_spill] sm:$0xff] }
 0x15f   :  { %1278 = vadd.xlane.f32.xlu0 %v1277_v47  ;;  %v1810_v2 = vadd.f32 %v1778_v56, %v7530_v39  ;;  %v1811_v59 = vadd.f32 %v1779_v38, %v7530_v39  ;;  %v1943_v63 = vmul.f32 %v7533_v33, %v7531_v23  ;;  %7534 = vst [vmem:[#allocation67_spill] sm:$0xff] %v5538_v17  ;;  %v1240_v52 = vmax.f32 %v5514_v60, 0.0  ;;  %v7536_v47 = vld [vmem:[#allocation41_spill] sm:$0xff]  ;;  %v7540_v33 = vld [vmem:[#allocation19_spill] sm:$0xff]  ;;  %v7542_v60 = vld [vmem:[#allocation22_spill] sm:$0xff] }
 0x160   :  { %v773_v40 = vadd.f32 %v741_v5, %v627_v9  ;;  %v2024_v45 = vmul.f32 %v7535_v58, %v5482_v14  ;;  %v2025_v18 = vmul.f32 %v7536_v47, %v5482_v14  ;;  %v7537_v38 = vld [vmem:[#allocation77_spill] sm:$0xff]  ;;  %v774_v13 = vadd.f32 %v742_v4, %v628_v16  ;;  %v7543_v58 = vld [vmem:[#allocation75_spill] sm:$0xff]  ;;  %v7546_v4 = vld [vmem:[#allocation52_spill] sm:$0xff] }
 0x161   :  { %v1892_v56 = vadd.f32 %v1860_v32, %v1810_v2  ;;  %v1893_v29 = vadd.f32 %v1861_v22, %v1811_v59  ;;  %v1347_v35 = vmul.f32 %v7538_v42, %v7537_v38  ;;  %v1348_v6 = vmul.f32 %v7539_v37, %v7537_v38  ;;  %v7544_v32 = vld [vmem:[#allocation12_spill] sm:$0xff]  ;;  %v7545_v59 = vld [vmem:[#allocation3_spill] sm:$0xff] }
 0x162   :  { %1689 = vadd.xlane.f32.xlu1 %v7540_v33  ;;  %v1429_v9 = vmul.f32 %v7542_v60, %v7541_v21  ;;  %v1430_v5 = vmul.f32 %v7453_v0, %v7541_v21  ;;  %v1511_v47 = vmul.f32 %v7456_v11, %v7543_v58  ;;  %v805_v17 = vmax.f32 %v773_v40, 0.0  ;;  %v5565_v55 = vpop.permute.xlu1 %686 }
 0x163   :  { %2125 = vadd.xlane.f32.xlu0 %v7544_v32  ;;  %v1974_v22 = vadd.f32 %v1942_v49, %v1892_v56  ;;  %v1975_v2 = vadd.f32 %v1943_v63, %v1893_v29  ;;  %v1379_v54 = vadd.f32 %v1347_v35, %v7545_v59  ;;  %v1380_v38 = vadd.f32 %v1348_v6, %v7545_v59  ;;  %v7547_v63 = vld [vmem:[#allocation80_spill] sm:$0xff] }
 0x164   :  { %v1512_v16 = vmul.f32 %v7457_v57, %v7543_v58  ;;  %v1593_v33 = vmul.f32 %v7459_v7, %v7546_v4  ;;  %v1594_v21 = vmul.f32 %v7463_v51, %v7546_v4  ;;  %v1173_v6 = vmul.f32 %v7523_v48, %v5565_v55 }
 0x165   :  { %v2056_v1 = vadd.f32 %v2024_v45, %v1974_v22  ;;  %v2057_v32 = vadd.f32 %v2025_v18, %v1975_v2  ;;  %v1461_v49 = vadd.f32 %v1429_v9, %v1379_v54  ;;  %v1462_v29 = vadd.f32 %v1430_v5, %v1380_v38 }
 0x166   :  { %841 = vadd.xlane.f32.xlu1 %v7547_v63  ;;  %v1174_v35 = vmul.f32 %v7524_v8, %v5565_v55  ;;  %v806_v40 = vmax.f32 %v774_v13, 0.0  ;;  %v225_v58 = vmul.f32 %v7477_v44, %v7527_v10  ;;  %v226_v18 = vmul.f32 %v7415_v25, %v7527_v10 }
 0x167   :  { %v2088_v56 = vmax.f32 %v2056_v1, 0.0  ;;  %v1543_v59 = vadd.f32 %v1511_v47, %v1461_v49  ;;  %v1544_v4 = vadd.f32 %v1512_v16, %v1462_v29  ;;  %v1205_v54 = vadd.f32 %v1173_v6, %v5473_v36  ;;  %v5582_v1 = vpop.permute.xlu1 %183 }
 0x168   :  { %v1206_v45 = vadd.f32 %v1174_v35, %v5476_v50  ;;  %v2089_v9 = vmax.f32 %v2057_v32, 0.0  ;;  %v337_v5 = vadd.f32 %v7530_v39, %v225_v58  ;;  %v338_v13 = vadd.f32 %v7530_v39, %v226_v18  ;;  %7548 = vst [vmem:[#allocation85_spill] sm:$0xff] %v5582_v1 }
 0x169   :  { %v1625_v22 = vadd.f32 %v1593_v33, %v1543_v59  ;;  %v1626_v2 = vadd.f32 %v1594_v21, %v1544_v4  ;;  %v451_v38 = vmul.f32 %v7418_v28, %v7529_v15  ;;  %v1237_v47 = vmax.f32 %v1205_v54, 0.0 }
 0x16a   :  { %1692 = vadd.xlane.f32.xlu1 %v5449_v30  ;;  %v1238_v16 = vmax.f32 %v1206_v45, 0.0  ;;  %v452_v36 = vmul.f32 %v7419_v34, %v7529_v15  ;;  %v597_v50 = vmul.f32 %v7426_v62, %v7531_v23  ;;  %v7549_v33 = vmax.f32 %v5502_v26, 0.0 }
 0x16b   :  { %v846_v32 = vadd.f32 %v806_v40, %v805_v17  ;;  %v483_v49 = vadd.f32 %v451_v38, %v337_v5  ;;  %v598_v29 = vmul.f32 %v7427_v41, %v7531_v23  ;;  %v743_v30 = vmul.f32 %v7377_v20, %v5482_v14 }
 0x16c   :  { %v1283_v21 = vadd.f32 %v1240_v52, %v7549_v33  ;;  %v1280_v63 = vadd.f32 %v1238_v16, %v1237_v47  ;;  %v484_v6 = vadd.f32 %v452_v36, %v338_v13  ;;  %v744_v35 = vmul.f32 %v7378_v19, %v5482_v14  ;;  %v5604_v54 = vpop.permute.xlu1 %406  ;;  %v7550_v16 = vld [vmem:[#allocation78_spill] sm:$0xff]  ;;  %v7551_v36 = vld [vmem:[#allocation68_spill] sm:$0xff] }
 0x16d   :  { %v2130_v58 = vadd.f32 %v2089_v9, %v2088_v56  ;;  %v629_v59 = vadd.f32 %v597_v50, %v483_v49  ;;  %v1349_v4 = vmul.f32 %v7538_v42, %v7499_v24  ;;  %v1350_v52 = vmul.f32 %v7539_v37, %v7499_v24 }
 0x16e   :  { %1281 = vadd.xlane.f32.xlu0 %v1280_v63  ;;  %844 = vadd.xlane.f32.xlu1 %v5455_v3  ;;  %v1657_v26 = vmax.f32 %v1625_v22, 0.0  ;;  %v1658_v17 = vmax.f32 %v1626_v2, 0.0  ;;  %v630_v40 = vadd.f32 %v598_v29, %v484_v6  ;;  %v1431_v18 = vmul.f32 %v7542_v60, %v7503_v46  ;;  %v7552_v29 = vld [vmem:[#allocation82_spill] sm:$0xff] }
 0x16f   :  { %v775_v45 = vadd.f32 %v743_v30, %v629_v59  ;;  %v1381_v56 = vadd.f32 %v1349_v4, %v7507_v43  ;;  %v1382_v9 = vadd.f32 %v1350_v52, %v7507_v43  ;;  %v1432_v5 = vmul.f32 %v7453_v0, %v7503_v46 }
 0x170   :  { %v776_v24 = vadd.f32 %v744_v35, %v630_v40  ;;  %v1513_v3 = vmul.f32 %v7456_v11, %v7508_v61  ;;  %v1514_v22 = vmul.f32 %v7457_v57, %v7508_v61  ;;  %v1595_v2 = vmul.f32 %v7459_v7, %v7510_v12 }
 0x171   :  { %v1463_v13 = vadd.f32 %v1431_v18, %v1381_v56  ;;  %v1464_v38 = vadd.f32 %v1432_v5, %v1382_v9  ;;  %v1596_v47 = vmul.f32 %v7463_v51, %v7510_v12  ;;  %v227_v43 = vmul.f32 %v7477_v44, %v7550_v16 }
 0x172   :  { %2128 = vadd.xlane.f32.xlu0 %v5493_v31  ;;  %1695 = vadd.xlane.f32.xlu1 %v5512_v53  ;;  %v228_v46 = vmul.f32 %v7415_v25, %v7550_v16  ;;  %v453_v61 = vmul.f32 %v7418_v28, %v7551_v36  ;;  %v454_v50 = vmul.f32 %v7419_v34, %v7551_v36  ;;  %v807_v53 = vmax.f32 %v775_v45, 0.0 }
 0x173   :  { %v1545_v33 = vadd.f32 %v1513_v3, %v1463_v13  ;;  %v1546_v49 = vadd.f32 %v1514_v22, %v1464_v38  ;;  %v339_v12 = vadd.f32 %v7552_v29, %v227_v43  ;;  %v599_v63 = vmul.f32 %v7426_v62, %v5453_v27  ;;  %v5631_v6 = vpop.permute.xlu1 %548 }
 0x174   :  { %7553 = vst [vmem:[#allocation73_spill] sm:$0xff] %v5631_v6  ;;  %v1697_v31 = vadd.f32 %v1658_v17, %v1657_v26  ;;  %v340_v30 = vadd.f32 %v7552_v29, %v228_v46  ;;  %v600_v35 = vmul.f32 %v7427_v41, %v5453_v27  ;;  %v808_v59 = vmax.f32 %v776_v24, 0.0 }
 0x175   :  { %v485_v4 = vadd.f32 %v453_v61, %v339_v12  ;;  %v745_v52 = vmul.f32 %v7377_v20, %v5565_v55  ;;  %v746_v40 = vmul.f32 %v7378_v19, %v5565_v55  ;;  %v1351_v26 = vmul.f32 %v7538_v42, %v7527_v10 }
 0x176   :  { %1284 = vadd.xlane.f32.xlu0 %v1283_v21  ;;  %847 = vadd.xlane.f32.xlu1 %v846_v32  ;;  %v486_v18 = vadd.f32 %v454_v50, %v340_v30  ;;  %v1352_v17 = vmul.f32 %v7539_v37, %v7527_v10  ;;  %v1627_v45 = vadd.f32 %v1595_v2, %v1545_v33 }
 0x177   :  { %v1628_v56 = vadd.f32 %v1596_v47, %v1546_v49  ;;  %v631_v9 = vadd.f32 %v599_v63, %v485_v4  ;;  %v1433_v5 = vmul.f32 %v7542_v60, %v7529_v15  ;;  %v1383_v3 = vadd.f32 %v1351_v26, %v7530_v39  ;;  %v7555_v63 = vld [vmem:[#allocation81_spill] sm:$0xff] }
 0x178   :  { %v632_v24 = vadd.f32 %v600_v35, %v486_v18  ;;  %v1384_v22 = vadd.f32 %v1352_v17, %v7530_v39  ;;  %v1434_v21 = vmul.f32 %v7453_v0, %v7529_v15  ;;  %v5650_v32 = vpop.permute.xlu1 %314  ;;  %v849_v13 = vadd.f32 %v808_v59, %v807_v53  ;;  %v7556_v53 = vld [vmem:[#allocation16_spill] sm:$0xff]  ;;  %v7558_v35 = vld [vmem:[#allocation67_spill] sm:$0xff]  ;;  %v7562_v17 = vld [vmem:[#allocation14_spill] sm:$0xff] }
 0x179   :  { %7554 = vst [vmem:[#allocation79_spill] sm:$0xff] %v5650_v32  ;;  %v777_v38 = vadd.f32 %v745_v52, %v631_v9  ;;  %v1515_v10 = vmul.f32 %v7456_v11, %v7531_v23  ;;  %v1516_v2 = vmul.f32 %v7457_v57, %v7531_v23  ;;  %v1465_v43 = vadd.f32 %v1433_v5, %v1383_v3  ;;  %v7559_v59 = vld [vmem:[#allocation7_spill] sm:$0xff]  ;;  %v7560_v52 = vld [vmem:[#allocation8_spill] sm:$0xff] }
 0x17a   :  { %2131 = vadd.xlane.f32.xlu0 %v2130_v58  ;;  %1698 = vadd.xlane.f32.xlu1 %v1697_v31  ;;  %v778_v47 = vadd.f32 %v746_v40, %v632_v24  ;;  %v1466_v46 = vadd.f32 %v1434_v21, %v1384_v22  ;;  %v1659_v61 = vmax.f32 %v1627_v45, 0.0  ;;  %v1660_v39 = vmax.f32 %v1628_v56, 0.0  ;;  %v7557_v58 = vld [vmem:[#allocation17_spill] sm:$0xff]  ;;  %v7564_v24 = vld [vmem:[#allocation10_spill] sm:$0xff] }
 0x17b   :  { %v1597_v15 = vmul.f32 %v7459_v7, %v5482_v14  ;;  %v1598_v50 = vmul.f32 %v7463_v51, %v5482_v14  ;;  %v809_v33 = vmax.f32 %v777_v38, 0.0  ;;  %v1547_v49 = vadd.f32 %v1515_v10, %v1465_v43  ;;  %v7563_v56 = vld [vmem:[#allocation9_spill] sm:$0xff] }
 0x17c   :  { %v1548_v12 = vadd.f32 %v1516_v2, %v1466_v46  ;;  %v931_v30 = vmul.f32 %v7556_v53, %v7555_v63  ;;  %v810_v23 = vmax.f32 %v778_v47, 0.0  ;;  %v932_v31 = vmul.f32 %v7557_v58, %v7555_v63  ;;  %v7565_v22 = vld [vmem:[#allocation53_spill] sm:$0xff] }
 0x17d   :  { %v1013_v4 = vmul.f32 %v7559_v59, %v7558_v35  ;;  %v1014_v40 = vmul.f32 %v7560_v52, %v7558_v35  ;;  %v5668_v18 = vpop.permute.xlu1 %410  ;;  %v1629_v14 = vadd.f32 %v1597_v15, %v1547_v49  ;;  %v1095_v9 = vmul.f32 %v7563_v56, %v5631_v6  ;;  %v7566_v47 = vld [vmem:[#allocation89_spill] sm:$0xff]  ;;  %v7567_v15 = vld [vmem:[#allocation47_spill] sm:$0xff] }
 0x17e   :  { %7561 = vst [vmem:[#allocation44_spill] sm:$0xff] %v5668_v18  ;;  %850 = vadd.xlane.f32.xlu1 %v849_v13  ;;  %v1630_v26 = vadd.f32 %v1598_v50, %v1548_v12  ;;  %v963_v45 = vadd.f32 %v931_v30, %v7562_v17  ;;  %v964_v5 = vadd.f32 %v932_v31, %v7562_v17 }
 0x17f   :  { %v1096_v3 = vmul.f32 %v7564_v24, %v5631_v6  ;;  %v229_v21 = vmul.f32 %v7477_v44, %v7565_v22  ;;  %v230_v38 = vmul.f32 %v7415_v25, %v7565_v22  ;;  %v1700_v10 = vadd.f32 %v1660_v39, %v1659_v61 }
 0x180   :  { %v1045_v13 = vadd.f32 %v1013_v4, %v963_v45  ;;  %v1046_v2 = vadd.f32 %v1014_v40, %v964_v5  ;;  %v455_v50 = vmul.f32 %v7418_v28, %v7567_v15  ;;  %v852_v49 = vadd.f32 %v810_v23, %v809_v33  ;;  %v7569_v4 = vld [vmem:[#allocation48_spill] sm:$0xff] }
 0x181   :  { %v341_v43 = vadd.f32 %v7566_v47, %v229_v21  ;;  %v342_v46 = vadd.f32 %v7566_v47, %v230_v38  ;;  %v1661_v12 = vmax.f32 %v1629_v14, 0.0  ;;  %v1662_v30 = vmax.f32 %v1630_v26, 0.0  ;;  %v5696_v14 = vpop.permute.xlu0 %698  ;;  %v7570_v21 = vld [vmem:[#allocation13_spill] sm:$0xff] }
 0x182   :  { %1701 = vadd.xlane.f32.xlu1 %v1700_v10  ;;  %v456_v31 = vmul.f32 %v7419_v34, %v7567_v15  ;;  %v5686_v32 = vpop.permute.xlu1 %694  ;;  %v1127_v18 = vadd.f32 %v1095_v9, %v1045_v13  ;;  %v1128_v61 = vadd.f32 %v1096_v3, %v1046_v2  ;;  %v601_v40 = vmul.f32 %v7426_v62, %v7569_v4  ;;  %v7571_v3 = vld [vmem:[#allocation27_spill] sm:$0xff]  ;;  %v7572_v10 = vld [vmem:[#allocation28_spill] sm:$0xff] }
 0x183   :  { %7568 = vst [vmem:[#allocation93_spill] sm:$0xff] %v5686_v32  ;;  %v487_v39 = vadd.f32 %v455_v50, %v341_v43  ;;  %v1177_v45 = vmul.f32 %v7523_v48, %v5686_v32  ;;  %v1178_v5 = vmul.f32 %v7524_v8, %v5686_v32  ;;  %v602_v23 = vmul.f32 %v7427_v41, %v7569_v4 }
 0x184   :  { %v488_v33 = vadd.f32 %v456_v31, %v342_v46  ;;  %v747_v9 = vmul.f32 %v7377_v20, %v7570_v21  ;;  %v1780_v38 = vmul.f32 %v7571_v3, %v7550_v16  ;;  %v1781_v13 = vmul.f32 %v7572_v10, %v7550_v16 }
 0x185   :  { %v633_v26 = vadd.f32 %v601_v40, %v487_v39  ;;  %v1209_v2 = vadd.f32 %v1177_v45, %v1127_v18  ;;  %v1210_v43 = vadd.f32 %v1178_v5, %v1128_v61  ;;  %v748_v46 = vmul.f32 %v7378_v19, %v7570_v21  ;;  %v7573_v40 = vld [vmem:[#allocation29_spill] sm:$0xff]  ;;  %v5710_v10 = vpop.xlane.xlu0 %1248 }
 0x186   :  { %853 = vadd.xlane.f32.xlu1 %v852_v49  ;;  %v634_v50 = vadd.f32 %v602_v23, %v488_v33  ;;  %v1703_v31 = vadd.f32 %v1662_v30, %v1661_v12  ;;  %v1812_v39 = vadd.f32 %v1780_v38, %v7552_v29  ;;  %v1862_v4 = vmul.f32 %v7573_v40, %v7551_v36  ;;  %v7575_v49 = vld [vmem:[#allocation30_spill] sm:$0xff]  ;;  %v7576_v12 = vld [vmem:[#allocation33_spill] sm:$0xff] }
 0x187   :  { %v779_v1 = vadd.f32 %v747_v9, %v633_v26  ;;  %v1241_v15 = vmax.f32 %v1209_v2, 0.0  ;;  %v1242_v47 = vmax.f32 %v1210_v43, 0.0  ;;  %v1813_v22 = vadd.f32 %v1781_v13, %v7552_v29  ;;  %7574 = vst [vmem:[#allocation56_spill] sm:$0xff] %v5710_v10  ;;  %v7577_v23 = vld [vmem:[#allocation34_spill] sm:$0xff]  ;;  %v7578_v13 = vld [vmem:[#allocation40_spill] sm:$0xff] }
 0x188   :  { %v780_v3 = vadd.f32 %v748_v46, %v634_v50  ;;  %v1863_v61 = vmul.f32 %v7575_v49, %v7551_v36  ;;  %v1894_v45 = vadd.f32 %v1862_v4, %v1812_v39  ;;  %v1944_v30 = vmul.f32 %v7576_v12, %v5453_v27 }
 0x189   :  { %v811_v18 = vmax.f32 %v779_v1, 0.0  ;;  %v1286_v5 = vadd.f32 %v1242_v47, %v1241_v15  ;;  %v1945_v26 = vmul.f32 %v7577_v23, %v5453_v27  ;;  %v2026_v2 = vmul.f32 %v7578_v13, %v5565_v55  ;;  %v7579_v1 = vld [vmem:[#allocation41_spill] sm:$0xff] }
 0x18a   :  { %1704 = vadd.xlane.f32.xlu1 %v1703_v31  ;;  %v812_v33 = vmax.f32 %v780_v3, 0.0  ;;  %v1895_v9 = vadd.f32 %v1863_v61, %v1813_v22  ;;  %v1976_v38 = vadd.f32 %v1944_v30, %v1894_v45  ;;  %v2027_v43 = vmul.f32 %v7579_v1, %v5565_v55  ;;  %v5734_v61 = vpop.xlane.xlu0 %823 }
 0x18b   :  { %1287 = vadd.xlane.f32.xlu0 %v1286_v5  ;;  %v1353_v4 = vmul.f32 %v7538_v42, %v7550_v16  ;;  %v1354_v47 = vmul.f32 %v7539_v37, %v7550_v16  ;;  %v1435_v22 = vmul.f32 %v7542_v60, %v7551_v36  ;;  %v1436_v46 = vmul.f32 %v7453_v0, %v7551_v36 }
 0x18c   :  { %v855_v50 = vadd.f32 %v812_v33, %v811_v18  ;;  %v1977_v15 = vadd.f32 %v1945_v26, %v1895_v9  ;;  %v2058_v3 = vadd.f32 %v2026_v2, %v1976_v38  ;;  %v1517_v18 = vmul.f32 %v7456_v11, %v5453_v27  ;;  %7580 = vst [vmem:[#allocation57_spill] sm:$0xff] %v5734_v61 }
 0x18d   :  { %v1385_v31 = vadd.f32 %v1353_v4, %v7552_v29  ;;  %v1386_v39 = vadd.f32 %v1354_v47, %v7552_v29  ;;  %v1518_v30 = vmul.f32 %v7457_v57, %v5453_v27  ;;  %v1599_v36 = vmul.f32 %v7459_v7, %v5565_v55  ;;  %v7581_v29 = vld [vmem:[#allocation87_spill] sm:$0xff] }
 0x18e   :  { %856 = vadd.xlane.f32.xlu1 %v855_v50  ;;  %v2059_v45 = vadd.f32 %v2027_v43, %v1977_v15  ;;  %v2090_v16 = vmax.f32 %v2058_v3, 0.0  ;;  %v1600_v26 = vmul.f32 %v7463_v51, %v5565_v55  ;;  %v933_v38 = vmul.f32 %v7556_v53, %v7581_v29  ;;  %v7582_v15 = vld [vmem:[#allocation58_spill] sm:$0xff] }
 0x18f   :  { %v1467_v5 = vadd.f32 %v1435_v22, %v1385_v31  ;;  %v1468_v33 = vadd.f32 %v1436_v46, %v1386_v39  ;;  %v934_v2 = vmul.f32 %v7557_v58, %v7581_v29  ;;  %v1015_v43 = vmul.f32 %v7559_v59, %v5604_v54  ;;  %v7583_v31 = vld [vmem:[#allocation43_spill] sm:$0xff] }
 0x190   :  { %v2091_v9 = vmax.f32 %v2059_v45, 0.0  ;;  %v1016_v4 = vmul.f32 %v7560_v52, %v5604_v54  ;;  %v965_v3 = vadd.f32 %v933_v38, %v7582_v15  ;;  %v1097_v39 = vmul.f32 %v7563_v56, %v7583_v31  ;;  %v5754_v45 = vpop.xlane.xlu0 %1674 }
 0x191   :  { %v1549_v50 = vadd.f32 %v1517_v18, %v1467_v5  ;;  %v1550_v27 = vadd.f32 %v1518_v30, %v1468_v33  ;;  %v966_v55 = vadd.f32 %v934_v2, %v7582_v15  ;;  %7584 = vst [vmem:[#allocation24_spill] sm:$0xff] %v5754_v45  ;;  %v1098_v18 = vmul.f32 %v7564_v24, %v7583_v31 }
 0x192   :  { %v2133_v47 = vadd.f32 %v2091_v9, %v2090_v16  ;;  %v1047_v61 = vadd.f32 %v1015_v43, %v965_v3  ;;  %v1179_v16 = vmul.f32 %v7523_v48, %v5696_v14  ;;  %v1180_v33 = vmul.f32 %v7524_v8, %v5696_v14 }
 0x193   :  { %v1631_v22 = vadd.f32 %v1599_v36, %v1549_v50  ;;  %v1632_v46 = vadd.f32 %v1600_v26, %v1550_v27  ;;  %v1048_v10 = vadd.f32 %v1016_v4, %v966_v55  ;;  %v231_v36 = vmul.f32 %v7477_v44, %v7555_v63 }
 0x194   :  { %2134 = vadd.xlane.f32.xlu0 %v2133_v47  ;;  %v1129_v26 = vadd.f32 %v1097_v39, %v1047_v61  ;;  %v232_v38 = vmul.f32 %v7415_v25, %v7555_v63  ;;  %v457_v2 = vmul.f32 %v7418_v28, %v7558_v35  ;;  %v458_v27 = vmul.f32 %v7419_v34, %v7558_v35  ;;  %v5780_v39 = vpop.xlane.xlu0 %1254 }
 0x195   :  { %v1663_v30 = vmax.f32 %v1631_v22, 0.0  ;;  %v1664_v5 = vmax.f32 %v1632_v46, 0.0  ;;  %v1130_v9 = vadd.f32 %v1098_v18, %v1048_v10  ;;  %v343_v50 = vadd.f32 %v7562_v17, %v231_v36  ;;  %7585 = vst [vmem:[#allocation74_spill] sm:$0xff] %v5780_v39 }
 0x196   :  { %v603_v4 = vmul.f32 %v7426_v62, %v5631_v6  ;;  %v1211_v47 = vadd.f32 %v1179_v16, %v1129_v26  ;;  %v344_v61 = vadd.f32 %v7562_v17, %v232_v38  ;;  %v604_v10 = vmul.f32 %v7427_v41, %v5631_v6  ;;  %v7586_v16 = vld [vmem:[#allocation53_spill] sm:$0xff]  ;;  %v7590_v6 = vld [vmem:[#allocation47_spill] sm:$0xff] }
 0x197   :  { %v1706_v43 = vadd.f32 %v1664_v5, %v1663_v30  ;;  %v1212_v3 = vadd.f32 %v1180_v33, %v1130_v9  ;;  %v489_v55 = vadd.f32 %v457_v2, %v343_v50  ;;  %v749_v22 = vmul.f32 %v7377_v20, %v5686_v32  ;;  %v7587_v33 = vld [vmem:[#allocation27_spill] sm:$0xff]  ;;  %v7588_v9 = vld [vmem:[#allocation28_spill] sm:$0xff]  ;;  %v7589_v50 = vld [vmem:[#allocation89_spill] sm:$0xff] }
 0x198   :  { %v750_v46 = vmul.f32 %v7378_v19, %v5686_v32  ;;  %v1243_v18 = vmax.f32 %v1211_v47, 0.0  ;;  %v490_v5 = vadd.f32 %v458_v27, %v344_v61  ;;  %v1782_v36 = vmul.f32 %v7587_v33, %v7586_v16  ;;  %v7591_v47 = vld [vmem:[#allocation48_spill] sm:$0xff] }
 0x199   :  { %1707 = vadd.xlane.f32.xlu1 %v1706_v43  ;;  %v1244_v30 = vmax.f32 %v1212_v3, 0.0  ;;  %v635_v26 = vadd.f32 %v603_v4, %v489_v55  ;;  %v1783_v38 = vmul.f32 %v7588_v9, %v7586_v16  ;;  %v1864_v17 = vmul.f32 %v7573_v40, %v7590_v6 }
 0x19a   :  { %v636_v2 = vadd.f32 %v604_v10, %v490_v5  ;;  %v1814_v45 = vadd.f32 %v1782_v36, %v7589_v50  ;;  %v1865_v27 = vmul.f32 %v7575_v49, %v7590_v6  ;;  %v1946_v3 = vmul.f32 %v7576_v12, %v7591_v47 }
 0x19b   :  { %v1289_v43 = vadd.f32 %v1244_v30, %v1243_v18  ;;  %v781_v32 = vadd.f32 %v749_v22, %v635_v26  ;;  %v1815_v39 = vadd.f32 %v1783_v38, %v7589_v50  ;;  %v1947_v10 = vmul.f32 %v7577_v23, %v7591_v47  ;;  %v5798_v18 = vpop.permute.xlu1 %556  ;;  %v5804_v26 = vpop.xlane.xlu0 %2101 }
 0x19c   :  { %v782_v4 = vadd.f32 %v750_v46, %v636_v2  ;;  %v1896_v61 = vadd.f32 %v1864_v17, %v1814_v45  ;;  %v2028_v55 = vmul.f32 %v7578_v13, %v7570_v21  ;;  %v1355_v5 = vmul.f32 %v7538_v42, %v7586_v16  ;;  %7592 = vst [vmem:[#allocation49_spill] sm:$0xff] %v5804_v26 }
 0x19d   :  { %1290 = vadd.xlane.f32.xlu0 %v1289_v43  ;;  %v813_v22 = vmax.f32 %v781_v32, 0.0  ;;  %v1897_v30 = vadd.f32 %v1865_v27, %v1815_v39  ;;  %v1356_v36 = vmul.f32 %v7539_v37, %v7586_v16  ;;  %v2029_v45 = vmul.f32 %v7579_v1, %v7570_v21 }
 0x19e   :  { %v814_v46 = vmax.f32 %v782_v4, 0.0  ;;  %v1978_v17 = vadd.f32 %v1946_v3, %v1896_v61  ;;  %v1437_v38 = vmul.f32 %v7542_v60, %v7590_v6  ;;  %v1387_v32 = vadd.f32 %v1355_v5, %v7589_v50 }
 0x19f   :  { %v1979_v43 = vadd.f32 %v1947_v10, %v1897_v30  ;;  %v1388_v39 = vadd.f32 %v1356_v36, %v7589_v50  ;;  %v1438_v2 = vmul.f32 %v7453_v0, %v7590_v6  ;;  %v1519_v4 = vmul.f32 %v7456_v11, %v7591_v47  ;;  %v7593_v6 = vld [vmem:[#allocation85_spill] sm:$0xff]  ;;  %v5826_v5 = vpop.permute.xlu1 %702 }
 0x1a0   :  { %v858_v27 = vadd.f32 %v814_v46, %v813_v22  ;;  %v2060_v16 = vadd.f32 %v2028_v55, %v1978_v17  ;;  %v1520_v3 = vmul.f32 %v7457_v57, %v7591_v47  ;;  %v1469_v26 = vadd.f32 %v1437_v38, %v1387_v32  ;;  %v7594_v17 = vld [vmem:[#allocation44_spill] sm:$0xff]  ;;  %v5830_v38 = vpop.xlane.xlu0 %1257 }
 0x1a1   :  { %v2061_v61 = vadd.f32 %v2029_v45, %v1979_v43  ;;  %v1470_v37 = vadd.f32 %v1438_v2, %v1388_v39  ;;  %v1601_v10 = vmul.f32 %v7459_v7, %v7570_v21  ;;  %v1602_v50 = vmul.f32 %v7463_v51, %v7570_v21  ;;  %v7595_v43 = vld [vmem:[#allocation79_spill] sm:$0xff] }
 0x1a2   :  { %859 = vadd.xlane.f32.xlu1 %v858_v27  ;;  %v2092_v30 = vmax.f32 %v2060_v16, 0.0  ;;  %v935_v55 = vmul.f32 %v7556_v53, %v7593_v6  ;;  %v936_v22 = vmul.f32 %v7557_v58, %v7593_v6  ;;  %v1551_v36 = vadd.f32 %v1519_v4, %v1469_v26 }
 0x1a3   :  { %v2093_v47 = vmax.f32 %v2061_v61, 0.0  ;;  %v1552_v46 = vadd.f32 %v1520_v3, %v1470_v37  ;;  %v1017_v45 = vmul.f32 %v7559_v59, %v7594_v17  ;;  %v1018_v53 = vmul.f32 %v7560_v52, %v7594_v17 }
 0x1a4   :  { %v967_v32 = vadd.f32 %v935_v55, %v7595_v43  ;;  %v968_v21 = vadd.f32 %v936_v22, %v7595_v43  ;;  %v1633_v2 = vadd.f32 %v1601_v10, %v1551_v36  ;;  %v1099_v27 = vmul.f32 %v7563_v56, %v5798_v18  ;;  %v5853_v22 = vpop.xlane.xlu0 %2104 }
 0x1a5   :  { %v2136_v39 = vadd.f32 %v2093_v47, %v2092_v30  ;;  %v1634_v58 = vadd.f32 %v1602_v50, %v1552_v46  ;;  %v1100_v59 = vmul.f32 %v7564_v24, %v5798_v18  ;;  %v1181_v16 = vmul.f32 %v7523_v48, %v5826_v5 }
 0x1a6   :  { %v1049_v26 = vadd.f32 %v1017_v45, %v967_v32  ;;  %v1050_v37 = vadd.f32 %v1018_v53, %v968_v21  ;;  %v1665_v4 = vmax.f32 %v1633_v2, 0.0  ;;  %v1182_v52 = vmul.f32 %v7524_v8, %v5826_v5 }
 0x1a7   :  { %2137 = vadd.xlane.f32.xlu0 %v2136_v39  ;;  %v1666_v3 = vmax.f32 %v1634_v58, 0.0  ;;  %v233_v61 = vmul.f32 %v7477_v44, %v7581_v29  ;;  %v234_v56 = vmul.f32 %v7415_v25, %v7581_v29  ;;  %v459_v24 = vmul.f32 %v7418_v28, %v5604_v54 }
 0x1a8   :  { %v1131_v10 = vadd.f32 %v1099_v27, %v1049_v26  ;;  %v1132_v30 = vadd.f32 %v1100_v59, %v1050_v37  ;;  %v460_v55 = vmul.f32 %v7419_v34, %v5604_v54  ;;  %v605_v45 = vmul.f32 %v7426_v62, %v7583_v31 }
 0x1a9   :  { %v1709_v50 = vadd.f32 %v1666_v3, %v1665_v4  ;;  %v345_v48 = vadd.f32 %v7582_v15, %v233_v61  ;;  %v346_v36 = vadd.f32 %v7582_v15, %v234_v56  ;;  %v606_v32 = vmul.f32 %v7427_v41, %v7583_v31  ;;  %v7596_v3 = vld [vmem:[#allocation14_spill] sm:$0xff]  ;;  %v7597_v56 = vld [vmem:[#allocation73_spill] sm:$0xff] }
 0x1aa   :  { %v1213_v8 = vadd.f32 %v1181_v16, %v1131_v10  ;;  %v1214_v47 = vadd.f32 %v1182_v52, %v1132_v30  ;;  %v751_v21 = vmul.f32 %v7377_v20, %v5696_v14  ;;  %v1784_v58 = vmul.f32 %v7587_v33, %v7555_v63 }
 0x1ab   :  { %1710 = vadd.xlane.f32.xlu1 %v1709_v50  ;;  %v491_v46 = vadd.f32 %v459_v24, %v345_v48  ;;  %v492_v2 = vadd.f32 %v460_v55, %v346_v36  ;;  %v752_v26 = vmul.f32 %v7378_v19, %v5696_v14  ;;  %v1785_v37 = vmul.f32 %v7588_v9, %v7555_v63  ;;  %v5878_v48 = vpop.xlane.xlu0 %1260 }
 0x1ac   :  { %v1245_v53 = vmax.f32 %v1213_v8, 0.0  ;;  %v1246_v39 = vmax.f32 %v1214_v47, 0.0  ;;  %v1866_v59 = vmul.f32 %v7573_v40, %v7558_v35  ;;  %v1816_v52 = vadd.f32 %v1784_v58, %v7596_v3  ;;  %v7598_v47 = vld [vmem:[#allocation93_spill] sm:$0xff] }
 0x1ad   :  { %v637_v27 = vadd.f32 %v605_v45, %v491_v46  ;;  %v638_v4 = vadd.f32 %v606_v32, %v492_v2  ;;  %v1867_v61 = vmul.f32 %v7575_v49, %v7558_v35  ;;  %v1817_v30 = vadd.f32 %v1785_v37, %v7596_v3 }
 0x1ae   :  { %v1292_v16 = vadd.f32 %v1246_v39, %v1245_v53  ;;  %v1948_v24 = vmul.f32 %v7576_v12, %v7597_v56  ;;  %v1949_v50 = vmul.f32 %v7577_v23, %v7597_v56  ;;  %v1898_v8 = vadd.f32 %v1866_v59, %v1816_v52  ;;  %v7599_v53 = vld [vmem:[#allocation21_spill] sm:$0xff] }
 0x1af   :  { %v783_v10 = vadd.f32 %v751_v21, %v637_v27  ;;  %v784_v55 = vadd.f32 %v752_v26, %v638_v4  ;;  %v2030_v36 = vmul.f32 %v7578_v13, %v7598_v47  ;;  %v2031_v46 = vmul.f32 %v7579_v1, %v7598_v47 }
 0x1b0   :  { %1293 = vadd.xlane.f32.xlu0 %v1292_v16  ;;  %v1899_v32 = vadd.f32 %v1867_v61, %v1817_v30  ;;  %v1357_v21 = vmul.f32 %v7538_v42, %v7555_v63  ;;  %v1358_v39 = vmul.f32 %v7599_v53, %v7555_v63  ;;  %v1980_v58 = vadd.f32 %v1948_v24, %v1898_v8 }
 0x1b1   :  { %v815_v45 = vmax.f32 %v783_v10, 0.0  ;;  %v816_v2 = vmax.f32 %v784_v55, 0.0  ;;  %v1439_v27 = vmul.f32 %v7542_v60, %v7558_v35  ;;  %v1440_v26 = vmul.f32 %v7453_v0, %v7558_v35 }
 0x1b2   :  { %v1981_v37 = vadd.f32 %v1949_v50, %v1899_v32  ;;  %v1389_v59 = vadd.f32 %v1357_v21, %v7596_v3  ;;  %v1390_v16 = vadd.f32 %v1358_v39, %v7596_v3  ;;  %v1521_v4 = vmul.f32 %v7456_v11, %v7597_v56  ;;  %v5902_v50 = vpop.xlane.xlu0 %2107 }
 0x1b3   :  { %v861_v52 = vadd.f32 %v816_v2, %v815_v45  ;;  %v2062_v61 = vadd.f32 %v2030_v36, %v1980_v58  ;;  %v1522_v63 = vmul.f32 %v7457_v57, %v7597_v56  ;;  %v1603_v10 = vmul.f32 %v7459_v7, %v7598_v47 }
 0x1b4   :  { %v2063_v30 = vadd.f32 %v2031_v46, %v1981_v37  ;;  %v1471_v24 = vadd.f32 %v1439_v27, %v1389_v59  ;;  %v1472_v55 = vadd.f32 %v1440_v26, %v1390_v16  ;;  %v1604_v35 = vmul.f32 %v7463_v51, %v7598_v47 }
 0x1b5   :  { %862 = vadd.xlane.f32.xlu1 %v861_v52  ;;  %v2094_v3 = vmax.f32 %v2062_v61, 0.0  ;;  %v1786_v8 = vmul.f32 %v7587_v33, %v7581_v29  ;;  %v1787_v36 = vmul.f32 %v7588_v9, %v7581_v29  ;;  %v1868_v46 = vmul.f32 %v7573_v40, %v5604_v54 }
 0x1b6   :  { %v2095_v56 = vmax.f32 %v2063_v30, 0.0  ;;  %v1553_v45 = vadd.f32 %v1521_v4, %v1471_v24  ;;  %v1554_v32 = vadd.f32 %v1522_v63, %v1472_v55  ;;  %v1869_v39 = vmul.f32 %v7575_v49, %v5604_v54  ;;  %v5924_v30 = vpop.xlane.xlu0 %1263 }
 0x1b7   :  { %v1818_v21 = vadd.f32 %v1786_v8, %v7582_v15  ;;  %v1819_v47 = vadd.f32 %v1787_v36, %v7582_v15  ;;  %v1950_v26 = vmul.f32 %v7576_v12, %v7583_v31  ;;  %v1951_v16 = vmul.f32 %v7577_v23, %v7583_v31 }
 0x1b8   :  { %v2139_v2 = vadd.f32 %v2095_v56, %v2094_v3  ;;  %v1635_v58 = vadd.f32 %v1603_v10, %v1553_v45  ;;  %v1636_v27 = vadd.f32 %v1604_v35, %v1554_v32  ;;  %v2032_v4 = vmul.f32 %v7578_v13, %v5696_v14 }
 0x1b9   :  { %v1900_v37 = vadd.f32 %v1868_v46, %v1818_v21  ;;  %v1901_v59 = vadd.f32 %v1869_v39, %v1819_v47  ;;  %v2033_v63 = vmul.f32 %v7579_v1, %v5696_v14  ;;  %v235_v10 = vmul.f32 %v7477_v44, %v7593_v6 }
 0x1ba   :  { %2140 = vadd.xlane.f32.xlu0 %v2139_v2  ;;  %v1667_v52 = vmax.f32 %v1635_v58, 0.0  ;;  %v1668_v61 = vmax.f32 %v1636_v27, 0.0  ;;  %v236_v35 = vmul.f32 %v7415_v25, %v7593_v6  ;;  %v461_v3 = vmul.f32 %v7418_v28, %v7594_v17 }
 0x1bb   :  { %v1982_v24 = vadd.f32 %v1950_v26, %v1900_v37  ;;  %v1983_v55 = vadd.f32 %v1951_v16, %v1901_v59  ;;  %v347_v56 = vadd.f32 %v7595_v43, %v235_v10  ;;  %v462_v45 = vmul.f32 %v7419_v34, %v7594_v17  ;;  %v5952_v16 = vpop.xlane.xlu0 %2110 }
 0x1bc   :  { %v1712_v36 = vadd.f32 %v1668_v61, %v1667_v52  ;;  %v607_v44 = vmul.f32 %v7426_v62, %v5798_v18  ;;  %v348_v21 = vadd.f32 %v7595_v43, %v236_v35  ;;  %v608_v25 = vmul.f32 %v7427_v41, %v5798_v18 }
 0x1bd   :  { %v2064_v32 = vadd.f32 %v2032_v4, %v1982_v24  ;;  %v2065_v46 = vadd.f32 %v2033_v63, %v1983_v55  ;;  %v493_v28 = vadd.f32 %v461_v3, %v347_v56  ;;  %v753_v47 = vmul.f32 %v7377_v20, %v5826_v5 }
 0x1be   :  { %1713 = vadd.xlane.f32.xlu1 %v1712_v36  ;;  %v754_v39 = vmul.f32 %v7378_v19, %v5826_v5  ;;  %v494_v58 = vadd.f32 %v462_v45, %v348_v21  ;;  %v1359_v62 = vmul.f32 %v7538_v42, %v7581_v29  ;;  %v1360_v41 = vmul.f32 %v7599_v53, %v7581_v29 }
 0x1bf   :  { %v5930_v8 = vpop.xlane.xlu1 %820  ;;  %v2096_v2 = vmax.f32 %v2064_v32, 0.0  ;;  %v2097_v34 = vmax.f32 %v2065_v46, 0.0  ;;  %v639_v26 = vadd.f32 %v607_v44, %v493_v28  ;;  %v1441_v37 = vmul.f32 %v7542_v60, %v5604_v54 }
 0x1c0   :  { %v640_v20 = vadd.f32 %v608_v25, %v494_v58  ;;  %v1391_v19 = vadd.f32 %v1359_v62, %v7582_v15  ;;  %v1442_v4 = vmul.f32 %v7453_v0, %v5604_v54  ;;  %v1392_v61 = vadd.f32 %v1360_v41, %v7582_v15 }
 0x1c1   :  { %v2142_v59 = vadd.f32 %v2097_v34, %v2096_v2  ;;  %v785_v52 = vadd.f32 %v753_v47, %v639_v26  ;;  %v1523_v29 = vmul.f32 %v7456_v11, %v7583_v31  ;;  %v1524_v24 = vmul.f32 %v7457_v57, %v7583_v31 }
 0x1c2   :  { %v786_v63 = vadd.f32 %v754_v39, %v640_v20  ;;  %v1473_v10 = vadd.f32 %v1441_v37, %v1391_v19  ;;  %v1474_v3 = vadd.f32 %v1442_v4, %v1392_v61  ;;  %v1605_v36 = vmul.f32 %v7459_v7, %v5696_v14 }
 0x1c3   :  { %v5946_v27 = vpop.xlane.xlu1 %1251  ;;  %2143 = vadd.xlane.f32.xlu0 %v2142_v59  ;;  %v817_v35 = vmax.f32 %v785_v52, 0.0  ;;  %v1361_v54 = vmul.f32 %v7538_v42, %v7593_v6  ;;  %v1362_v45 = vmul.f32 %v7599_v53, %v7593_v6  ;;  %v1443_v44 = vmul.f32 %v7542_v60, %v7594_v17  ;;  %v5977_v42 = vpop.xlane.xlu0 %1266 }
 0x1c4   :  { %v818_v15 = vmax.f32 %v786_v63, 0.0  ;;  %v1555_v56 = vadd.f32 %v1523_v29, %v1473_v10  ;;  %v1556_v32 = vadd.f32 %v1524_v24, %v1474_v3  ;;  %v1606_v31 = vmul.f32 %v7463_v51, %v5696_v14 }
 0x1c5   :  { %v1393_v46 = vadd.f32 %v1361_v54, %v7595_v43  ;;  %v1444_v21 = vmul.f32 %v7453_v0, %v7594_v17  ;;  %v1394_v47 = vadd.f32 %v1362_v45, %v7595_v43  ;;  %v1525_v53 = vmul.f32 %v7456_v11, %v5798_v18 }
 0x1c6   :  { %v864_v25 = vadd.f32 %v818_v15, %v817_v35  ;;  %v1637_v28 = vadd.f32 %v1605_v36, %v1555_v56  ;;  %v1638_v60 = vadd.f32 %v1606_v31, %v1556_v32  ;;  %v1526_v14 = vmul.f32 %v7457_v57, %v5798_v18 }
 0x1c7   :  { %v5962_v55 = vpop.xlane.xlu1 %826  ;;  %v1475_v2 = vadd.f32 %v1443_v44, %v1393_v46  ;;  %v1607_v34 = vmul.f32 %v7459_v7, %v5826_v5  ;;  %v1476_v58 = vadd.f32 %v1444_v21, %v1394_v47  ;;  %v1608_v62 = vmul.f32 %v7463_v51, %v5826_v5  ;;  %v7601_v21 = vld [vmem:[#allocation56_spill] sm:$0xff] }
 0x1c8   :  { %865 = vadd.xlane.f32.xlu1 %v864_v25  ;;  %v1669_v0 = vmax.f32 %v1637_v28, 0.0  ;;  %v1670_v26 = vmax.f32 %v1638_v60, 0.0  ;;  %v1788_v11 = vmul.f32 %v7587_v33, %v7593_v6  ;;  %v1789_v37 = vmul.f32 %v7588_v9, %v7593_v6  ;;  %v6002_v33 = vpop.xlane.xlu0 %2113  ;;  %v7602_v60 = vld [vmem:[#allocation24_spill] sm:$0xff] }
 0x1c9   :  { %v1557_v41 = vadd.f32 %v1525_v53, %v1475_v2  ;;  %v1558_v59 = vadd.f32 %v1526_v14, %v1476_v58  ;;  %v1870_v57 = vmul.f32 %v7573_v40, %v7594_v17  ;;  %v1871_v7 = vmul.f32 %v7575_v49, %v7594_v17 }
 0x1ca   :  { %v1715_v19 = vadd.f32 %v1670_v26, %v1669_v0  ;;  %v1820_v51 = vadd.f32 %v1788_v11, %v7595_v43  ;;  %v1821_v52 = vadd.f32 %v1789_v37, %v7595_v43  ;;  %v1952_v9 = vmul.f32 %v7576_v12, %v5798_v18 }
 0x1cb   :  { %v5982_v39 = vpop.xlane.xlu1 %1677  ;;  %v1639_v4 = vadd.f32 %v1607_v34, %v1557_v41  ;;  %v1640_v61 = vadd.f32 %v1608_v62, %v1558_v59  ;;  %v1953_v40 = vmul.f32 %v7577_v23, %v5798_v18  ;;  %v2034_v49 = vmul.f32 %v7578_v13, %v5826_v5  ;;  %v7603_v34 = vld [vmem:[#allocation57_spill] sm:$0xff]  ;;  %v7604_v59 = vld [vmem:[#allocation74_spill] sm:$0xff] }
 0x1cc   :  { %1716 = vadd.xlane.f32.xlu1 %v1715_v19  ;;  %v1902_v17 = vadd.f32 %v1870_v57, %v1820_v51  ;;  %v1903_v63 = vadd.f32 %v1871_v7, %v1821_v52  ;;  %v2035_v10 = vmul.f32 %v7579_v1, %v5826_v5  ;;  %v6012_v36 = vpop.xlane.xlu0 %1269  ;;  %v7600_v44 = vlaneseq  ;;  %v2369_v7 = vld [vmem:[%s7605_s1 + $0x1f8] sm:$0xff] }
 0x1cd   :  { %v1671_v6 = vmax.f32 %v1639_v4, 0.0  ;;  %v1672_v43 = vmax.f32 %v1640_v61, 0.0  ;;  %v868_v31 = vmul.f32 0.00390625, %v5930_v8  ;;  %v1295_v25 = vmul.f32 0.00390625, %v7601_v21  ;;  %v7606_v19 = vld [vmem:[#allocation49_spill] sm:$0xff]  ;;  %2495 = vmatprep.subr.mxu1 %v2369_v7 }
 0x1ce   :  { %v1984_v24 = vadd.f32 %v1952_v9, %v1902_v17  ;;  %v1985_v35 = vadd.f32 %v1953_v40, %v1903_v63  ;;  %v6025_v32 = vand.u32 127, %v7600_v44  ;;  %v1721_v2 = vmul.f32 0.00390625, %v7602_v60  ;;  %v2368_v61 = vld [vmem:[%s7605_s1 + $0x1f0] sm:$0xff]  ;;  %v2363_v9 = vld [vmem:[%s7605_s1 + $0x1c8] sm:$0xff]  ;;  %v2365_v40 = vld [vmem:[%s7605_s1 + $0x1d8] sm:$0xff] }
 0x1cf   :  { %v5998_v20 = vpop.xlane.xlu1 %829  ;;  %v1718_v3 = vadd.f32 %v1672_v43, %v1671_v6  ;;  %v1296_v14 = vmul.f32 0.00390625, %v5946_v27  ;;  %v869_v0 = vmul.f32 0.00390625, %v7603_v34  ;;  %v870_v62 = vmul.f32 0.00390625, %v5962_v55  ;;  %v2367_v27 = vld [vmem:[%s7605_s1 + $0x1e8] sm:$0xff]  ;;  %v2366_v55 = vld [vmem:[%s7605_s1 + $0x1e0] sm:$0xff]  ;;  %2496 = vmatpush1.msra.mxu1 %v2368_v61  ;;  %v2364_v63 = vld [vmem:[%s7605_s1 + $0x1d0] sm:$0xff] }
 0x1d0   :  { %v2066_v12 = vadd.f32 %v2034_v49, %v1984_v24  ;;  %v2067_v54 = vadd.f32 %v2035_v10, %v1985_v35  ;;  %v6016_v56 = vpop.xlane.xlu0 %2116  ;;  %vm2201_vm0 = vcmp.eq.s32.totalorder %v6025_v32, 1  ;;  %vm2166_vm1 = vcmp.eq.s32.totalorder %v6025_v32, 0  ;;  %2424 = vmatprep.subr.mxu0 %v2367_v27  ;;  %v2362_v17 = vld [vmem:[%s7605_s1 + $0x1c0] sm:$0xff]  ;;  %v2359_v10 = vld [vmem:[%s7605_s1 + $0x1a8] sm:$0xff]  ;;  %2497 = vmatprep.subr.mxu1 %v2365_v40  ;;  %v2357_v44 = vld [vmem:[%s7605_s1 + $0x198] sm:$0xff] }
 0x1d1   :  { %1719 = vadd.xlane.f32.xlu1 %v1718_v3  ;;  %v2169_v47 = vsel %vm2166_vm1, %v868_v31, 0.0  ;;  %v2204_v8 = vsel %vm2201_vm0, %v1295_v25, 0.0  ;;  %vm2236_vm2 = vcmp.eq.s32.totalorder %v6025_v32, 2  ;;  %v1722_v26 = vmul.f32 0.00390625, %v5982_v39  ;;  %2425 = vmatpush1.msra.mxu0 %v2366_v55  ;;  %v2361_v3 = vld [vmem:[%s7605_s1 + $0x1b8] sm:$0xff]  ;;  %v2354_v60 = vld [vmem:[%s7605_s1 + $0x180] sm:$0xff] }
 0x1d2   :  { %v2098_v13 = vmax.f32 %v2066_v12, 0.0  ;;  %v2099_v18 = vmax.f32 %v2067_v54, 0.0  ;;  %v2220_v58 = vadd.f32 %v2204_v8, %v2169_v47  ;;  %v2239_v37 = vsel %vm2236_vm2, %v1721_v2, 0.0  ;;  %2426 = vmatprep.subr.mxu0 %v2363_v9  ;;  %v2358_v12 = vld [vmem:[%s7605_s1 + $0x1a0] sm:$0xff]  ;;  %v2360_v54 = vld [vmem:[%s7605_s1 + $0x1b0] sm:$0xff]  ;;  %2498 = vmatpush1.msra.mxu1 %v2364_v63  ;;  %v2351_v34 = vld [vmem:[%s7605_s1 + $0x168] sm:$0xff] }
 0x1d3   :  { %v1681_v29 = vpop.xlane.xlu1 %1680  ;;  %v1297_v57 = vmul.f32 0.00390625, %v7604_v59  ;;  %v3669_v39 = vmov 0.0   ;;  %v2148_v4 = vmul.f32 0.00390625, %v7606_v19  ;;  %v2205_v51 = vsel %vm2201_vm0, %v1296_v14, 0.0  ;;  %2427 = vmatpush1.msra.mxu0 %v2362_v17  ;;  %2499 = vmatprep.subr.mxu1 %v2361_v3  ;;  %v2343_v63 = vld [vmem:[%s7605_s1 + $0x128] sm:$0xff] }
 0x1d4   :  { %v2145_v15 = vadd.f32 %v2099_v18, %v2098_v13  ;;  %v6020_v1 = vpop.xlane.xlu0 %1272  ;;  %2488 = vmatprep.mubr.f32.mxu0 %v3669_v39  ;;  %2559 = vmatprep.mubr.f32.mxu1 %v3669_v39  ;;  %v1723_v52 = vmul.f32 0.00390625, %v1681_v29  ;;  %v2170_v49 = vsel %vm2166_vm1, %v869_v0, 0.0  ;;  %vm2271_vm3 = vcmp.eq.s32.totalorder %v6025_v32, 3 }
 0x1d5   :  { %v2255_v6 = vadd.f32 %v2239_v37, %v2220_v58  ;;  %v2171_v43 = vsel %vm2166_vm1, %v870_v62, 0.0  ;;  %v2240_v29 = vsel %vm2236_vm2, %v1722_v26, 0.0  ;;  %v871_v24 = vmul.f32 0.00390625, %v5998_v20  ;;  %2428 = vmatprep.subr.mxu0 %v2359_v10  ;;  %2500 = vmatpush1.msra.mxu1 %v2360_v54  ;;  %v2353_v26 = vld [vmem:[%s7605_s1 + $0x178] sm:$0xff]  ;;  %v2350_v37 = vld [vmem:[%s7605_s1 + $0x160] sm:$0xff] }
 0x1d6   :  { %2146 = vadd.xlane.f32.xlu1 %v2145_v15  ;;  %v2206_v13 = vsel %vm2201_vm0, %v1297_v57, 0.0  ;;  %v1298_v20 = vmul.f32 0.00390625, %v5830_v38  ;;  %v2221_v18 = vadd.f32 %v2205_v51, %v2170_v49  ;;  %v2355_v15 = vld [vmem:[%s7605_s1 + $0x188] sm:$0xff]  ;;  %v2274_v31 = vsel %vm2271_vm3, %v2148_v4, 0.0  ;;  %2429 = vmatpush1.msra.mxu0 %v2358_v12  ;;  %v2349_v51 = vld [vmem:[%s7605_s1 + $0x158] sm:$0xff] }
 0x1d7   :  { %v6014_v23 = vpop.xlane.xlu1 %832  ;;  %v2149_v21 = vmul.f32 0.00390625, %v5853_v22  ;;  %v2241_v38 = vsel %vm2236_vm2, %v1723_v52, 0.0  ;;  %v2222_v2 = vadd.f32 %v2206_v13, %v2171_v43  ;;  %v2290_v14 = vadd.f32 %v2274_v31, %v2255_v6  ;;  %v2356_v22 = vld [vmem:[%s7605_s1 + $0x190] sm:$0xff]  ;;  %2430 = vmatprep.subr.mxu0 %v2355_v15  ;;  %2501 = vmatprep.subr.mxu1 %v2357_v44  ;;  %v2347_v57 = vld [vmem:[%s7605_s1 + $0x148] sm:$0xff]  ;;  %v2345_v10 = vld [vmem:[%s7605_s1 + $0x138] sm:$0xff] }
 0x1d8   :  { %v6031_v28 = vpop.xlane.xlu0 %2119  ;;  %v2256_v8 = vadd.f32 %v2240_v29, %v2221_v18  ;;  %v2172_v0 = vsel %vm2166_vm1, %v871_v24, 0.0  ;;  %v872_v58 = vmul.f32 0.00390625, %v6014_v23  ;;  %2431 = vmatpush1.msra.mxu0 %v2354_v60  ;;  %v2352_v23 = vld [vmem:[%s7605_s1 + $0x170] sm:$0xff]  ;;  %v1299_v7 = vmul.f32 0.00390625, %v5878_v48  ;;  %2502 = vmatpush1.msra.mxu1 %v2356_v22  ;;  %v2346_v48 = vld [vmem:[%s7605_s1 + $0x140] sm:$0xff]  ;;  %v2339_v13 = vld [vmem:[%s7605_s1 + $0x108] sm:$0xff] }
 0x1d9   :  { %v2257_v59 = vadd.f32 %v2241_v38, %v2222_v2  ;;  %v2275_v27 = vsel %vm2271_vm3, %v2149_v21, 0.0  ;;  %2432 = vmatprep.subr.mxu0 %v2351_v34  ;;  %2503 = vmatprep.subr.mxu1 %v2353_v26  ;;  %v2151_v40 = vmul.f32 0.00390625, %v5952_v16  ;;  %v2344_v29 = vld [vmem:[%s7605_s1 + $0x130] sm:$0xff]  ;;  %v1300_v3 = vmul.f32 0.00390625, %v5924_v30  ;;  %v2341_v18 = vld [vmem:[%s7605_s1 + $0x118] sm:$0xff]  ;;  %v2338_v30 = vld [vmem:[%s7605_s1 + $0x100] sm:$0xff] }
 0x1da   :  { %v2291_v52 = vadd.f32 %v2275_v27, %v2256_v8  ;;  %2433 = vmatpush1.msra.mxu0 %v2350_v37  ;;  %v2173_v49 = vsel %vm2166_vm1, %v872_v58, 0.0  ;;  %2504 = vmatpush1.msra.mxu1 %v2352_v23  ;;  %v2208_v24 = vsel %vm2201_vm0, %v1299_v7, 0.0  ;;  %v2152_v15 = vmul.f32 0.00390625, %v6002_v33  ;;  %v2335_v60 = vld [vmem:[%s7605_s1 + $0xe8] sm:$0xff]  ;;  %v2334_v8 = vld [vmem:[%s7605_s1 + $0xe0] sm:$0xff]  ;;  %v2332_v7 = vld [vmem:[%s7605_s1 + $0xd0] sm:$0xff] }
 0x1db   :  { %v6018_v45 = vpop.xlane.xlu1 %1683  ;;  %2434 = vmatprep.subr.mxu0 %v2347_v57  ;;  %2505 = vmatprep.subr.mxu1 %v2349_v51  ;;  %v1301_v22 = vmul.f32 0.00390625, %v5977_v42  ;;  %v2331_v26 = vld [vmem:[%s7605_s1 + $0xc8] sm:$0xff]  ;;  %v2333_v42 = vld [vmem:[%s7605_s1 + $0xd8] sm:$0xff]  ;;  %v2153_v37 = vmul.f32 0.00390625, %v6016_v56  ;;  %v2330_v27 = vld [vmem:[%s7605_s1 + $0xc0] sm:$0xff] }
 0x1dc   :  { %v6047_v41 = vpop.xlane.xlu0 %1275  ;;  %v1724_v47 = vmul.f32 0.00390625, %v6018_v45  ;;  %v2150_v45 = vmul.f32 0.00390625, %v5902_v50  ;;  %v2207_v50 = vsel %vm2201_vm0, %v1298_v20, 0.0  ;;  %2435 = vmatpush1.msra.mxu0 %v2346_v48  ;;  %v2224_v20 = vadd.f32 %v2208_v24, %v2173_v49 }
 0x1dd   :  { %v2223_v61 = vadd.f32 %v2207_v50, %v2172_v0  ;;  %2436 = vmatprep.subr.mxu0 %v2343_v63  ;;  %v2336_v0 = vld [vmem:[%s7605_s1 + $0xf0] sm:$0xff]  ;;  %v2210_v51 = vsel %vm2201_vm0, %v1301_v22, 0.0  ;;  %v2279_v49 = vsel %vm2271_vm3, %v2153_v37, 0.0  ;;  %v1304_v22 = vmul.f32 0.00390625, %v6047_v41  ;;  %v2310_v41 = vld [vmem:[%s7605_s1 + $0x20] sm:$0xff] }
 0x1de   :  { %v2242_v55 = vsel %vm2236_vm2, %v1724_v47, 0.0  ;;  %v2276_v9 = vsel %vm2271_vm3, %v2150_v45, 0.0  ;;  %v2340_v47 = vld [vmem:[%s7605_s1 + $0x110] sm:$0xff] }
 0x1df   :  { %v6022_v5 = vpop.xlane.xlu1 %835  ;;  %v2292_v43 = vadd.f32 %v2276_v9, %v2257_v59  ;;  %v2258_v16 = vadd.f32 %v2242_v55, %v2223_v61 }
 0x1e0   :  { %v6117_v25 = vpop.xlane.xlu0 %2122  ;;  %v873_v6 = vmul.f32 0.00390625, %v6022_v5  ;;  %v2342_v5 = vld [vmem:[%s7605_s1 + $0x120] sm:$0xff] }
 0x1e1   :  { %2437 = vmatpush1.msra.mxu0 %v2342_v5  ;;  %v2322_v5 = vld [vmem:[%s7605_s1 + $0x80] sm:$0xff] }
 0x1e2   :  { %v2174_v44 = vsel %vm2166_vm1, %v873_v6, 0.0  ;;  %2438 = vmatprep.subr.mxu0 %v2339_v13  ;;  %v2154_v6 = vmul.f32 0.00390625, %v6031_v28  ;;  %v2324_v28 = vld [vmem:[%s7605_s1 + $0x90] sm:$0xff] }
 0x1e3   :  { %v6028_v46 = vpop.xlane.xlu1 %1686  ;;  %2439 = vmatpush1.msra.mxu0 %v2338_v30 }
 0x1e4   :  { %v1725_v19 = vmul.f32 0.00390625, %v6028_v46  ;;  %v2348_v46 = vld [vmem:[%s7605_s1 + $0x150] sm:$0xff]  ;;  %2440 = vmatprep.subr.mxu0 %v2335_v60  ;;  %v2315_v60 = vld [vmem:[%s7605_s1 + $0x48] sm:$0xff] }
 0x1e5   :  { %2506 = vmatpush1.msra.mxu1 %v2348_v46  ;;  %2441 = vmatpush1.msra.mxu0 %v2334_v8  ;;  %v2326_v46 = vld [vmem:[%s7605_s1 + $0xa0] sm:$0xff]  ;;  %v2316_v8 = vld [vmem:[%s7605_s1 + $0x50] sm:$0xff] }
 0x1e6   :  { %v2243_v12 = vsel %vm2236_vm2, %v1725_v19, 0.0  ;;  %2507 = vmatprep.subr.mxu1 %v2345_v10  ;;  %v2329_v19 = vld [vmem:[%s7605_s1 + $0xb8] sm:$0xff]  ;;  %2442 = vmatprep.subr.mxu0 %v2331_v26 }
 0x1e7   :  { %v6037_v53 = vpop.xlane.xlu1 %838  ;;  %2508 = vmatpush1.msra.mxu1 %v2344_v29  ;;  %v2259_v2 = vadd.f32 %v2243_v12, %v2224_v20  ;;  %2443 = vmatpush1.msra.mxu0 %v2330_v27  ;;  %v1303_v12 = vmul.f32 0.00390625, %v6020_v1  ;;  %v2320_v1 = vld [vmem:[%s7605_s1 + $0x70] sm:$0xff] }
 0x1e8   :  { %v6157_v4 = vpop.xlane.xlu0 %1278  ;;  %v874_v31 = vmul.f32 0.00390625, %v6037_v53  ;;  %v2337_v53 = vld [vmem:[%s7605_s1 + $0xf8] sm:$0xff]  ;;  %2509 = vmatprep.subr.mxu1 %v2341_v18 }
 0x1e9   :  { %2510 = vmatpush1.msra.mxu1 %v2340_v47  ;;  %v2321_v18 = vld [vmem:[%s7605_s1 + $0x78] sm:$0xff] }
 0x1ea   :  { %v2175_v50 = vsel %vm2166_vm1, %v874_v31, 0.0  ;;  %2511 = vmatprep.subr.mxu1 %v2337_v53 }
 0x1eb   :  { %v6049_v11 = vpop.xlane.xlu1 %1689  ;;  %2512 = vmatpush1.msra.mxu1 %v2336_v0  ;;  %v2226_v9 = vadd.f32 %v2210_v51, %v2175_v50 }
 0x1ec   :  { %v1726_v54 = vmul.f32 0.00390625, %v6049_v11  ;;  %v2277_v11 = vsel %vm2271_vm3, %v2151_v40, 0.0  ;;  %v6209_v21 = vpop.xlane.xlu0 %2125  ;;  %2513 = vmatprep.subr.mxu1 %v2333_v42  ;;  %v2328_v40 = vld [vmem:[%s7605_s1 + $0xb0] sm:$0xff] }
 0x1ed   :  { %v2293_v33 = vadd.f32 %v2277_v11, %v2258_v16  ;;  %2514 = vmatpush1.msra.mxu1 %v2332_v7  ;;  %v2325_v16 = vld [vmem:[%s7605_s1 + $0x98] sm:$0xff]  ;;  %v2318_v11 = vld [vmem:[%s7605_s1 + $0x60] sm:$0xff]  ;;  %v2156_v42 = vmul.f32 0.00390625, %v6209_v21 }
 0x1ee   :  { %v2244_v34 = vsel %vm2236_vm2, %v1726_v54, 0.0  ;;  %2515 = vmatprep.subr.mxu1 %v2329_v19  ;;  %v2308_v19 = vld [vmem:[%s7605_s1 + $0x10] sm:$0xff] }
 0x1ef   :  { %v6094_v35 = vpop.xlane.xlu1 %841  ;;  %2516 = vmatpush1.msra.mxu1 %v2328_v40  ;;  %v1305_v40 = vmul.f32 0.00390625, %v6157_v4 }
 0x1f0   :  { %2392 = vxpose.xlu0.b32.start [1/16] (narrow) %v2290_v14, 8  ;;  %v2209_v14 = vsel %vm2201_vm0, %v1300_v3, 0.0  ;;  %v875_v59 = vmul.f32 0.00390625, %v6094_v35  ;;  %v2327_v35 = vld [vmem:[%s7605_s1 + $0xa8] sm:$0xff]  ;;  %2517 = vmatprep.subr.mxu1 %v2325_v16 }
 0x1f1   :  { %v2225_v58 = vadd.f32 %v2209_v14, %v2174_v44  ;;  %2444 = vmatprep.subr.mxu0 %v2327_v35  ;;  %v2155_v44 = vmul.f32 0.00390625, %v6117_v25  ;;  %2518 = vmatpush1.msra.mxu1 %v2324_v28  ;;  %v2314_v25 = vld [vmem:[%s7605_s1 + $0x40] sm:$0xff]  ;;  %v2212_v14 = vsel %vm2201_vm0, %v1303_v12, 0.0  ;;  %v2213_v35 = vsel %vm2201_vm0, %v1304_v22, 0.0 }
 0x1f2   :  { %v2176_v63 = vsel %vm2166_vm1, %v875_v59, 0.0  ;;  %2445 = vmatpush1.msra.mxu0 %v2326_v46  ;;  %2519 = vmatprep.subr.mxu1 %v2321_v18  ;;  %v2312_v59 = vld [vmem:[%s7605_s1 + $0x30] sm:$0xff]  ;;  %v2214_v16 = vsel %vm2201_vm0, %v1305_v40, 0.0 }
 0x1f3   :  { %v6135_v62 = vpop.xlane.xlu1 %1692  ;;  %v2260_v55 = vadd.f32 %v2244_v34, %v2225_v58  ;;  %2520 = vmatpush1.msra.mxu1 %v2320_v1  ;;  %v2313_v58 = vld [vmem:[%s7605_s1 + $0x38] sm:$0xff]  ;;  %v2281_v26 = vsel %vm2271_vm3, %v2155_v44, 0.0 }
 0x1f4   :  { %2393 = vxpose.xlu0.b32.cont [2/16] (narrow) %v2291_v52, 8  ;;  %v1727_v45 = vmul.f32 0.00390625, %v6135_v62  ;;  %v2278_v62 = vsel %vm2271_vm3, %v2152_v15, 0.0  ;;  %v1302_v52 = vmul.f32 0.00390625, %v6012_v36  ;;  %v2323_v36 = vld [vmem:[%s7605_s1 + $0x88] sm:$0xff]  ;;  %v2280_v15 = vsel %vm2271_vm3, %v2154_v6, 0.0 }
 0x1f5   :  { %v2294_v56 = vadd.f32 %v2278_v62, %v2259_v2  ;;  %v2295_v29 = vadd.f32 %v2279_v49, %v2260_v55  ;;  %2446 = vmatprep.subr.mxu0 %v2323_v36  ;;  %v2306_v55 = vld [vmem:[%s7605_s1] sm:$0xff] }
 0x1f6   :  { %v2245_v61 = vsel %vm2236_vm2, %v1727_v45, 0.0  ;;  %v2211_v3 = vsel %vm2201_vm0, %v1302_v52, 0.0  ;;  %2447 = vmatpush1.msra.mxu0 %v2322_v5  ;;  %v2311_v45 = vld [vmem:[%s7605_s1 + $0x28] sm:$0xff] }
 0x1f7   :  { %v6174_v17 = vpop.xlane.xlu1 %844  ;;  %v6244_v23 = vpop.xlane.xlu0 %1281  ;;  %v2261_v24 = vadd.f32 %v2245_v61, %v2226_v9  ;;  %v2227_v30 = vadd.f32 %v2211_v3, %v2176_v63 }
 0x1f8   :  { %2394 = vxpose.xlu0.b32.cont [3/16] (narrow) %v2292_v43, 8  ;;  %v876_v10 = vmul.f32 0.00390625, %v6174_v17  ;;  %v2319_v17 = vld [vmem:[%s7605_s1 + $0x68] sm:$0xff]  ;;  %v1306_v18 = vmul.f32 0.00390625, %v6244_v23 }
 0x1f9   :  { %2448 = vmatprep.subr.mxu0 %v2319_v17  ;;  %v2296_v2 = vadd.f32 %v2280_v15, %v2261_v24 }
 0x1fa   :  { %v2177_v31 = vsel %vm2166_vm1, %v876_v10, 0.0  ;;  %2449 = vmatpush1.msra.mxu0 %v2318_v11  ;;  %v2215_v15 = vsel %vm2201_vm0, %v1306_v18, 0.0 }
 0x1fb   :  { %v1696_v38 = vpop.xlane.xlu1 %1695  ;;  %v6293_v54 = vpop.xlane.xlu0 %2128  ;;  %v2228_v0 = vadd.f32 %v2212_v14, %v2177_v31  ;;  %2450 = vmatprep.subr.mxu0 %v2315_v60 }
 0x1fc   :  { %2395 = vxpose.xlu0.b32.cont [4/16] (narrow) %v2293_v33, 8  ;;  %v1728_v48 = vmul.f32 0.00390625, %v1696_v38  ;;  %v2317_v33 = vld [vmem:[%s7605_s1 + $0x58] sm:$0xff]  ;;  %2451 = vmatpush1.msra.mxu0 %v2314_v25  ;;  %v2157_v46 = vmul.f32 0.00390625, %v6293_v54 }
 0x1fd   :  { %2521 = vmatprep.subr.mxu1 %v2317_v33  ;;  %2452 = vmatprep.subr.mxu0 %v2311_v45 }
 0x1fe   :  { %v2246_v13 = vsel %vm2236_vm2, %v1728_v48, 0.0  ;;  %2522 = vmatpush1.msra.mxu1 %v2316_v8  ;;  %2453 = vmatpush1.msra.mxu0 %v2310_v41  ;;  %v2282_v48 = vsel %vm2271_vm3, %v2156_v42, 0.0  ;;  %v2283_v10 = vsel %vm2271_vm3, %v2157_v46, 0.0 }
 0x1ff   :  { %v848_v57 = vpop.xlane.xlu1 %847  ;;  %v2262_v53 = vadd.f32 %v2246_v13, %v2227_v30  ;;  %v6340_v62 = vpop.xlane.xlu0 %1284  ;;  %2523 = vmatprep.subr.mxu1 %v2313_v58 }
 0x200   :  { %2396 = vxpose.xlu0.b32.cont [5/16] (narrow) %v2294_v56, 8  ;;  %v877_v38 = vmul.f32 0.00390625, %v848_v57  ;;  %v2307_v57 = vld [vmem:[%s7605_s1 + $0x8] sm:$0xff]  ;;  %v2309_v56 = vld [vmem:[%s7605_s1 + $0x18] sm:$0xff]  ;;  %2524 = vmatpush1.msra.mxu1 %v2312_v59  ;;  %v1307_v8 = vmul.f32 0.00390625, %v6340_v62 }
 0x201   :  { %v2297_v27 = vadd.f32 %v2281_v26, %v2262_v53  ;;  %2454 = vmatprep.subr.mxu0 %v2307_v57  ;;  %2525 = vmatprep.subr.mxu1 %v2309_v56 }
 0x202   :  { %v2178_v37 = vsel %vm2166_vm1, %v877_v38, 0.0  ;;  %2455 = vmatpush1.msra.mxu0 %v2306_v55  ;;  %2526 = vmatpush1.msra.mxu1 %v2308_v19  ;;  %v2216_v45 = vsel %vm2201_vm0, %v1307_v8, 0.0  ;;  %v7610_v8 = vld [vmem:[#allocation4_spill] sm:$0xff] }
 0x203   :  { %v1699_v43 = vpop.xlane.xlu1 %1698  ;;  %v2229_v51 = vadd.f32 %v2213_v35, %v2178_v37  ;;  %v2132_v6 = vpop.xlane.xlu0 %2131  ;;  %2814 = vmatprep.subr.mxu1 %v3669_v39 }
 0x204   :  { %v1729_v20 = vmul.f32 0.00390625, %v1699_v43  ;;  %2397 = vxpose.xlu0.b32.cont [6/16] (narrow) %v2295_v29, 8  ;;  %v2158_v5 = vmul.f32 0.00390625, %v2132_v6 }
 0x206   :  { %v2247_v34 = vsel %vm2236_vm2, %v1729_v20, 0.0  ;;  %v2284_v3 = vsel %vm2271_vm3, %v2158_v5, 0.0 }
 0x207   :  { %v851_v47 = vpop.xlane.xlu1 %850  ;;  %v2263_v7 = vadd.f32 %v2247_v34, %v2228_v0 }
 0x208   :  { %2398 = vxpose.xlu0.b32.cont [7/16] (narrow) %v2296_v2, 8  ;;  %v878_v52 = vmul.f32 0.00390625, %v851_v47 }
 0x209   :  { %v2298_v36 = vadd.f32 %v2282_v48, %v2263_v7 }
 0x20a   :  { %v2179_v63 = vsel %vm2166_vm1, %v878_v52, 0.0 }
 0x20b   :  { %v1702_v50 = vpop.xlane.xlu1 %1701  ;;  %v2230_v24 = vadd.f32 %v2214_v16, %v2179_v63 }
 0x20c   :  { %v1730_v21 = vmul.f32 0.00390625, %v1702_v50  ;;  %2399 = vxpose.xlu0.b32.cont [8/16] (narrow) %v2297_v27, 8 }
 0x20e   :  { %v2248_v61 = vsel %vm2236_vm2, %v1730_v21, 0.0 }
 0x20f   :  { %v854_v9 = vpop.xlane.xlu1 %853  ;;  %v2264_v49 = vadd.f32 %v2248_v61, %v2229_v51 }
 0x210   :  { %2400 = vxpose.xlu0.b32.cont [9/16] (narrow) %v2298_v36, 8  ;;  %v879_v20 = vmul.f32 0.00390625, %v854_v9 }
 0x211   :  { %v2299_v4 = vadd.f32 %v2283_v10, %v2264_v49 }
 0x212   :  { %v2180_v11 = vsel %vm2166_vm1, %v879_v20, 0.0 }
 0x213   :  { %v1705_v43 = vpop.xlane.xlu1 %1704  ;;  %v2231_v38 = vadd.f32 %v2215_v15, %v2180_v11 }
 0x214   :  { %v1731_v29 = vmul.f32 0.00390625, %v1705_v43  ;;  %2401 = vxpose.xlu0.b32.cont [10/16] (narrow) %v2299_v4, 8  ;;  %v1288_v54 = vpop.xlane.xlu0 %1287 }
 0x215   :  { %v1308_v27 = vmul.f32 0.00390625, %v1288_v54 }
 0x216   :  { %v2249_v28 = vsel %vm2236_vm2, %v1731_v29, 0.0 }
 0x217   :  { %v2265_v17 = vadd.f32 %v2249_v28, %v2230_v24  ;;  %v857_v13 = vpop.xlane.xlu1 %856  ;;  %v2217_v55 = vsel %vm2201_vm0, %v1308_v27, 0.0 }
 0x218   :  { %v880_v25 = vmul.f32 0.00390625, %v857_v13 }
 0x219   :  { %v2300_v12 = vadd.f32 %v2284_v3, %v2265_v17 }
 0x21a   :  { %v2181_v22 = vsel %vm2166_vm1, %v880_v25, 0.0 }
 0x21b   :  { %2402 = vxpose.xlu0.b32.cont [11/16] (narrow) %v2300_v12, 8  ;;  %v2232_v41 = vadd.f32 %v2216_v45, %v2181_v22  ;;  %v7611_v22 = vld [vmem:[#allocation15_spill] sm:$0xff] }
 0x21d   :  { %v2135_v30 = vpop.xlane.xlu0 %2134 }
 0x21e   :  { %v2159_v44 = vmul.f32 0.00390625, %v2135_v30 }
 0x220   :  { %v2285_v33 = vsel %vm2271_vm3, %v2159_v44, 0.0 }
 0x222   :  { %v1708_v1 = vpop.xlane.xlu1 %1707 }
 0x223   :  { %v1732_v31 = vmul.f32 0.00390625, %v1708_v1 }
 0x225   :  { %v2250_v47 = vsel %vm2236_vm2, %v1732_v31, 0.0 }
 0x226   :  { %v2266_v60 = vadd.f32 %v2250_v47, %v2231_v38  ;;  %v1291_v23 = vpop.xlane.xlu0 %1290  ;;  %v2370_v47 = vld [vmem:[%s7607_s30] sm:$0xf] }
 0x227   :  { %v1309_v36 = vmul.f32 0.00390625, %v1291_v23  ;;  %v2387_v32 = vrot.slane %v2370_v47, %v7611_v22 }
 0x228   :  { %v2301_v2 = vadd.f32 %v2285_v33, %v2266_v60  ;;  %v7608_v60 = vld [vmem:[#allocation6_spill] sm:$0xff] }
 0x229   :  { %v2218_v10 = vsel %vm2201_vm0, %v1309_v36, 0.0  ;;  %v2375_v33 = vrot.slane %v2370_v47, %v7608_v60  ;;  %v2682_v36 = vld [vmem:[%s7612_s2 + $0x78] sm:$0xff] }
 0x22a   :  { %2403 = vxpose.xlu0.b32.cont [12/16] (narrow) %v2301_v2, 8  ;;  %v7609_v2 = vld [vmem:[#allocation5_spill] sm:$0xff] }
 0x22b   :  { %v860_v53 = vpop.xlane.xlu1 %859  ;;  %v2383_v23 = vrot.slane %v2370_v47, %v7609_v2 }
 0x22c   :  { %v881_v57 = vmul.f32 0.00390625, %v860_v53 }
 0x22e   :  { %v2182_v21 = vsel %vm2166_vm1, %v881_v57, 0.0 }
 0x22f   :  { %v2233_v51 = vadd.f32 %v2217_v55, %v2182_v21 }
 0x230   :  { %v2138_v14 = vpop.xlane.xlu0 %2137 }
 0x231   :  { %v2160_v0 = vmul.f32 0.00390625, %v2138_v14  ;;  %v2379_v14 = vrot.slane %v2370_v47, %v7610_v8 }
 0x233   :  { %v2286_v37 = vsel %vm2271_vm3, %v2160_v0, 0.0 }
 0x234   :  { %v1711_v34 = vpop.xlane.xlu1 %1710 }
 0x235   :  { %v1733_v58 = vmul.f32 0.00390625, %v1711_v34 }
 0x237   :  { %v2251_v26 = vsel %vm2236_vm2, %v1733_v58, 0.0 }
 0x238   :  { %v2267_v42 = vadd.f32 %v2251_v26, %v2232_v41 }
 0x239   :  { %v1294_v62 = vpop.xlane.xlu0 %1293 }
 0x23a   :  { %v2302_v50 = vadd.f32 %v2286_v37, %v2267_v42  ;;  %v1310_v28 = vmul.f32 0.00390625, %v1294_v62 }
 0x23c   :  { %2404 = vxpose.xlu0.b32.cont [13/16] (narrow) %v2302_v50, 8  ;;  %v2219_v20 = vsel %vm2201_vm0, %v1310_v28, 0.0  ;;  %v2705_v28 = vld [vmem:[%s7612_s2 + $0x130] sm:$0xff]  ;;  %vm3020_vm0 = vcmask 519168  }
 0x23e   :  { %v863_v59 = vpop.xlane.xlu1 %862 }
 0x23f   :  { %v882_v9 = vmul.f32 0.00390625, %v863_v59 }
 0x241   :  { %v2183_v6 = vsel %vm2166_vm1, %v882_v9, 0.0  ;;  %v2711_v9 = vld [vmem:[%s7612_s2 + $0x160] sm:$0xff] }
 0x242   :  { %v2234_v5 = vadd.f32 %v2218_v10, %v2183_v6  ;;  %v2697_v6 = vld [vmem:[%s7612_s2 + $0xf0] sm:$0xff]  ;;  %v2696_v10 = vld [vmem:[%s7612_s2 + $0xe8] sm:$0xff] }
 0x243   :  { %v2141_v7 = vpop.xlane.xlu0 %2140 }
 0x244   :  { %v2161_v35 = vmul.f32 0.00390625, %v2141_v7 }
 0x246   :  { %v2287_v48 = vsel %vm2271_vm3, %v2161_v35, 0.0 }
 0x247   :  { %v1714_v56 = vpop.xlane.xlu1 %1713 }
 0x248   :  { %v1734_v19 = vmul.f32 0.00390625, %v1714_v56 }
 0x24a   :  { %v2252_v52 = vsel %vm2236_vm2, %v1734_v19, 0.0 }
 0x24b   :  { %v2268_v61 = vadd.f32 %v2252_v52, %v2233_v51 }
 0x24c   :  { %v2144_v49 = vpop.xlane.xlu0 %2143 }
 0x24d   :  { %v2303_v46 = vadd.f32 %v2287_v48, %v2268_v61  ;;  %v2162_v43 = vmul.f32 0.00390625, %v2144_v49  ;;  %v2714_v61 = vld [vmem:[%s7612_s2 + $0x178] sm:$0xff]  ;;  %v2713_v48 = vld [vmem:[%s7612_s2 + $0x170] sm:$0xff] }
 0x24e   :  { %v2710_v49 = vld [vmem:[%s7612_s2 + $0x158] sm:$0xff] }
 0x24f   :  { %2405 = vxpose.xlu0.b32.cont [14/16] (narrow) %v2303_v46, 8  ;;  %v2288_v17 = vsel %vm2271_vm3, %v2162_v43, 0.0  ;;  %v2712_v46 = vld [vmem:[%s7612_s2 + $0x168] sm:$0xff]  ;;  %v2709_v43 = vld [vmem:[%s7612_s2 + $0x150] sm:$0xff] }
 0x251   :  { %v866_v40 = vpop.xlane.xlu1 %865 }
 0x252   :  { %v883_v4 = vmul.f32 0.00390625, %v866_v40  ;;  %v2698_v40 = vld [vmem:[%s7612_s2 + $0xf8] sm:$0xff] }
 0x253   :  { %3427 = vmatprep.subr.mxu0 %v2698_v40  ;;  %v2672_v40 = vld [vmem:[%s7612_s2 + $0x28] sm:$0xff] }
 0x254   :  { %v2184_v13 = vsel %vm2166_vm1, %v883_v4, 0.0  ;;  %v2708_v4 = vld [vmem:[%s7612_s2 + $0x148] sm:$0xff]  ;;  %vm3067_vm1 = vcmask 523264  }
 0x255   :  { %v1717_v63 = vpop.xlane.xlu1 %1716  ;;  %v2235_v30 = vadd.f32 %v2219_v20, %v2184_v13  ;;  %v2700_v13 = vld [vmem:[%s7612_s2 + $0x108] sm:$0xff]  ;;  %v2699_v20 = vld [vmem:[%s7612_s2 + $0x100] sm:$0xff] }
 0x256   :  { %v1735_v16 = vmul.f32 0.00390625, %v1717_v63  ;;  %v2681_v63 = vld [vmem:[%s7612_s2 + $0x70] sm:$0xff] }
 0x258   :  { %v2253_v29 = vsel %vm2236_vm2, %v1735_v16, 0.0  ;;  %v2680_v16 = vld [vmem:[%s7612_s2 + $0x68] sm:$0xff] }
 0x259   :  { %v2269_v24 = vadd.f32 %v2253_v29, %v2234_v5  ;;  %v2695_v5 = vld [vmem:[%s7612_s2 + $0xe0] sm:$0xff] }
 0x25a   :  { %v1720_v3 = vpop.xlane.xlu1 %1719  ;;  %v2707_v29 = vld [vmem:[%s7612_s2 + $0x140] sm:$0xff] }
 0x25b   :  { %v2304_v12 = vadd.f32 %v2288_v17, %v2269_v24  ;;  %v1736_v54 = vmul.f32 0.00390625, %v1720_v3  ;;  %v2706_v24 = vld [vmem:[%s7612_s2 + $0x138] sm:$0xff]  ;;  %v2704_v17 = vld [vmem:[%s7612_s2 + $0x128] sm:$0xff]  ;;  %v2703_v3 = vld [vmem:[%s7612_s2 + $0x120] sm:$0xff] }
 0x25d   :  { %2406 = vxpose.xlu0.b32.cont [15/16] (narrow) %v2304_v12, 8  ;;  %v2254_v18 = vsel %vm2236_vm2, %v1736_v54, 0.0  ;;  %v2702_v12 = vld [vmem:[%s7612_s2 + $0x118] sm:$0xff]  ;;  %v2701_v54 = vld [vmem:[%s7612_s2 + $0x110] sm:$0xff] }
 0x25e   :  { %v2270_v15 = vadd.f32 %v2254_v18, %v2235_v30  ;;  %v2729_v18 = vld [vmem:[%s7612_s2 + $0x1f0] sm:$0xf]  ;;  %v2728_v30 = vld [vmem:[%s7612_s2 + $0x1e8] sm:$0xff] }
 0x25f   :  { %v2147_v11 = vpop.xlane.xlu1 %2146 }
 0x260   :  { %v2163_v1 = vmul.f32 0.00390625, %v2147_v11 }
 0x262   :  { %v2289_v44 = vsel %vm2271_vm3, %v2163_v1, 0.0  ;;  %vm3327_vm3 = vcmask 1041408  }
 0x263   :  { %v2305_v31 = vadd.f32 %v2289_v44, %v2270_v15 }
 0x265   :  { %2407 = vxpose.xlu0.b32.end [16/16] (narrow) %v2305_v31, 8 }
 0x2a5   :  { %v2408_v38 = vpop.trf.xlu0 }
 0x2a6   :  { %2489 = vmatmul.mubr.f32.vlgmr.msra.gmra.mxu0 %v2408_v38  ;;  %2560 = vmatmul.mubr.f32.vlgmr.msra.gmra.mxu1 %v2408_v38 }
 0x2a7   :  { %2815 = vmatpush1.msra.mxu1 %v2714_v61  ;;  %3428 = vmatpush3.msra.mxu0 %v2682_v36  ;;  %v2689_v61 = vld [vmem:[%s7612_s2 + $0xb0] sm:$0xff]  ;;  %v2720_v36 = vld [vmem:[%s7612_s2 + $0x1a8] sm:$0xff] }
 0x2a8   :  { %2816 = vmatprep.subr.mxu1 %v3669_v39  ;;  %3429 = vmatprep.subr.mxu0 %v2697_v6  ;;  %v2671_v6 = vld [vmem:[%s7612_s2 + $0x20] sm:$0xff] }
 0x2a9   :  { %2817 = vmatpush1.msra.mxu1 %v2713_v48  ;;  %3430 = vmatpush3.msra.mxu0 %v2681_v63  ;;  %v2673_v48 = vld [vmem:[%s7612_s2 + $0x30] sm:$0xff]  ;;  %v2719_v63 = vld [vmem:[%s7612_s2 + $0x1a0] sm:$0xff] }
 0x2aa   :  { %2818 = vmatprep.subr.mxu1 %v3669_v39  ;;  %3431 = vmatprep.subr.mxu0 %v2696_v10  ;;  %v2686_v10 = vld [vmem:[%s7612_s2 + $0x98] sm:$0xff] }
 0x2ab   :  { %2819 = vmatpush1.msra.mxu1 %v2712_v46  ;;  %3432 = vmatpush3.msra.mxu0 %v2680_v16  ;;  %v2721_v46 = vld [vmem:[%s7612_s2 + $0x1b0] sm:$0xff]  ;;  %v2718_v16 = vld [vmem:[%s7612_s2 + $0x198] sm:$0xff] }
 0x2ac   :  { %2820 = vmatprep.subr.mxu1 %v3669_v39  ;;  %3433 = vmatprep.subr.mxu0 %v2695_v5  ;;  %v2685_v5 = vld [vmem:[%s7612_s2 + $0x90] sm:$0xff] }
 0x2ad   :  { %2821 = vmatpush1.msra.mxu1 %v2711_v9  ;;  %v2688_v9 = vld [vmem:[%s7612_s2 + $0xa8] sm:$0xff] }
 0x2ae   :  { %2822 = vmatprep.subr.mxu1 %v3669_v39 }
 0x2af   :  { %2823 = vmatpush1.msra.mxu1 %v2710_v49  ;;  %v2687_v49 = vld [vmem:[%s7612_s2 + $0xa0] sm:$0xff] }
 0x2b0   :  { %2824 = vmatprep.subr.mxu1 %v3669_v39 }
 0x2b1   :  { %2825 = vmatpush1.msra.mxu1 %v2709_v43  ;;  %v2670_v43 = vld [vmem:[%s7612_s2 + $0x18] sm:$0xff] }
 0x2b2   :  { %2826 = vmatprep.subr.mxu1 %v3669_v39 }
 0x2b3   :  { %2827 = vmatpush1.msra.mxu1 %v2708_v4  ;;  %v2669_v4 = vld [vmem:[%s7612_s2 + $0x10] sm:$0xff] }
 0x2b4   :  { %2828 = vmatprep.subr.mxu1 %v3669_v39 }
 0x2b5   :  { %2829 = vmatpush1.msra.mxu1 %v2707_v29  ;;  %v2717_v29 = vld [vmem:[%s7612_s2 + $0x190] sm:$0xff] }
 0x2b6   :  { %2830 = vmatprep.subr.mxu1 %v3669_v39 }
 0x2b7   :  { %2831 = vmatpush1.msra.mxu1 %v2706_v24  ;;  %v2684_v24 = vld [vmem:[%s7612_s2 + $0x88] sm:$0xff] }
 0x2b8   :  { %2832 = vmatprep.subr.mxu1 %v3669_v39 }
 0x2b9   :  { %2833 = vmatpush1.msra.mxu1 %v2705_v28  ;;  %v2668_v28 = vld [vmem:[%s7612_s2 + $0x8] sm:$0xff] }
 0x2ba   :  { %2834 = vmatprep.subr.mxu1 %v3669_v39 }
 0x2bb   :  { %2835 = vmatpush1.msra.mxu1 %v2704_v17  ;;  %v2716_v17 = vld [vmem:[%s7612_s2 + $0x188] sm:$0xff] }
 0x2bc   :  { %2836 = vmatprep.subr.mxu1 %v3669_v39 }
 0x2bd   :  { %2837 = vmatpush1.msra.mxu1 %v2703_v3  ;;  %v2683_v3 = vld [vmem:[%s7612_s2 + $0x80] sm:$0xff] }
 0x2be   :  { %2838 = vmatprep.subr.mxu1 %v3669_v39 }
 0x2bf   :  { %2839 = vmatpush1.msra.mxu1 %v2702_v12  ;;  %v2667_v12 = vld [vmem:[%s7612_s2] sm:$0xff] }
 0x2c0   :  { %2840 = vmatprep.subr.mxu1 %v3669_v39 }
 0x2c1   :  { %2841 = vmatpush1.msra.mxu1 %v2701_v54  ;;  %v2715_v54 = vld [vmem:[%s7612_s2 + $0x180] sm:$0xff] }
 0x2c2   :  { %2842 = vmatprep.subr.mxu1 %v3669_v39 }
 0x2c3   :  { %2843 = vmatpush1.msra.mxu1 %v2700_v13 }
 0x2c4   :  { %2844 = vmatprep.subr.mxu1 %v3669_v39 }
 0x2c5   :  { %2845 = vmatpush1.msra.mxu1 %v2699_v20 }
 0x2c6   :  { %2848 = vmatprep.subr.mxu1 %v3669_v39 }
 0x2c7   :  { %3410 = vmatpush2.msk.msra.mxu1 %vm2580_vm6, %v2729_v18 }
 0x2c8   :  { %2850 = vmatprep.subr.mxu1 %v3669_v39 }
 0x2c9   :  { %2851 = vmatpush2.msra.mxu1 %v2728_v30  ;;  %v2578_v30 = vld [vmem:[%s6912_s6] sm:$0xf] }
 0x2ca   :  { %2852 = vmatprep.subr.mxu1 %v3669_v39 }
 0x366   :  { %v2490_v53 = vpop.f32.mrf.mxu0  ;;  %v2561_v25 = vpop.f32.mrf.mxu1 }
 0x367   :  { %v2491_v34 = vadd.f32 %v2490_v53, %v2375_v33  ;;  %v2562_v45 = vadd.f32 %v2561_v25, %v2383_v23 }
 0x368   :  { %v2492_v0 = vpop.f32.mrf.mxu0  ;;  %v2563_v58 = vpop.f32.mrf.mxu1 }
 0x369   :  { %vm2566_vm4 = vcmp.gt.f32.partialorder %v2491_v34, 0.0  ;;  %v2570_v41 = vmul.f32 0.01, %v2491_v34  ;;  %v2572_v26 = vmul.f32 0.01, %v2562_v45  ;;  %v2493_v42 = vadd.f32 %v2492_v0, %v2379_v14 }
 0x36a   :  { %v2564_v37 = vadd.f32 %v2563_v58, %v2387_v32  ;;  %vm2568_vm5 = vcmp.gt.f32.partialorder %v2562_v45, 0.0 }
 0x36b   :  { %v6427_v50 = vsel %vm2566_vm4, %v2491_v34, %v2570_v41  ;;  %vm2567_vm7 = vcmp.gt.f32.partialorder %v2493_v42, 0.0  ;;  %v2571_v62 = vmul.f32 0.01, %v2493_v42  ;;  %v6429_v57 = vsel %vm2568_vm5, %v2562_v45, %v2572_v26  ;;  %v2679_v41 = vld [vmem:[%s7612_s2 + $0x60] sm:$0xff] }
 0x36c   :  { %vm2569_vm8 = vcmp.gt.f32.partialorder %v2564_v37, 0.0  ;;  %v2573_v59 = vmul.f32 0.01, %v2564_v37  ;;  %v2581_v7 = vsel %vm2580_vm6, %v6427_v50, 0.0  ;;  %v2584_v35 = vsel %vm2580_vm6, %v6429_v57, 0.0  ;;  %v2727_v26 = vld [vmem:[%s7612_s2 + $0x1e0] sm:$0xff]  ;;  %3434 = vmatpush3.msra.mxu0 %v2679_v41 }
 0x36d   :  { %v6431_v27 = vsel %vm2567_vm7, %v2493_v42, %v2571_v62  ;;  %v2694_v42 = vld [vmem:[%s7612_s2 + $0xd8] sm:$0xff]  ;;  %2853 = vmatpush2.msra.mxu1 %v2727_v26  ;;  %v2693_v62 = vld [vmem:[%s7612_s2 + $0xd0] sm:$0xff]  ;;  %vm3323_vm5 = vcmask 80896  }
 0x36e   :  { %v2582_v21 = vsel %vm2580_vm6, %v6431_v27, 0.0  ;;  %v6437_v55 = vsel %vm2569_vm8, %v2564_v37, %v2573_v59  ;;  %v2678_v37 = vld [vmem:[%s7612_s2 + $0x58] sm:$0xff]  ;;  %3435 = vmatprep.subr.mxu0 %v2694_v42  ;;  %2854 = vmatprep.subr.mxu1 %v3669_v39  ;;  %v2677_v59 = vld [vmem:[%s7612_s2 + $0x50] sm:$0xff] }
 0x36f   :  { %v2583_v56 = vadd.f32 %v2582_v21, %v2581_v7  ;;  %v2587_v51 = vsel %vm2586_vm9, %v6437_v55, 0.0  ;;  %3436 = vmatpush3.msra.mxu0 %v2678_v37  ;;  %v2676_v7 = vld [vmem:[%s7612_s2 + $0x48] sm:$0xff] }
 0x370   :  { %3437 = vmatprep.subr.mxu0 %v2693_v62  ;;  %v2724_v21 = vld [vmem:[%s7612_s2 + $0x1c8] sm:$0xff] }
 0x371   :  { %v2585_v19 = vadd.f32 %v2584_v35, %v2583_v56  ;;  %3438 = vmatpush3.msra.mxu0 %v2677_v59  ;;  %v2691_v56 = vld [vmem:[%s7612_s2 + $0xc0] sm:$0xff] }
 0x372   :  { %v2723_v35 = vld [vmem:[%s7612_s2 + $0x1c0] sm:$0xff] }
 0x373   :  { %v2588_v52 = vadd.f32 %v2587_v51, %v2585_v19  ;;  %v2690_v19 = vld [vmem:[%s7612_s2 + $0xb8] sm:$0xff] }
 0x374   :  { %v2674_v51 = vld [vmem:[%s7612_s2 + $0x38] sm:$0xff] }
 0x375   :  { %2589 = vadd.xlane.f32.xlu1 %v2588_v52  ;;  %v2722_v52 = vld [vmem:[%s7612_s2 + $0x1b8] sm:$0xff] }
 0x3fe   :  { %v2590_v11 = vpop.xlane.xlu1 %2589 }
 0x3ff   :  { %v2592_v1 = vmul.f32 0.002, %v2590_v11  ;;  %v2579_v11 = vld [vmem:[%s6913_s7] sm:$0xf] }
 0x401   :  { %v6538_v15 = vsub.f32 %v6427_v50, %v2592_v1  ;;  %v6541_v44 = vsub.f32 %v6431_v27, %v2592_v1  ;;  %v6544_v31 = vsub.f32 %v6429_v57, %v2592_v1  ;;  %v6547_v38 = vsub.f32 %v6437_v55, %v2592_v1  ;;  %v2726_v50 = vld [vmem:[%s7612_s2 + $0x1d8] sm:$0xff]  ;;  %v2725_v57 = vld [vmem:[%s7612_s2 + $0x1d0] sm:$0xff]  ;;  %v2692_v27 = vld [vmem:[%s7612_s2 + $0xc8] sm:$0xff] }
 0x402   :  { %2855 = vmatpush2.msra.mxu1 %v2726_v50  ;;  %3439 = vmatprep.subr.mxu0 %v2692_v27  ;;  %v2675_v55 = vld [vmem:[%s7612_s2 + $0x40] sm:$0xff]  ;;  %v2625_v1 = vrot.slane %v2578_v30, %v7610_v8 }
 0x403   :  { %v2597_v47 = vmul.f32 %v6538_v15, %v6538_v15  ;;  %v2598_v33 = vmul.f32 %v6541_v44, %v6541_v44  ;;  %v2599_v23 = vmul.f32 %v6544_v31, %v6544_v31  ;;  %v2600_v53 = vmul.f32 %v6547_v38, %v6547_v38  ;;  %2856 = vmatprep.subr.mxu1 %v3669_v39 }
 0x404   :  { %2857 = vmatpush2.msra.mxu1 %v2725_v57  ;;  %3440 = vmatpush3.msra.mxu0 %v2676_v7 }
 0x405   :  { %v2601_v25 = vsel %vm2580_vm6, %v2597_v47, 0.0  ;;  %v2602_v14 = vsel %vm2580_vm6, %v2598_v33, 0.0  ;;  %v2604_v34 = vsel %vm2580_vm6, %v2599_v23, 0.0  ;;  %v2606_v0 = vsel %vm2586_vm9, %v2600_v53, 0.0  ;;  %2858 = vmatprep.subr.mxu1 %v3669_v39  ;;  %3441 = vmatprep.subr.mxu0 %v2691_v56 }
 0x406   :  { %v2603_v32 = vadd.f32 %v2602_v14, %v2601_v25  ;;  %2859 = vmatpush2.msra.mxu1 %v2724_v21  ;;  %3442 = vmatpush3.msra.mxu0 %v2675_v55  ;;  %v2633_v47 = vrot.slane %v2578_v30, %v7611_v22  ;;  %v2621_v33 = vrot.slane %v2578_v30, %v7608_v60  ;;  %v2930_v55 = vld [vmem:[%s6915_s12 + $0x60] sm:$0xf] }
 0x407   :  { %2860 = vmatprep.subr.mxu1 %v3669_v39  ;;  %3443 = vmatprep.subr.mxu0 %v2690_v19  ;;  %v2629_v23 = vrot.slane %v2578_v30, %v7609_v2  ;;  %v2650_v25 = vrot.slane %v2579_v11, %v7610_v8  ;;  %v2658_v14 = vrot.slane %v2579_v11, %v7611_v22 }
 0x408   :  { %v2605_v45 = vadd.f32 %v2604_v34, %v2603_v32  ;;  %2861 = vmatpush2.msra.mxu1 %v2723_v35  ;;  %3444 = vmatpush3.msra.mxu0 %v2674_v51  ;;  %v2646_v32 = vrot.slane %v2579_v11, %v7608_v60  ;;  %v2654_v34 = vrot.slane %v2579_v11, %v7609_v2 }
 0x409   :  { %2862 = vmatprep.subr.mxu1 %v3669_v39  ;;  %3445 = vmatprep.subr.mxu0 %v2689_v61 }
 0x40a   :  { %v2607_v58 = vadd.f32 %v2606_v0, %v2605_v45  ;;  %2863 = vmatpush2.msra.mxu1 %v2722_v52  ;;  %3446 = vmatpush3.msra.mxu0 %v2673_v48  ;;  %v2929_v48 = vld [vmem:[%s6915_s12 + $0x58] sm:$0xff] }
 0x40b   :  { %2864 = vmatprep.subr.mxu1 %v3669_v39  ;;  %3447 = vmatprep.subr.mxu0 %v2688_v9  ;;  %v2927_v9 = vld [vmem:[%s6915_s12 + $0x48] sm:$0xff] }
 0x40c   :  { %2608 = vadd.xlane.f32.xlu1 %v2607_v58  ;;  %2865 = vmatpush2.msra.mxu1 %v2721_v46  ;;  %v2928_v46 = vld [vmem:[%s6915_s12 + $0x50] sm:$0xff] }
 0x40d   :  { %2866 = vmatprep.subr.mxu1 %v3669_v39  ;;  %3448 = vmatpush3.msra.mxu0 %v2672_v40  ;;  %v2926_v40 = vld [vmem:[%s6915_s12 + $0x40] sm:$0xff] }
 0x40e   :  { %2867 = vmatpush2.msra.mxu1 %v2720_v36  ;;  %3449 = vmatprep.subr.mxu0 %v2687_v49  ;;  %v2925_v36 = vld [vmem:[%s6915_s12 + $0x38] sm:$0xff]  ;;  %v2924_v49 = vld [vmem:[%s6915_s12 + $0x30] sm:$0xff] }
 0x40f   :  { %2868 = vmatprep.subr.mxu1 %v3669_v39  ;;  %3450 = vmatpush3.msra.mxu0 %v2671_v6  ;;  %v2923_v6 = vld [vmem:[%s6915_s12 + $0x28] sm:$0xff] }
 0x410   :  { %2869 = vmatpush2.msra.mxu1 %v2719_v63  ;;  %3451 = vmatprep.subr.mxu0 %v2686_v10  ;;  %v2922_v63 = vld [vmem:[%s6915_s12 + $0x20] sm:$0xff]  ;;  %v2921_v10 = vld [vmem:[%s6915_s12 + $0x18] sm:$0xff] }
 0x411   :  { %2870 = vmatprep.subr.mxu1 %v3669_v39  ;;  %3452 = vmatpush3.msra.mxu0 %v2670_v43  ;;  %v2920_v43 = vld [vmem:[%s6915_s12 + $0x10] sm:$0xff] }
 0x412   :  { %2871 = vmatpush2.msra.mxu1 %v2718_v16  ;;  %3453 = vmatprep.subr.mxu0 %v2685_v5  ;;  %v2919_v16 = vld [vmem:[%s6915_s12 + $0x8] sm:$0xff]  ;;  %v2918_v5 = vld [vmem:[%s6915_s12] sm:$0xff] }
 0x413   :  { %2872 = vmatprep.subr.mxu1 %v3669_v39  ;;  %3454 = vmatpush3.msra.mxu0 %v2669_v4 }
 0x414   :  { %2873 = vmatpush2.msra.mxu1 %v2717_v29  ;;  %3455 = vmatprep.subr.mxu0 %v2684_v24 }
 0x415   :  { %2874 = vmatprep.subr.mxu1 %v3669_v39  ;;  %3456 = vmatpush3.msra.mxu0 %v2668_v28 }
 0x416   :  { %2875 = vmatpush2.msra.mxu1 %v2716_v17  ;;  %3457 = vmatprep.subr.mxu0 %v2683_v3  ;;  %v3412_v17 = vld [vmem:[%s6916_s10] ss:$0 sm:$0xff] }
 0x417   :  { %2876 = vmatprep.subr.mxu1 %v3669_v39  ;;  %3458 = vmatpush3.msra.mxu0 %v2667_v12  ;;  %v3413_v12 = vld [vmem:[%s6917_s11] ss:$0 sm:$0xff] }
 0x418   :  { %2877 = vmatpush2.msra.mxu1 %v2715_v54  ;;  %3506 = vmatprep.subr.mxu0 %v3669_v39 }
 0x419   :  { %3554 = vmatprep.subr.mxu1 %v3669_v39 }
 0x495   :  { %v2609_v13 = vpop.xlane.xlu1 %2608 }
 0x496   :  { %v2610_v20 = vmul.f32 0.002, %v2609_v13 }
 0x498   :  { %v2611_v18 = vadd.f32 1e-05, %v2610_v20  ;;  %v3414_v20 = vld [vmem:[%s6918_s13] ss:$0 sm:$0xff] }
 0x49a   :  { %3657 = vrsqrt.f32 %v2611_v18 }
 0x4a7   :  { %v3658_v53 = vpop.eup %3657 }
 0x4a8   :  { %v2614_v45 = vmul.f32 %v3658_v53, %v6541_v44  ;;  %v2616_v0 = vmul.f32 %v3658_v53, %v6547_v38  ;;  %v2613_v58 = vmul.f32 %v3658_v53, %v6538_v15  ;;  %v2615_v41 = vmul.f32 %v3658_v53, %v6544_v31  ;;  %v3409_v15 = vld [vmem:[%s6914_s9] ss:$0 sm:$0xff] }
 0x4aa   :  { %v2639_v26 = vmul.f32 %v2625_v1, %v2614_v45  ;;  %v2641_v42 = vmul.f32 %v2633_v47, %v2616_v0  ;;  %v2638_v37 = vmul.f32 %v2621_v33, %v2613_v58  ;;  %v2640_v50 = vmul.f32 %v2629_v23, %v2615_v41  ;;  %v3064_v45 = vld [vmem:[%s6919_s16 + $0x78] sm:$0xff]  ;;  %v3055_v0 = vld [vmem:[%s6919_s16 + $0x30] sm:$0xff]  ;;  %v3054_v41 = vld [vmem:[%s6919_s16 + $0x28] sm:$0xff] }
 0x4ab   :  { %v3063_v58 = vld [vmem:[%s6919_s16 + $0x70] sm:$0xff] }
 0x4ac   :  { %v2664_v8 = vadd.f32 %v2650_v25, %v2639_v26  ;;  %v2666_v62 = vadd.f32 %v2658_v14, %v2641_v42  ;;  %v2663_v22 = vadd.f32 %v2646_v32, %v2638_v37  ;;  %v2665_v59 = vadd.f32 %v2654_v34, %v2640_v50  ;;  %v3056_v34 = vld [vmem:[%s6919_s16 + $0x38] sm:$0xff]  ;;  %v3062_v26 = vld [vmem:[%s6919_s16 + $0x68] sm:$0xff]  ;;  %v3053_v42 = vld [vmem:[%s6919_s16 + $0x20] sm:$0xff] }
 0x4ad   :  { %v3061_v37 = vld [vmem:[%s6919_s16 + $0x60] sm:$0xff]  ;;  %v3052_v50 = vld [vmem:[%s6919_s16 + $0x18] sm:$0xff] }
 0x4ae   :  { %2808 = vmatprep.mubr.f32.mxu0 %v2664_v8  ;;  %3411 = vmatprep.mubr.msk.f32.mxu1 %vm2737_vm10, %v2666_v62  ;;  %v3060_v8 = vld [vmem:[%s6919_s16 + $0x58] sm:$0xff]  ;;  %v3051_v62 = vld [vmem:[%s6919_s16 + $0x10] sm:$0xff] }
 0x4af   :  { %2809 = vmatmul.mubr.f32.vlgmr.msra.gmra.mxu0 %v2663_v22  ;;  %2879 = vmatmul.mubr.f32.vlgmr.msra.gmra.mxu1 %v2665_v59  ;;  %v3059_v22 = vld [vmem:[%s6919_s16 + $0x50] sm:$0xff]  ;;  %v3050_v59 = vld [vmem:[%s6919_s16 + $0x8] sm:$0xff] }
 0x4b0   :  { %3507 = vmatpush3.msk.msra.mxu0 %vm2580_vm6, %v2930_v55  ;;  %3532 = vmatprep.mubr.msk.f32.mxu0 %vm3670_vm13, %v3669_v39  ;;  %vm3401_vm6 = vcmask 1024  }
 0x4b1   :  { %3508 = vmatprep.subr.mxu0 %v3669_v39  ;;  %3570 = vmatprep.mubr.msk.f32.mxu1 %vm3670_vm13, %v3669_v39 }
 0x4b2   :  { %3509 = vmatpush3.msra.mxu0 %v2929_v48  ;;  %3555 = vmatpush3.msra.mxu1 %v3056_v34  ;;  %v3226_v48 = vld [vmem:[%s6922_s18 + $0x18] sm:$0xff] }
 0x4b3   :  { %3510 = vmatprep.subr.mxu0 %v3669_v39  ;;  %3556 = vmatprep.subr.mxu1 %v3669_v39 }
 0x4b4   :  { %3511 = vmatpush3.msra.mxu0 %v2928_v46  ;;  %3557 = vmatpush3.msra.mxu1 %v3055_v0  ;;  %v3225_v46 = vld [vmem:[%s6922_s18 + $0x10] sm:$0xff] }
 0x4b5   :  { %3512 = vmatprep.subr.mxu0 %v3669_v39  ;;  %3558 = vmatprep.subr.mxu1 %v3669_v39 }
 0x4b6   :  { %3513 = vmatpush3.msra.mxu0 %v2927_v9  ;;  %3559 = vmatpush3.msra.mxu1 %v3054_v41  ;;  %v3224_v9 = vld [vmem:[%s6922_s18 + $0x8] sm:$0xff] }
 0x4b7   :  { %3514 = vmatprep.subr.mxu0 %v3669_v39  ;;  %3560 = vmatprep.subr.mxu1 %v3669_v39 }
 0x4b8   :  { %3515 = vmatpush3.msra.mxu0 %v2926_v40  ;;  %3561 = vmatpush3.msra.mxu1 %v3053_v42  ;;  %v3223_v40 = vld [vmem:[%s6922_s18] sm:$0xff] }
 0x4b9   :  { %3516 = vmatprep.subr.mxu0 %v3669_v39  ;;  %3562 = vmatprep.subr.mxu1 %v3669_v39 }
 0x4ba   :  { %3517 = vmatpush3.msra.mxu0 %v2925_v36  ;;  %3563 = vmatpush3.msra.mxu1 %v3052_v50 }
 0x4bb   :  { %3518 = vmatprep.subr.mxu0 %v3669_v39  ;;  %3564 = vmatprep.subr.mxu1 %v3669_v39 }
 0x4bc   :  { %3519 = vmatpush3.msra.mxu0 %v2924_v49  ;;  %3565 = vmatpush3.msra.mxu1 %v3051_v62 }
 0x4bd   :  { %3520 = vmatprep.subr.mxu0 %v3669_v39  ;;  %3566 = vmatprep.subr.mxu1 %v3669_v39 }
 0x4be   :  { %3521 = vmatpush3.msra.mxu0 %v2923_v6  ;;  %3567 = vmatpush3.msra.mxu1 %v3050_v59  ;;  %v3421_v6 = vld [vmem:[%s6923_s17] ss:$0 sm:$0xff] }
 0x4bf   :  { %3522 = vmatprep.subr.mxu0 %v3669_v39  ;;  %3568 = vmatprep.subr.mxu1 %v3669_v39 }
 0x4c0   :  { %3523 = vmatpush3.msra.mxu0 %v2922_v63 }
 0x4c1   :  { %3524 = vmatprep.subr.mxu0 %v3669_v39 }
 0x4c2   :  { %3525 = vmatpush3.msra.mxu0 %v2921_v10 }
 0x4c3   :  { %3526 = vmatprep.subr.mxu0 %v3669_v39 }
 0x4c4   :  { %3527 = vmatpush3.msra.mxu0 %v2920_v43 }
 0x4c5   :  { %3528 = vmatprep.subr.mxu0 %v3669_v39 }
 0x4c6   :  { %3529 = vmatpush3.msra.mxu0 %v2919_v16 }
 0x4c7   :  { %3530 = vmatprep.subr.mxu0 %v3669_v39 }
 0x4c8   :  { %3531 = vmatpush3.msra.mxu0 %v2918_v5 }
 0x4c9   :  { %3535 = vmatprep.subr.mxu0 %v3669_v39 }
 0x56f   :  { %v3459_v60 = vpop.f32.mrf.mxu0  ;;  %v2880_v2 = vpop.f32.mrf.mxu1 }
 0x571   :  { %v3460_v44 = vpop.f32.mrf.mxu0  ;;  %v2882_v31 = vpop.f32.mrf.mxu1 }
 0x572   :  { %v3461_v38 = vadd.f32 %v3460_v44, %v3459_v60  ;;  %v3058_v60 = vld [vmem:[%s6919_s16 + $0x48] sm:$0xff] }
 0x574   :  { %v2811_v57 = vadd.f32 %v3461_v38, %v3409_v15  ;;  %v3057_v15 = vld [vmem:[%s6919_s16 + $0x40] sm:$0xff] }
 0x576   :  { %v2881_v27 = vadd.f32 %v2880_v2, %v2811_v57  ;;  %v3049_v2 = vld [vmem:[%s6919_s16] sm:$0xff] }
 0x577   :  { %3569 = vmatpush3.msra.mxu1 %v3049_v2 }
 0x578   :  { %vm2884_vm11 = vcmp.gt.f32.partialorder %v2881_v27, 0.0  ;;  %v2885_v7 = vmul.f32 0.01, %v2881_v27  ;;  %3592 = vmatprep.subr.mxu1 %v3669_v39 }
 0x57a   :  { %v2886_v21 = vsel %vm2884_vm11, %v2881_v27, %v2885_v7  ;;  %v3417_v27 = vld [vmem:[%s6920_s14] ss:$0 sm:$0xff] }
 0x57b   :  { %v2890_v56 = vsel %vm2889_vm12, %v2886_v21, 0.0 }
 0x57c   :  { %2891 = vadd.xlane.f32.xlu1 %v2890_v56 }
 0x605   :  { %v2892_v35 = vpop.xlane.xlu1 %2891 }
 0x606   :  { %v2894_v19 = vmul.f32 0.01, %v2892_v35 }
 0x608   :  { %v2895_v51 = vsub.f32 %v2886_v21, %v2894_v19  ;;  %v3418_v21 = vld [vmem:[%s6921_s15] ss:$0 sm:$0xff]  ;;  %v3230_v19 = vld [vmem:[%s6922_s18 + $0x38] sm:$0xff] }
 0x60a   :  { %v2896_v52 = vmul.f32 %v2895_v51, %v2895_v51 }
 0x60c   :  { %v2897_v61 = vsel %vm2889_vm12, %v2896_v52, 0.0  ;;  %v3228_v52 = vld [vmem:[%s6922_s18 + $0x28] sm:$0xff] }
 0x60d   :  { %2898 = vadd.xlane.f32.xlu1 %v2897_v61  ;;  %v3227_v61 = vld [vmem:[%s6922_s18 + $0x20] sm:$0xff] }
 0x696   :  { %v2899_v4 = vpop.xlane.xlu1 %2898 }
 0x697   :  { %v2900_v29 = vmul.f32 0.01, %v2899_v4 }
 0x699   :  { %v2901_v24 = vadd.f32 1e-05, %v2900_v29  ;;  %v3315_v29 = vld [vmem:[%s6924_s20 + $0x8] sm:$0x3] }
 0x69b   :  { %3659 = vrsqrt.f32 %v2901_v24  ;;  %v3314_v24 = vld [vmem:[%s6924_s20] sm:$0xff] }
 0x6a8   :  { %v3660_v28 = vpop.eup %3659 }
 0x6a9   :  { %v2903_v3 = vmul.f32 %v3660_v28, %v2895_v51  ;;  %v3229_v51 = vld [vmem:[%s6922_s18 + $0x30] sm:$0xff]  ;;  %v27_v28 = vstv %s6925_s21 }
 0x6aa   :  { %28 = vst [vmem:[#allocation2] sm:$0x1] %v27_v28 }
 0x6ab   :  { %v2910_v54 = vmul.f32 %v3412_v17, %v2903_v3  ;;  %v3422_v17 = vld [vmem:[%s6926_s19] ss:$0 sm:$0xff] }
 0x6ad   :  { %v2917_v13 = vadd.f32 %v3413_v12, %v2910_v54 }
 0x6af   :  { %3533 = vmatmul.mubr.msk.f32.vlgmr.msra.gmra.mxu0 %vm2938_vm14, %v2917_v13 }
 0x6b0   :  { %3551 = vmatprep.mubr.msk.f32.mxu0 %vm3670_vm13, %v3669_v39  ;;  %3536 = vmatpush3.msra.mxu0 %v3064_v45 }
 0x6b1   :  { %3537 = vmatprep.subr.mxu0 %v3669_v39 }
 0x6b2   :  { %3538 = vmatpush3.msra.mxu0 %v3063_v58 }
 0x6b3   :  { %3539 = vmatprep.subr.mxu0 %v3669_v39 }
 0x6b4   :  { %3540 = vmatpush3.msra.mxu0 %v3062_v26 }
 0x6b5   :  { %3541 = vmatprep.subr.mxu0 %v3669_v39 }
 0x6b6   :  { %3542 = vmatpush3.msra.mxu0 %v3061_v37 }
 0x6b7   :  { %3543 = vmatprep.subr.mxu0 %v3669_v39 }
 0x6b8   :  { %3544 = vmatpush3.msra.mxu0 %v3060_v8 }
 0x6b9   :  { %3545 = vmatprep.subr.mxu0 %v3669_v39 }
 0x6ba   :  { %3546 = vmatpush3.msra.mxu0 %v3059_v22 }
 0x6bb   :  { %3547 = vmatprep.subr.mxu0 %v3669_v39 }
 0x6bc   :  { %3548 = vmatpush3.msra.mxu0 %v3058_v60 }
 0x6bd   :  { %3549 = vmatprep.subr.mxu0 %v3669_v39 }
 0x6be   :  { %3550 = vmatpush3.msra.mxu0 %v3057_v15 }
 0x6bf   :  { %3573 = vmatprep.subr.mxu0 %v3669_v39 }
 0x76f   :  { %v3011_v18 = vpop.f32.mrf.mxu0 }
 0x770   :  { %v3012_v30 = vadd.f32 %v3414_v20, %v3011_v18  ;;  %v3424_v18 = vld [vmem:[#allocation2] ss:$0 sm:$0xff] }
 0x771   :  { %v3534_v11 = vpop.f32.mrf.mxu0 }
 0x772   :  { %v3016_v1 = vmul.f32 0.01, %v3012_v30  ;;  %vm3015_vm15 = vcmp.gt.f32.partialorder %v3012_v30, 0.0 }
 0x774   :  { %v3017_v47 = vsel %vm3015_vm15, %v3012_v30, %v3016_v1 }
 0x775   :  { %v3021_v33 = vsel %vm3020_vm0, %v3017_v47, 0.0 }
 0x776   :  { %3022 = vadd.xlane.f32.xlu1 %v3021_v33 }
 0x7ff   :  { %v3023_v23 = vpop.xlane.xlu1 %3022 }
 0x800   :  { %v3025_v53 = vmul.f32 0.015625, %v3023_v23 }
 0x802   :  { %v3026_v25 = vsub.f32 %v3017_v47, %v3025_v53 }
 0x804   :  { %v3027_v14 = vmul.f32 %v3026_v25, %v3026_v25 }
 0x806   :  { %v3028_v32 = vsel %vm3020_vm0, %v3027_v14, 0.0 }
 0x807   :  { %3029 = vadd.xlane.f32.xlu1 %v3028_v32 }
 0x890   :  { %v3030_v44 = vpop.xlane.xlu1 %3029 }
 0x891   :  { %v3031_v31 = vmul.f32 0.015625, %v3030_v44 }
 0x893   :  { %v3032_v38 = vadd.f32 1e-05, %v3031_v31 }
 0x895   :  { %3661 = vrsqrt.f32 %v3032_v38 }
 0x8a2   :  { %v3662_v57 = vpop.eup %3661 }
 0x8a3   :  { %v3034_v7 = vmul.f32 %v3662_v57, %v3026_v25 }
 0x8a5   :  { %v3041_v56 = vmul.f32 %v3417_v27, %v3034_v7 }
 0x8a7   :  { %v3048_v55 = vadd.f32 %v3418_v21, %v3041_v56 }
 0x8a9   :  { %3571 = vmatmul.mubr.msk.f32.vlgmr.msra.gmra.mxu1 %vm3067_vm1, %v3048_v55  ;;  %v3066_v35 = vrot.slane %v3048_v55, 2 }
 0x8aa   :  { %3596 = vmatprep.mubr.msk.f32.mxu1 %vm3670_vm13, %v3669_v39  ;;  %3593 = vmatpush3.msk.msra.mxu1 %vm3327_vm3, %v3315_v29 }
 0x8ab   :  { %3552 = vmatmul.mubr.msk.f32.vlgmr.msra.gmra.mxu0 %vm3067_vm1, %v3066_v35  ;;  %3594 = vmatprep.subr.mxu1 %v3669_v39 }
 0x8ac   :  { %3574 = vmatpush3.msra.mxu0 %v3230_v19  ;;  %3589 = vmatprep.mubr.msk.f32.mxu0 %vm3670_vm13, %v3669_v39 }
 0x8ad   :  { %3575 = vmatprep.subr.mxu0 %v3669_v39  ;;  %3595 = vmatpush3.msra.mxu1 %v3314_v24 }
 0x8ae   :  { %3576 = vmatpush3.msra.mxu0 %v3229_v51 }
 0x8af   :  { %3577 = vmatprep.subr.mxu0 %v3669_v39 }
 0x8b0   :  { %3578 = vmatpush3.msra.mxu0 %v3228_v52 }
 0x8b1   :  { %3579 = vmatprep.subr.mxu0 %v3669_v39 }
 0x8b2   :  { %3580 = vmatpush3.msra.mxu0 %v3227_v61 }
 0x8b3   :  { %3581 = vmatprep.subr.mxu0 %v3669_v39 }
 0x8b4   :  { %3582 = vmatpush3.msra.mxu0 %v3226_v48 }
 0x8b5   :  { %3583 = vmatprep.subr.mxu0 %v3669_v39 }
 0x8b6   :  { %3584 = vmatpush3.msra.mxu0 %v3225_v46 }
 0x8b7   :  { %3585 = vmatprep.subr.mxu0 %v3669_v39 }
 0x8b8   :  { %3586 = vmatpush3.msra.mxu0 %v3224_v9 }
 0x8b9   :  { %3587 = vmatprep.subr.mxu0 %v3669_v39 }
 0x8ba   :  { %3588 = vmatpush3.msra.mxu0 %v3223_v40 }
 0x969   :  { %v3208_v36 = vpop.f32.mrf.mxu1 }
 0x96b   :  { %v3136_v49 = vpop.f32.mrf.mxu0  ;;  %v3572_v63 = vpop.f32.mrf.mxu1 }
 0x96c   :  { %v3209_v10 = vadd.f32 %v3208_v36, %v3136_v49 }
 0x96d   :  { %v3553_v43 = vpop.f32.mrf.mxu0 }
 0x96e   :  { %v3219_v16 = vadd.f32 %v3421_v6, %v3209_v10 }
 0x970   :  { %vm3220_vm2 = vcmp.gt.f32.partialorder %v3219_v16, 0.0  ;;  %v3221_v5 = vmul.f32 0.01, %v3219_v16 }
 0x972   :  { %v3222_v4 = vsel %vm3220_vm2, %v3219_v16, %v3221_v5 }
 0x973   :  { %3590 = vmatmul.mubr.msk.f32.vlgmr.msra.gmra.mxu0 %vm3067_vm1, %v3222_v4 }
 0xa33   :  { %v3307_v3 = vpop.f32.mrf.mxu0 }
 0xa34   :  { %v3308_v12 = vadd.f32 %v3422_v17, %v3307_v3 }
 0xa35   :  { %v3591_v54 = vpop.f32.mrf.mxu0 }
 0xa36   :  { %vm3311_vm4 = vcmp.gt.f32.partialorder %v3308_v12, 0.0  ;;  %v3312_v13 = vmul.f32 0.01, %v3308_v12 }
 0xa38   :  { %v3313_v20 = vsel %vm3311_vm4, %v3308_v12, %v3312_v13 }
 0xa39   :  { %3597 = vmatmul.mubr.msk.f32.vlgmr.msra.gmra.mxu1 %vm3323_vm5, %v3313_v20 }
 0xaf9   :  { %v3397_v30 = vpop.f32.mrf.mxu1 }
 0xafa   :  { %v3398_v11 = vadd.f32 %v3424_v18, %v3397_v30 }
 0xafb   :  { %v3598_v1 = vpop.f32.mrf.mxu1 }
 0xafc   :  { %3402 = vst.msk [vmem:[%s6927_s22] sm:$0x3] %vm3401_vm6, %v3398_v11 }

</bundles_post_ra>
